<compile_context>
chip_gen: v5e
topology: v5e:2x2
jax: 0.10.0
libtpu: 0.0.40
codegen_flags: <defaults>
</compile_context>

<pallas_src>
import math
import numpy as np

import jax
import jax.numpy as jnp
from jax import lax
from jax.experimental import pallas as pl
from jax.experimental.pallas import tpu as pltpu

SQRT2_INV = 1.0 / math.sqrt(2.0)


# ---------------------------------------------------------------------------
# In-kernel math helpers (traced inside the Pallas kernel)
# ---------------------------------------------------------------------------
def _erf(x):
    # Abramowitz & Stegun 7.1.26, |abs err| < 1.5e-7 -> matches PyTorch's
    # exact (erf-based) GELU to f32 accuracy.  Kept instead of the tanh
    # approximation to preserve the reference semantics.
    a1, a2, a3, a4, a5 = 0.254829592, -0.284496736, 1.421413741, -1.453152027, 1.061405429
    p = 0.3275911
    sgn = jnp.where(x >= 0.0, 1.0, -1.0)
    ax = jnp.abs(x)
    t = 1.0 / (1.0 + p * ax)
    poly = ((((a5 * t + a4) * t + a3) * t + a2) * t + a1) * t
    return sgn * (1.0 - poly * jnp.exp(-ax * ax))


def _gelu(x):
    return 0.5 * x * (1.0 + _erf(x * SQRT2_INV))


def _softplus(x):
    # numerically stable softplus
    return jnp.maximum(x, 0.0) + jnp.log(1.0 + jnp.exp(-jnp.abs(x)))


# ---------------------------------------------------------------------------
# BlockSpec helper (single grid step, full-array blocks)
# ---------------------------------------------------------------------------
def _full_spec(shape):
    n = len(shape)
    return pl.BlockSpec(shape, lambda *_, n=n: (0,) * n)


# ---------------------------------------------------------------------------
# Fused bitcn kernel factory
# ---------------------------------------------------------------------------
def _make_bitcn_kernel(B, S_lag, S_cov, T, H, Nl, k):
    R_lag, R_cov = B * S_lag, B * S_cov

    def time_index(R, S):
        # per-row time index within its batch segment (rows are batch-major)
        rows = lax.broadcasted_iota(jnp.int32, (R, H), 0)
        t = rows
        for b in range(1, B):
            t = jnp.where(rows >= b * S, rows - b * S, t)
        return t

    def shift_rows(x, s, S, t_mod, mode):
        # mode 'backward': xs[t] = x[t-s] (zero-pad on the left, per batch)
        # mode 'forward' : xs[t] = x[t+s] (zero-pad on the right, per batch)
        R = x.shape[0]
        if s == 0:
            return x
        if s >= S:
            return jnp.zeros_like(x)
        if mode == 'backward':
            rolled = pltpu.roll(x, shift=s, axis=0)
            mask = t_mod >= s
        else:
            rolled = pltpu.roll(x, shift=(R - s) % R, axis=0)
            mask = t_mod < (S - s)
        return jnp.where(mask, rolled, 0.0)

    def kernel(hlag_ref, hcov_ref,
               uplag_w_ref, uplag_b_ref, upcov_w_ref, upcov_b_ref,
               fw1_ref, fb1_ref, fw2_ref, fb2_ref,
               bw1_ref, bb1_ref, bw2_ref, bb2_ref,
               hw_ref, hb_ref, out_ref):
        # ---- upscale linears (dropout = identity) ----
        h_lag = jnp.dot(hlag_ref[...], uplag_w_ref[...],
                        preferred_element_type=jnp.float32) + uplag_b_ref[...]
        h_cov = jnp.dot(hcov_ref[...], upcov_w_ref[...],
                        preferred_element_type=jnp.float32) + upcov_b_ref[...]
        out_lag = jnp.zeros_like(h_lag)
        out_cov = jnp.zeros_like(h_cov)

        t_lag = time_index(R_lag, S_lag)
        t_cov = time_index(R_cov, S_cov)

        # ---- forward (anti-causal) stack on the covariate stream ----
        # conv1 is depthwise (groups = H): per-tap diagonal weights on the
        # VPU, split into 4 output-channel blocks so no channel repeat /
        # concat is needed; conv2 becomes 4 small MXU matmuls summed.
        for i in range(Nl):
            dil = 2 ** i
            xs = [shift_rows(h_cov, j * dil, S_cov, t_cov, 'forward')
                  for j in range(k)]
            h2 = fb2_ref[i]                                   # (1, 2H) bias
            for r in range(4):
                a = xs[0] * fw1_ref[(i * k + 0) * 4 + r]
                for j in range(1, k):
                    a = a + xs[j] * fw1_ref[(i * k + j) * 4 + r]
                g = _gelu(a + fb1_ref[i * 4 + r])             # dropout = id
                h2 = h2 + jnp.dot(g, fw2_ref[i * 4 + r],
                                  preferred_element_type=jnp.float32)
            h_cov = h_cov + h2[:, :H]                         # h_prev + h_next
            out_cov = out_cov + h2[:, H:]                     # out_prev + out_next

        # ---- backward (causal) stack on the lag stream ----
        # dense conv1 (groups=1): stack the k shifted copies along channels
        # and run one depth-(k*H) MXU contraction per layer.
        for i in range(Nl):
            dil = 2 ** i
            xs = [shift_rows(h_lag, (k - 1 - j) * dil, S_lag, t_lag, 'backward')
                  for j in range(k)]
            xcat = jnp.concatenate(xs, axis=1) if k > 1 else xs[0]
            h1 = _gelu(jnp.dot(xcat, bw1_ref[i],
                               preferred_element_type=jnp.float32) + bb1_ref[i])
            h2 = jnp.dot(h1, bw2_ref[i],
                         preferred_element_type=jnp.float32) + bb2_ref[i]
            h_lag = h_lag + h2[:, :H]
            out_lag = out_lag + h2[:, H:]

        # ---- loc/scale head on the last T time steps ----
        # PyTorch: cat((out_cov[:, :, :dim_seq], out_lag), 1)[:, :, -T:]
        pieces = []
        for b in range(B):
            cov_rows = out_cov[b * S_cov + S_lag - T: b * S_cov + S_lag, :]
            lag_rows = out_lag[b * S_lag + S_lag - T: b * S_lag + S_lag, :]
            pieces.append(jnp.concatenate([cov_rows, lag_rows], axis=1))
        head_in = jnp.concatenate(pieces, axis=0) if B > 1 else pieces[0]
        y = jnp.dot(head_in, hw_ref[...],
                    preferred_element_type=jnp.float32) + hb_ref[...]
        # Matches the reference exactly: softplus over the full output,
        # chunked into (loc, scale) in the wrapper; epsilon added to scale only.
        out_ref[...] = _softplus(y)

    return kernel


def bitcn_fused_pallas(hlag, hcov, p, *, B, S_lag, S_cov, T, H, Nl, k, d_output):
    kern = _make_bitcn_kernel(B, S_lag, S_cov, T, H, Nl, k)
    inputs = (hlag, hcov,
              p['up_lag_w'], p['up_lag_b'], p['up_cov_w'], p['up_cov_b'],
              p['fwd_w1d'], p['fwd_b1d'], p['fwd_w2r'], p['fwd_b2'],
              p['bwd_w1'], p['bwd_b1'], p['bwd_w2'], p['bwd_b2'],
              p['head_w'], p['head_b'])
    out_shape = jax.ShapeDtypeStruct((B * T, 2 * d_output), jnp.float32)
    return pl.pallas_call(
        kern,
        grid=(1,),
        in_specs=[_full_spec(x.shape) for x in inputs],
        out_specs=_full_spec((B * T, 2 * d_output)),
        out_shape=out_shape,
        compiler_params=pltpu.CompilerParams(dimension_semantics=("arbitrary",)),
    )(*inputs)


# ---------------------------------------------------------------------------
# Parameter construction (torch-layout init, converted to kernel layout)
# ---------------------------------------------------------------------------
def init_params(key, d_lag, d_cov, d_emb, d_output, d_hidden, Nl, kernel_size):
    d_emb = np.asarray(d_emb)
    d_emb_tot = int(d_emb[:, 1].sum())
    H = d_hidden
    k = kernel_size
    keys = list(jax.random.split(key, 8 + 4 * Nl))
    ki = iter(keys)
    params = {}

    # nn.Embedding: N(0, 1)
    params['emb'] = [
        jax.random.normal(next(ki), (int(d_emb[i, 0]), int(d_emb[i, 1])), jnp.float32)
        for i in range(len(d_emb))
    ]

    def linear_init(kk, d_in, d_out):
        bound = 1.0 / math.sqrt(d_in)
        kw, kb = jax.random.split(kk)
        w = jax.random.uniform(kw, (d_out, d_in), jnp.float32, minval=-bound, maxval=bound)
        b = jax.random.uniform(kb, (d_out,), jnp.float32, minval=-bound, maxval=bound)
        return w, b                                   # torch layout (out, in)

    w, b = linear_init(next(ki), d_lag + d_emb_tot + d_cov, H)
    params['up_lag_w'], params['up_lag_b'] = w.T, b.reshape(1, H)
    w, b = linear_init(next(ki), d_emb_tot + d_cov, H)
    params['up_cov_w'], params['up_cov_b'] = w.T, b.reshape(1, H)
    w, b = linear_init(next(ki), 2 * H, 2 * d_output)
    params['head_w'], params['head_b'] = w.T, b.reshape(1, 2 * d_output)

    def conv_init(kk, out_ch, in_ch_total, ksize, groups):
        bound = math.sqrt(1.0 / (in_ch_total * ksize))
        kw, kb = jax.random.split(kk)
        w = jax.random.uniform(kw, (out_ch, in_ch_total // groups, ksize),
                               jnp.float32, minval=-bound, maxval=bound)
        b = jax.random.uniform(kb, (out_ch,), jnp.float32, minval=-bound, maxval=bound)
        return w, b

    # forward cells: depthwise conv1 (groups=H). output channel o = c*4 + r
    # reads input channel c.  Converted to per-tap diagonal weights (r-blocks)
    # and conv2 split into matching row blocks.
    fw1, fb1, fw2, fb2 = [], [], [], []
    for _ in range(Nl):
        k1, k2 = jax.random.split(next(ki))
        w1g, b1 = conv_init(k1, 4 * H, H, k, H)            # (4H, 1, k)
        w2c, b2 = conv_init(k2, 2 * H, 4 * H, 1, 1)        # (2H, 4H, 1)
        w1_jrc = jnp.transpose(w1g[:, 0, :].reshape(H, 4, k), (2, 1, 0))       # (k, 4, H)
        b1_rc = jnp.transpose(b1.reshape(H, 4), (1, 0))                        # (4, H)
        w2_rco = jnp.transpose(w2c[:, :, 0].reshape(2 * H, H, 4), (2, 1, 0))   # (4, H, 2H)
        fw1.append(w1_jrc); fb1.append(b1_rc); fw2.append(w2_rco)
        fb2.append(b2.reshape(1, 2 * H))
    params['fwd_w1d'] = jnp.stack(fw1).reshape(Nl * k * 4, 1, H)
    params['fwd_b1d'] = jnp.stack(fb1).reshape(Nl * 4, 1, H)
    params['fwd_w2r'] = jnp.stack(fw2).reshape(Nl * 4, H, 2 * H)
    params['fwd_b2'] = jnp.stack(fb2)                       # (Nl, 1, 2H)

    # backward cells: dense conv1 (groups=1), taps stacked along the
    # contraction axis (rows ordered j*H + c).
    bw1, bb1, bw2, bb2 = [], [], [], []
    for _ in range(Nl):
        k1, k2 = jax.random.split(next(ki))
        w1d, b1 = conv_init(k1, 4 * H, H, k, 1)             # (4H, H, k)
        w2c, b2 = conv_init(k2, 2 * H, 4 * H, 1, 1)         # (2H, 4H, 1)
        bw1.append(jnp.transpose(w1d, (2, 1, 0)).reshape(k * H, 4 * H))
        bb1.append(b1.reshape(1, 4 * H))
        bw2.append(jnp.transpose(w2c[:, :, 0], (1, 0)))     # (4H, 2H)
        bb2.append(b2.reshape(1, 2 * H))
    params['bwd_w1'] = jnp.stack(bw1)                       # (Nl, k*H, 4H)
    params['bwd_b1'] = jnp.stack(bb1)                       # (Nl, 1, 4H)
    params['bwd_w2'] = jnp.stack(bw2)                       # (Nl, 4H, 2H)
    params['bwd_b2'] = jnp.stack(bb2)                       # (Nl, 1, 2H)
    return params


# ---------------------------------------------------------------------------
# Full forward pass (embedding/reshape glue in JAX, hot path in one kernel)
# ---------------------------------------------------------------------------
def bitcn_forward(params, x_lag, x_cov, x_idx, d_outputseqlen, *,
                  d_hidden, Nl, kernel_size):
    H = d_hidden
    # embeddings (gather kept in JAX glue; XLA fuses it with the concats)
    x_emb = jnp.concatenate(
        [params['emb'][i][x_idx[:, :, i]] for i in range(len(params['emb']))],
        axis=-1)
    dim_seq = x_lag.shape[0]
    h_cov_in = jnp.concatenate([x_cov, x_emb], axis=-1)               # (S_cov, B, Dc)
    h_lag_in = jnp.concatenate([x_lag, h_cov_in[:dim_seq]], axis=-1)  # (S_lag, B, Dl)
    S_cov, B, Dc = h_cov_in.shape
    S_lag, _, Dl = h_lag_in.shape
    T = d_outputseqlen
    d_output = params['head_w'].shape[1] // 2

    # flatten to batch-major rows (row = b*S + t) for the fused kernel
    hl = jnp.transpose(h_lag_in, (1, 0, 2)).reshape(B * S_lag, Dl)
    hc = jnp.transpose(h_cov_in, (1, 0, 2)).reshape(B * S_cov, Dc)

    y = bitcn_fused_pallas(hl, hc, params, B=B, S_lag=S_lag, S_cov=S_cov,
                           T=T, H=H, Nl=Nl, k=kernel_size, d_output=d_output)

    y = jnp.transpose(y.reshape(B, T, 2 * d_output), (1, 0, 2))       # (T, B, 2*d_out)
    loc = y[..., :d_output]
    scale = y[..., d_output:] + 1e-6
    return loc, scale


# ---------------------------------------------------------------------------
if __name__ == "__main__":
    # small, module-consistent sizes
    d_lag, d_cov, d_output, d_hidden = 3, 2, 2, 32
    d_emb = np.array([[5, 3], [7, 2]], dtype=np.int64)
    dropout, Nl, kernel_size = 0.0, 2, 2
    B, S_lag, S_cov, d_outputseqlen = 2, 16, 24, 4

    key = jax.random.PRNGKey(0)
    kp, k1, k2, k3 = jax.random.split(key, 4)
    params = init_params(kp, d_lag, d_cov, d_emb, d_output, d_hidden, Nl, kernel_size)

    x_lag = jax.random.normal(k1, (S_lag, B, d_lag), jnp.float32)
    x_cov = jax.random.normal(k2, (S_cov, B, d_cov), jnp.float32)
    ki1, ki2 = jax.random.split(k3)
    idx0 = jax.random.randint(ki1, (S_cov, B, 1), 0, int(d_emb[0, 0]))
    idx1 = jax.random.randint(ki2, (S_cov, B, 1), 0, int(d_emb[1, 0]))
    x_idx = jnp.concatenate([idx0, idx1], axis=-1).astype(jnp.int32)

    loc, scale = bitcn_forward(params, x_lag, x_cov, x_idx, d_outputseqlen,
                               d_hidden=d_hidden, Nl=Nl, kernel_size=kernel_size)
    jax.block_until_ready((loc, scale))
    assert loc.shape == (d_outputseqlen, B, d_output)
    assert scale.shape == (d_outputseqlen, B, d_output)
    assert bool(jnp.all(jnp.isfinite(loc))) and bool(jnp.all(scale > 0))
    print("KERNEL_OK")
</pallas_src>

<mosaic_0001>
module attributes {stable_mosaic.version = 11 : i64} {
  func.func @kernel(%arg0: i32, %arg1: memref<32x10xf32, #tpu.memory_space<vmem>>, %arg2: memref<48x7xf32, #tpu.memory_space<vmem>>, %arg3: memref<10x32xf32, #tpu.memory_space<vmem>>, %arg4: memref<1x32xf32, #tpu.memory_space<vmem>>, %arg5: memref<7x32xf32, #tpu.memory_space<vmem>>, %arg6: memref<1x32xf32, #tpu.memory_space<vmem>>, %arg7: memref<16x1x32xf32, #tpu.memory_space<vmem>>, %arg8: memref<8x1x32xf32, #tpu.memory_space<vmem>>, %arg9: memref<8x32x64xf32, #tpu.memory_space<vmem>>, %arg10: memref<2x1x64xf32, #tpu.memory_space<vmem>>, %arg11: memref<2x64x128xf32, #tpu.memory_space<vmem>>, %arg12: memref<2x1x128xf32, #tpu.memory_space<vmem>>, %arg13: memref<2x128x64xf32, #tpu.memory_space<vmem>>, %arg14: memref<2x1x64xf32, #tpu.memory_space<vmem>>, %arg15: memref<64x4xf32, #tpu.memory_space<vmem>>, %arg16: memref<1x4xf32, #tpu.memory_space<vmem>>, %arg17: memref<8x4xf32, #tpu.memory_space<vmem>>) attributes {dimension_semantics = [#tpu.dimension_semantics<arbitrary>], iteration_bounds = array<i64: 1>, scalar_prefetch = 0 : i64, scratch_operands = 0 : i64, tpu.core_type = #tpu.core_type<tc>, window_params = [{pipeline_mode = #tpu.pipeline_mode<synchronous>, transform_indices = @transform_0, window_bounds = array<i64: 32, 10>}, {pipeline_mode = #tpu.pipeline_mode<synchronous>, transform_indices = @transform_1, window_bounds = array<i64: 48, 7>}, {pipeline_mode = #tpu.pipeline_mode<synchronous>, transform_indices = @transform_2, window_bounds = array<i64: 10, 32>}, {pipeline_mode = #tpu.pipeline_mode<synchronous>, transform_indices = @transform_3, window_bounds = array<i64: 1, 32>}, {pipeline_mode = #tpu.pipeline_mode<synchronous>, transform_indices = @transform_4, window_bounds = array<i64: 7, 32>}, {pipeline_mode = #tpu.pipeline_mode<synchronous>, transform_indices = @transform_5, window_bounds = array<i64: 1, 32>}, {pipeline_mode = #tpu.pipeline_mode<synchronous>, transform_indices = @transform_6, window_bounds = array<i64: 16, 1, 32>}, {pipeline_mode = #tpu.pipeline_mode<synchronous>, transform_indices = @transform_7, window_bounds = array<i64: 8, 1, 32>}, {pipeline_mode = #tpu.pipeline_mode<synchronous>, transform_indices = @transform_8, window_bounds = array<i64: 8, 32, 64>}, {pipeline_mode = #tpu.pipeline_mode<synchronous>, transform_indices = @transform_9, window_bounds = array<i64: 2, 1, 64>}, {pipeline_mode = #tpu.pipeline_mode<synchronous>, transform_indices = @transform_10, window_bounds = array<i64: 2, 64, 128>}, {pipeline_mode = #tpu.pipeline_mode<synchronous>, transform_indices = @transform_11, window_bounds = array<i64: 2, 1, 128>}, {pipeline_mode = #tpu.pipeline_mode<synchronous>, transform_indices = @transform_12, window_bounds = array<i64: 2, 128, 64>}, {pipeline_mode = #tpu.pipeline_mode<synchronous>, transform_indices = @transform_13, window_bounds = array<i64: 2, 1, 64>}, {pipeline_mode = #tpu.pipeline_mode<synchronous>, transform_indices = @transform_14, window_bounds = array<i64: 64, 4>}, {pipeline_mode = #tpu.pipeline_mode<synchronous>, transform_indices = @transform_15, window_bounds = array<i64: 1, 4>}, {pipeline_mode = #tpu.pipeline_mode<synchronous>, transform_indices = @transform_16, window_bounds = array<i64: 8, 4>}]} {
    %c0 = arith.constant 0 : index
    %c0_0 = arith.constant 0 : index
    %0 = vector.load %arg1[%c0, %c0_0] : memref<32x10xf32, #tpu.memory_space<vmem>>, vector<32x10xf32>
    %c0_1 = arith.constant 0 : index
    %c0_2 = arith.constant 0 : index
    %1 = vector.load %arg3[%c0_1, %c0_2] : memref<10x32xf32, #tpu.memory_space<vmem>>, vector<10x32xf32>
    %cst = arith.constant dense<0.000000e+00> : vector<32x32xf32>
    %2 = tpu.matmul %0, %1, %cst {dimension_numbers = #tpu.dot_dimension_numbers<[1], [0], [0], [1], [0, 0, 1, 1], [], []>} : vector<32x10xf32>, vector<10x32xf32>, vector<32x32xf32> -> vector<32x32xf32>
    %c0_3 = arith.constant 0 : index
    %c0_4 = arith.constant 0 : index
    %3 = vector.load %arg4[%c0_3, %c0_4] : memref<1x32xf32, #tpu.memory_space<vmem>>, vector<1x32xf32>
    %4 = vector.broadcast %3 : vector<1x32xf32> to vector<32x32xf32>
    %5 = arith.addf %2, %4 : vector<32x32xf32>
    %c0_5 = arith.constant 0 : index
    %c0_6 = arith.constant 0 : index
    %6 = vector.load %arg2[%c0_5, %c0_6] : memref<48x7xf32, #tpu.memory_space<vmem>>, vector<48x7xf32>
    %c0_7 = arith.constant 0 : index
    %c0_8 = arith.constant 0 : index
    %7 = vector.load %arg5[%c0_7, %c0_8] : memref<7x32xf32, #tpu.memory_space<vmem>>, vector<7x32xf32>
    %cst_9 = arith.constant dense<0.000000e+00> : vector<48x32xf32>
    %8 = tpu.matmul %6, %7, %cst_9 {dimension_numbers = #tpu.dot_dimension_numbers<[1], [0], [0], [1], [0, 0, 1, 1], [], []>} : vector<48x7xf32>, vector<7x32xf32>, vector<48x32xf32> -> vector<48x32xf32>
    %c0_10 = arith.constant 0 : index
    %c0_11 = arith.constant 0 : index
    %9 = vector.load %arg6[%c0_10, %c0_11] : memref<1x32xf32, #tpu.memory_space<vmem>>, vector<1x32xf32>
    %10 = vector.broadcast %9 : vector<1x32xf32> to vector<48x32xf32>
    %11 = arith.addf %8, %10 : vector<48x32xf32>
    %cst_12 = arith.constant 0.000000e+00 : f32
    %12 = vector.broadcast %cst_12 : f32 to vector<32x32xf32>
    %cst_13 = arith.constant 0.000000e+00 : f32
    %13 = vector.broadcast %cst_13 : f32 to vector<48x32xf32>
    %14 = tpu.iota {dimensions = array<i32: 0>} : vector<32x32xi32>
    %c16_i32 = arith.constant 16 : i32
    %15 = vector.broadcast %c16_i32 : i32 to vector<32x32xi32>
    %16 = arith.cmpi sge, %14, %15 : vector<32x32xi32>
    %c16_i32_14 = arith.constant 16 : i32
    %17 = vector.broadcast %c16_i32_14 : i32 to vector<32x32xi32>
    %18 = arith.subi %14, %17 : vector<32x32xi32>
    %19 = arith.select %16, %18, %14 : vector<32x32xi1>, vector<32x32xi32>
    %20 = tpu.iota {dimensions = array<i32: 0>} : vector<48x32xi32>
    %c24_i32 = arith.constant 24 : i32
    %21 = vector.broadcast %c24_i32 : i32 to vector<48x32xi32>
    %22 = arith.cmpi sge, %20, %21 : vector<48x32xi32>
    %c24_i32_15 = arith.constant 24 : i32
    %23 = vector.broadcast %c24_i32_15 : i32 to vector<48x32xi32>
    %24 = arith.subi %20, %23 : vector<48x32xi32>
    %25 = arith.select %22, %24, %20 : vector<48x32xi1>, vector<48x32xi32>
    %c47_i32 = arith.constant 47 : i32
    %26 = tpu.dynamic_rotate %11 by %c47_i32 dim 0 : vector<48x32xf32>, i32 -> vector<48x32xf32>
    %c23_i32 = arith.constant 23 : i32
    %27 = vector.broadcast %c23_i32 : i32 to vector<48x32xi32>
    %28 = arith.cmpi slt, %25, %27 : vector<48x32xi32>
    %cst_16 = arith.constant 0.000000e+00 : f32
    %29 = vector.broadcast %cst_16 : f32 to vector<48x32xf32>
    %30 = arith.select %28, %26, %29 : vector<48x32xi1>, vector<48x32xf32>
    %c0_17 = arith.constant 0 : index
    %c0_18 = arith.constant 0 : index
    %c0_19 = arith.constant 0 : index
    %31 = vector.load %arg10[%c0_17, %c0_18, %c0_19] : memref<2x1x64xf32, #tpu.memory_space<vmem>>, vector<1x1x64xf32>
    %32 = vector.shape_cast %31 : vector<1x1x64xf32> to vector<1x64xf32>
    %c0_20 = arith.constant 0 : index
    %c0_21 = arith.constant 0 : index
    %c0_22 = arith.constant 0 : index
    %33 = vector.load %arg7[%c0_20, %c0_21, %c0_22] : memref<16x1x32xf32, #tpu.memory_space<vmem>>, vector<1x1x32xf32>
    %34 = vector.shape_cast %33 : vector<1x1x32xf32> to vector<1x32xf32>
    %35 = vector.broadcast %34 : vector<1x32xf32> to vector<48x32xf32>
    %36 = arith.mulf %11, %35 : vector<48x32xf32>
    %c4 = arith.constant 4 : index
    %c0_23 = arith.constant 0 : index
    %c0_24 = arith.constant 0 : index
    %37 = vector.load %arg7[%c4, %c0_23, %c0_24] : memref<16x1x32xf32, #tpu.memory_space<vmem>>, vector<1x1x32xf32>
    %38 = vector.shape_cast %37 : vector<1x1x32xf32> to vector<1x32xf32>
    %39 = vector.broadcast %38 : vector<1x32xf32> to vector<48x32xf32>
    %40 = arith.mulf %30, %39 : vector<48x32xf32>
    %41 = arith.addf %36, %40 : vector<48x32xf32>
    %c0_25 = arith.constant 0 : index
    %c0_26 = arith.constant 0 : index
    %c0_27 = arith.constant 0 : index
    %42 = vector.load %arg8[%c0_25, %c0_26, %c0_27] : memref<8x1x32xf32, #tpu.memory_space<vmem>>, vector<1x1x32xf32>
    %43 = vector.shape_cast %42 : vector<1x1x32xf32> to vector<1x32xf32>
    %44 = vector.broadcast %43 : vector<1x32xf32> to vector<48x32xf32>
    %45 = arith.addf %41, %44 : vector<48x32xf32>
    %cst_28 = arith.constant 5.000000e-01 : f32
    %46 = vector.broadcast %cst_28 : f32 to vector<48x32xf32>
    %47 = arith.mulf %46, %45 : vector<48x32xf32>
    %cst_29 = arith.constant 0.707106769 : f32
    %48 = vector.broadcast %cst_29 : f32 to vector<48x32xf32>
    %49 = arith.mulf %45, %48 : vector<48x32xf32>
    %cst_30 = arith.constant 0.000000e+00 : f32
    %50 = vector.broadcast %cst_30 : f32 to vector<48x32xf32>
    %51 = arith.cmpf oge, %49, %50 : vector<48x32xf32>
    %cst_31 = arith.constant 1.000000e+00 : f32
    %cst_32 = arith.constant -1.000000e+00 : f32
    %52 = vector.broadcast %cst_31 : f32 to vector<48x32xf32>
    %53 = vector.broadcast %cst_32 : f32 to vector<48x32xf32>
    %54 = arith.select %51, %52, %53 : vector<48x32xi1>, vector<48x32xf32>
    %55 = math.absf %49 : vector<48x32xf32>
    %cst_33 = arith.constant 0.327591091 : f32
    %56 = vector.broadcast %cst_33 : f32 to vector<48x32xf32>
    %57 = arith.mulf %56, %55 : vector<48x32xf32>
    %cst_34 = arith.constant 1.000000e+00 : f32
    %58 = vector.broadcast %cst_34 : f32 to vector<48x32xf32>
    %59 = arith.addf %58, %57 : vector<48x32xf32>
    %cst_35 = arith.constant 1.000000e+00 : f32
    %60 = vector.broadcast %cst_35 : f32 to vector<48x32xf32>
    %61 = arith.divf %60, %59 : vector<48x32xf32>
    %cst_36 = arith.constant 1.06140542 : f32
    %62 = vector.broadcast %cst_36 : f32 to vector<48x32xf32>
    %63 = arith.mulf %62, %61 : vector<48x32xf32>
    %cst_37 = arith.constant -1.45315206 : f32
    %64 = vector.broadcast %cst_37 : f32 to vector<48x32xf32>
    %65 = arith.addf %63, %64 : vector<48x32xf32>
    %66 = arith.mulf %65, %61 : vector<48x32xf32>
    %cst_38 = arith.constant 1.42141378 : f32
    %67 = vector.broadcast %cst_38 : f32 to vector<48x32xf32>
    %68 = arith.addf %66, %67 : vector<48x32xf32>
    %69 = arith.mulf %68, %61 : vector<48x32xf32>
    %cst_39 = arith.constant -0.284496725 : f32
    %70 = vector.broadcast %cst_39 : f32 to vector<48x32xf32>
    %71 = arith.addf %69, %70 : vector<48x32xf32>
    %72 = arith.mulf %71, %61 : vector<48x32xf32>
    %cst_40 = arith.constant 0.254829586 : f32
    %73 = vector.broadcast %cst_40 : f32 to vector<48x32xf32>
    %74 = arith.addf %72, %73 : vector<48x32xf32>
    %75 = arith.mulf %74, %61 : vector<48x32xf32>
    %cst_41 = arith.constant 0.000000e+00 : f32
    %76 = vector.broadcast %cst_41 : f32 to vector<48x32xf32>
    %77 = arith.subf %76, %55 : vector<48x32xf32>
    %78 = arith.mulf %77, %55 : vector<48x32xf32>
    %79 = math.exp %78 : vector<48x32xf32>
    %80 = arith.mulf %75, %79 : vector<48x32xf32>
    %cst_42 = arith.constant 1.000000e+00 : f32
    %81 = vector.broadcast %cst_42 : f32 to vector<48x32xf32>
    %82 = arith.subf %81, %80 : vector<48x32xf32>
    %83 = arith.mulf %54, %82 : vector<48x32xf32>
    %cst_43 = arith.constant 1.000000e+00 : f32
    %84 = vector.broadcast %cst_43 : f32 to vector<48x32xf32>
    %85 = arith.addf %84, %83 : vector<48x32xf32>
    %86 = arith.mulf %47, %85 : vector<48x32xf32>
    %c0_44 = arith.constant 0 : index
    %c0_45 = arith.constant 0 : index
    %c0_46 = arith.constant 0 : index
    %87 = vector.load %arg9[%c0_44, %c0_45, %c0_46] : memref<8x32x64xf32, #tpu.memory_space<vmem>>, vector<1x32x64xf32>
    %88 = vector.shape_cast %87 : vector<1x32x64xf32> to vector<32x64xf32>
    %cst_47 = arith.constant dense<0.000000e+00> : vector<48x64xf32>
    %89 = tpu.matmul %86, %88, %cst_47 {dimension_numbers = #tpu.dot_dimension_numbers<[1], [0], [0], [1], [0, 0, 1, 1], [], []>} : vector<48x32xf32>, vector<32x64xf32>, vector<48x64xf32> -> vector<48x64xf32>
    %90 = vector.broadcast %32 : vector<1x64xf32> to vector<48x64xf32>
    %91 = arith.addf %90, %89 : vector<48x64xf32>
    %c1 = arith.constant 1 : index
    %c0_48 = arith.constant 0 : index
    %c0_49 = arith.constant 0 : index
    %92 = vector.load %arg7[%c1, %c0_48, %c0_49] : memref<16x1x32xf32, #tpu.memory_space<vmem>>, vector<1x1x32xf32>
    %93 = vector.shape_cast %92 : vector<1x1x32xf32> to vector<1x32xf32>
    %94 = vector.broadcast %93 : vector<1x32xf32> to vector<48x32xf32>
    %95 = arith.mulf %11, %94 : vector<48x32xf32>
    %c5 = arith.constant 5 : index
    %c0_50 = arith.constant 0 : index
    %c0_51 = arith.constant 0 : index
    %96 = vector.load %arg7[%c5, %c0_50, %c0_51] : memref<16x1x32xf32, #tpu.memory_space<vmem>>, vector<1x1x32xf32>
    %97 = vector.shape_cast %96 : vector<1x1x32xf32> to vector<1x32xf32>
    %98 = vector.broadcast %97 : vector<1x32xf32> to vector<48x32xf32>
    %99 = arith.mulf %30, %98 : vector<48x32xf32>
    %100 = arith.addf %95, %99 : vector<48x32xf32>
    %c1_52 = arith.constant 1 : index
    %c0_53 = arith.constant 0 : index
    %c0_54 = arith.constant 0 : index
    %101 = vector.load %arg8[%c1_52, %c0_53, %c0_54] : memref<8x1x32xf32, #tpu.memory_space<vmem>>, vector<1x1x32xf32>
    %102 = vector.shape_cast %101 : vector<1x1x32xf32> to vector<1x32xf32>
    %103 = vector.broadcast %102 : vector<1x32xf32> to vector<48x32xf32>
    %104 = arith.addf %100, %103 : vector<48x32xf32>
    %cst_55 = arith.constant 5.000000e-01 : f32
    %105 = vector.broadcast %cst_55 : f32 to vector<48x32xf32>
    %106 = arith.mulf %105, %104 : vector<48x32xf32>
    %cst_56 = arith.constant 0.707106769 : f32
    %107 = vector.broadcast %cst_56 : f32 to vector<48x32xf32>
    %108 = arith.mulf %104, %107 : vector<48x32xf32>
    %cst_57 = arith.constant 0.000000e+00 : f32
    %109 = vector.broadcast %cst_57 : f32 to vector<48x32xf32>
    %110 = arith.cmpf oge, %108, %109 : vector<48x32xf32>
    %cst_58 = arith.constant 1.000000e+00 : f32
    %cst_59 = arith.constant -1.000000e+00 : f32
    %111 = vector.broadcast %cst_58 : f32 to vector<48x32xf32>
    %112 = vector.broadcast %cst_59 : f32 to vector<48x32xf32>
    %113 = arith.select %110, %111, %112 : vector<48x32xi1>, vector<48x32xf32>
    %114 = math.absf %108 : vector<48x32xf32>
    %cst_60 = arith.constant 0.327591091 : f32
    %115 = vector.broadcast %cst_60 : f32 to vector<48x32xf32>
    %116 = arith.mulf %115, %114 : vector<48x32xf32>
    %cst_61 = arith.constant 1.000000e+00 : f32
    %117 = vector.broadcast %cst_61 : f32 to vector<48x32xf32>
    %118 = arith.addf %117, %116 : vector<48x32xf32>
    %cst_62 = arith.constant 1.000000e+00 : f32
    %119 = vector.broadcast %cst_62 : f32 to vector<48x32xf32>
    %120 = arith.divf %119, %118 : vector<48x32xf32>
    %cst_63 = arith.constant 1.06140542 : f32
    %121 = vector.broadcast %cst_63 : f32 to vector<48x32xf32>
    %122 = arith.mulf %121, %120 : vector<48x32xf32>
    %cst_64 = arith.constant -1.45315206 : f32
    %123 = vector.broadcast %cst_64 : f32 to vector<48x32xf32>
    %124 = arith.addf %122, %123 : vector<48x32xf32>
    %125 = arith.mulf %124, %120 : vector<48x32xf32>
    %cst_65 = arith.constant 1.42141378 : f32
    %126 = vector.broadcast %cst_65 : f32 to vector<48x32xf32>
    %127 = arith.addf %125, %126 : vector<48x32xf32>
    %128 = arith.mulf %127, %120 : vector<48x32xf32>
    %cst_66 = arith.constant -0.284496725 : f32
    %129 = vector.broadcast %cst_66 : f32 to vector<48x32xf32>
    %130 = arith.addf %128, %129 : vector<48x32xf32>
    %131 = arith.mulf %130, %120 : vector<48x32xf32>
    %cst_67 = arith.constant 0.254829586 : f32
    %132 = vector.broadcast %cst_67 : f32 to vector<48x32xf32>
    %133 = arith.addf %131, %132 : vector<48x32xf32>
    %134 = arith.mulf %133, %120 : vector<48x32xf32>
    %cst_68 = arith.constant 0.000000e+00 : f32
    %135 = vector.broadcast %cst_68 : f32 to vector<48x32xf32>
    %136 = arith.subf %135, %114 : vector<48x32xf32>
    %137 = arith.mulf %136, %114 : vector<48x32xf32>
    %138 = math.exp %137 : vector<48x32xf32>
    %139 = arith.mulf %134, %138 : vector<48x32xf32>
    %cst_69 = arith.constant 1.000000e+00 : f32
    %140 = vector.broadcast %cst_69 : f32 to vector<48x32xf32>
    %141 = arith.subf %140, %139 : vector<48x32xf32>
    %142 = arith.mulf %113, %141 : vector<48x32xf32>
    %cst_70 = arith.constant 1.000000e+00 : f32
    %143 = vector.broadcast %cst_70 : f32 to vector<48x32xf32>
    %144 = arith.addf %143, %142 : vector<48x32xf32>
    %145 = arith.mulf %106, %144 : vector<48x32xf32>
    %c1_71 = arith.constant 1 : index
    %c0_72 = arith.constant 0 : index
    %c0_73 = arith.constant 0 : index
    %146 = vector.load %arg9[%c1_71, %c0_72, %c0_73] : memref<8x32x64xf32, #tpu.memory_space<vmem>>, vector<1x32x64xf32>
    %147 = vector.shape_cast %146 : vector<1x32x64xf32> to vector<32x64xf32>
    %cst_74 = arith.constant dense<0.000000e+00> : vector<48x64xf32>
    %148 = tpu.matmul %145, %147, %cst_74 {dimension_numbers = #tpu.dot_dimension_numbers<[1], [0], [0], [1], [0, 0, 1, 1], [], []>} : vector<48x32xf32>, vector<32x64xf32>, vector<48x64xf32> -> vector<48x64xf32>
    %149 = arith.addf %91, %148 : vector<48x64xf32>
    %c2 = arith.constant 2 : index
    %c0_75 = arith.constant 0 : index
    %c0_76 = arith.constant 0 : index
    %150 = vector.load %arg7[%c2, %c0_75, %c0_76] : memref<16x1x32xf32, #tpu.memory_space<vmem>>, vector<1x1x32xf32>
    %151 = vector.shape_cast %150 : vector<1x1x32xf32> to vector<1x32xf32>
    %152 = vector.broadcast %151 : vector<1x32xf32> to vector<48x32xf32>
    %153 = arith.mulf %11, %152 : vector<48x32xf32>
    %c6 = arith.constant 6 : index
    %c0_77 = arith.constant 0 : index
    %c0_78 = arith.constant 0 : index
    %154 = vector.load %arg7[%c6, %c0_77, %c0_78] : memref<16x1x32xf32, #tpu.memory_space<vmem>>, vector<1x1x32xf32>
    %155 = vector.shape_cast %154 : vector<1x1x32xf32> to vector<1x32xf32>
    %156 = vector.broadcast %155 : vector<1x32xf32> to vector<48x32xf32>
    %157 = arith.mulf %30, %156 : vector<48x32xf32>
    %158 = arith.addf %153, %157 : vector<48x32xf32>
    %c2_79 = arith.constant 2 : index
    %c0_80 = arith.constant 0 : index
    %c0_81 = arith.constant 0 : index
    %159 = vector.load %arg8[%c2_79, %c0_80, %c0_81] : memref<8x1x32xf32, #tpu.memory_space<vmem>>, vector<1x1x32xf32>
    %160 = vector.shape_cast %159 : vector<1x1x32xf32> to vector<1x32xf32>
    %161 = vector.broadcast %160 : vector<1x32xf32> to vector<48x32xf32>
    %162 = arith.addf %158, %161 : vector<48x32xf32>
    %cst_82 = arith.constant 5.000000e-01 : f32
    %163 = vector.broadcast %cst_82 : f32 to vector<48x32xf32>
    %164 = arith.mulf %163, %162 : vector<48x32xf32>
    %cst_83 = arith.constant 0.707106769 : f32
    %165 = vector.broadcast %cst_83 : f32 to vector<48x32xf32>
    %166 = arith.mulf %162, %165 : vector<48x32xf32>
    %cst_84 = arith.constant 0.000000e+00 : f32
    %167 = vector.broadcast %cst_84 : f32 to vector<48x32xf32>
    %168 = arith.cmpf oge, %166, %167 : vector<48x32xf32>
    %cst_85 = arith.constant 1.000000e+00 : f32
    %cst_86 = arith.constant -1.000000e+00 : f32
    %169 = vector.broadcast %cst_85 : f32 to vector<48x32xf32>
    %170 = vector.broadcast %cst_86 : f32 to vector<48x32xf32>
    %171 = arith.select %168, %169, %170 : vector<48x32xi1>, vector<48x32xf32>
    %172 = math.absf %166 : vector<48x32xf32>
    %cst_87 = arith.constant 0.327591091 : f32
    %173 = vector.broadcast %cst_87 : f32 to vector<48x32xf32>
    %174 = arith.mulf %173, %172 : vector<48x32xf32>
    %cst_88 = arith.constant 1.000000e+00 : f32
    %175 = vector.broadcast %cst_88 : f32 to vector<48x32xf32>
    %176 = arith.addf %175, %174 : vector<48x32xf32>
    %cst_89 = arith.constant 1.000000e+00 : f32
    %177 = vector.broadcast %cst_89 : f32 to vector<48x32xf32>
    %178 = arith.divf %177, %176 : vector<48x32xf32>
    %cst_90 = arith.constant 1.06140542 : f32
    %179 = vector.broadcast %cst_90 : f32 to vector<48x32xf32>
    %180 = arith.mulf %179, %178 : vector<48x32xf32>
    %cst_91 = arith.constant -1.45315206 : f32
    %181 = vector.broadcast %cst_91 : f32 to vector<48x32xf32>
    %182 = arith.addf %180, %181 : vector<48x32xf32>
    %183 = arith.mulf %182, %178 : vector<48x32xf32>
    %cst_92 = arith.constant 1.42141378 : f32
    %184 = vector.broadcast %cst_92 : f32 to vector<48x32xf32>
    %185 = arith.addf %183, %184 : vector<48x32xf32>
    %186 = arith.mulf %185, %178 : vector<48x32xf32>
    %cst_93 = arith.constant -0.284496725 : f32
    %187 = vector.broadcast %cst_93 : f32 to vector<48x32xf32>
    %188 = arith.addf %186, %187 : vector<48x32xf32>
    %189 = arith.mulf %188, %178 : vector<48x32xf32>
    %cst_94 = arith.constant 0.254829586 : f32
    %190 = vector.broadcast %cst_94 : f32 to vector<48x32xf32>
    %191 = arith.addf %189, %190 : vector<48x32xf32>
    %192 = arith.mulf %191, %178 : vector<48x32xf32>
    %cst_95 = arith.constant 0.000000e+00 : f32
    %193 = vector.broadcast %cst_95 : f32 to vector<48x32xf32>
    %194 = arith.subf %193, %172 : vector<48x32xf32>
    %195 = arith.mulf %194, %172 : vector<48x32xf32>
    %196 = math.exp %195 : vector<48x32xf32>
    %197 = arith.mulf %192, %196 : vector<48x32xf32>
    %cst_96 = arith.constant 1.000000e+00 : f32
    %198 = vector.broadcast %cst_96 : f32 to vector<48x32xf32>
    %199 = arith.subf %198, %197 : vector<48x32xf32>
    %200 = arith.mulf %171, %199 : vector<48x32xf32>
    %cst_97 = arith.constant 1.000000e+00 : f32
    %201 = vector.broadcast %cst_97 : f32 to vector<48x32xf32>
    %202 = arith.addf %201, %200 : vector<48x32xf32>
    %203 = arith.mulf %164, %202 : vector<48x32xf32>
    %c2_98 = arith.constant 2 : index
    %c0_99 = arith.constant 0 : index
    %c0_100 = arith.constant 0 : index
    %204 = vector.load %arg9[%c2_98, %c0_99, %c0_100] : memref<8x32x64xf32, #tpu.memory_space<vmem>>, vector<1x32x64xf32>
    %205 = vector.shape_cast %204 : vector<1x32x64xf32> to vector<32x64xf32>
    %cst_101 = arith.constant dense<0.000000e+00> : vector<48x64xf32>
    %206 = tpu.matmul %203, %205, %cst_101 {dimension_numbers = #tpu.dot_dimension_numbers<[1], [0], [0], [1], [0, 0, 1, 1], [], []>} : vector<48x32xf32>, vector<32x64xf32>, vector<48x64xf32> -> vector<48x64xf32>
    %207 = arith.addf %149, %206 : vector<48x64xf32>
    %c3 = arith.constant 3 : index
    %c0_102 = arith.constant 0 : index
    %c0_103 = arith.constant 0 : index
    %208 = vector.load %arg7[%c3, %c0_102, %c0_103] : memref<16x1x32xf32, #tpu.memory_space<vmem>>, vector<1x1x32xf32>
    %209 = vector.shape_cast %208 : vector<1x1x32xf32> to vector<1x32xf32>
    %210 = vector.broadcast %209 : vector<1x32xf32> to vector<48x32xf32>
    %211 = arith.mulf %11, %210 : vector<48x32xf32>
    %c7 = arith.constant 7 : index
    %c0_104 = arith.constant 0 : index
    %c0_105 = arith.constant 0 : index
    %212 = vector.load %arg7[%c7, %c0_104, %c0_105] : memref<16x1x32xf32, #tpu.memory_space<vmem>>, vector<1x1x32xf32>
    %213 = vector.shape_cast %212 : vector<1x1x32xf32> to vector<1x32xf32>
    %214 = vector.broadcast %213 : vector<1x32xf32> to vector<48x32xf32>
    %215 = arith.mulf %30, %214 : vector<48x32xf32>
    %216 = arith.addf %211, %215 : vector<48x32xf32>
    %c3_106 = arith.constant 3 : index
    %c0_107 = arith.constant 0 : index
    %c0_108 = arith.constant 0 : index
    %217 = vector.load %arg8[%c3_106, %c0_107, %c0_108] : memref<8x1x32xf32, #tpu.memory_space<vmem>>, vector<1x1x32xf32>
    %218 = vector.shape_cast %217 : vector<1x1x32xf32> to vector<1x32xf32>
    %219 = vector.broadcast %218 : vector<1x32xf32> to vector<48x32xf32>
    %220 = arith.addf %216, %219 : vector<48x32xf32>
    %cst_109 = arith.constant 5.000000e-01 : f32
    %221 = vector.broadcast %cst_109 : f32 to vector<48x32xf32>
    %222 = arith.mulf %221, %220 : vector<48x32xf32>
    %cst_110 = arith.constant 0.707106769 : f32
    %223 = vector.broadcast %cst_110 : f32 to vector<48x32xf32>
    %224 = arith.mulf %220, %223 : vector<48x32xf32>
    %cst_111 = arith.constant 0.000000e+00 : f32
    %225 = vector.broadcast %cst_111 : f32 to vector<48x32xf32>
    %226 = arith.cmpf oge, %224, %225 : vector<48x32xf32>
    %cst_112 = arith.constant 1.000000e+00 : f32
    %cst_113 = arith.constant -1.000000e+00 : f32
    %227 = vector.broadcast %cst_112 : f32 to vector<48x32xf32>
    %228 = vector.broadcast %cst_113 : f32 to vector<48x32xf32>
    %229 = arith.select %226, %227, %228 : vector<48x32xi1>, vector<48x32xf32>
    %230 = math.absf %224 : vector<48x32xf32>
    %cst_114 = arith.constant 0.327591091 : f32
    %231 = vector.broadcast %cst_114 : f32 to vector<48x32xf32>
    %232 = arith.mulf %231, %230 : vector<48x32xf32>
    %cst_115 = arith.constant 1.000000e+00 : f32
    %233 = vector.broadcast %cst_115 : f32 to vector<48x32xf32>
    %234 = arith.addf %233, %232 : vector<48x32xf32>
    %cst_116 = arith.constant 1.000000e+00 : f32
    %235 = vector.broadcast %cst_116 : f32 to vector<48x32xf32>
    %236 = arith.divf %235, %234 : vector<48x32xf32>
    %cst_117 = arith.constant 1.06140542 : f32
    %237 = vector.broadcast %cst_117 : f32 to vector<48x32xf32>
    %238 = arith.mulf %237, %236 : vector<48x32xf32>
    %cst_118 = arith.constant -1.45315206 : f32
    %239 = vector.broadcast %cst_118 : f32 to vector<48x32xf32>
    %240 = arith.addf %238, %239 : vector<48x32xf32>
    %241 = arith.mulf %240, %236 : vector<48x32xf32>
    %cst_119 = arith.constant 1.42141378 : f32
    %242 = vector.broadcast %cst_119 : f32 to vector<48x32xf32>
    %243 = arith.addf %241, %242 : vector<48x32xf32>
    %244 = arith.mulf %243, %236 : vector<48x32xf32>
    %cst_120 = arith.constant -0.284496725 : f32
    %245 = vector.broadcast %cst_120 : f32 to vector<48x32xf32>
    %246 = arith.addf %244, %245 : vector<48x32xf32>
    %247 = arith.mulf %246, %236 : vector<48x32xf32>
    %cst_121 = arith.constant 0.254829586 : f32
    %248 = vector.broadcast %cst_121 : f32 to vector<48x32xf32>
    %249 = arith.addf %247, %248 : vector<48x32xf32>
    %250 = arith.mulf %249, %236 : vector<48x32xf32>
    %cst_122 = arith.constant 0.000000e+00 : f32
    %251 = vector.broadcast %cst_122 : f32 to vector<48x32xf32>
    %252 = arith.subf %251, %230 : vector<48x32xf32>
    %253 = arith.mulf %252, %230 : vector<48x32xf32>
    %254 = math.exp %253 : vector<48x32xf32>
    %255 = arith.mulf %250, %254 : vector<48x32xf32>
    %cst_123 = arith.constant 1.000000e+00 : f32
    %256 = vector.broadcast %cst_123 : f32 to vector<48x32xf32>
    %257 = arith.subf %256, %255 : vector<48x32xf32>
    %258 = arith.mulf %229, %257 : vector<48x32xf32>
    %cst_124 = arith.constant 1.000000e+00 : f32
    %259 = vector.broadcast %cst_124 : f32 to vector<48x32xf32>
    %260 = arith.addf %259, %258 : vector<48x32xf32>
    %261 = arith.mulf %222, %260 : vector<48x32xf32>
    %c3_125 = arith.constant 3 : index
    %c0_126 = arith.constant 0 : index
    %c0_127 = arith.constant 0 : index
    %262 = vector.load %arg9[%c3_125, %c0_126, %c0_127] : memref<8x32x64xf32, #tpu.memory_space<vmem>>, vector<1x32x64xf32>
    %263 = vector.shape_cast %262 : vector<1x32x64xf32> to vector<32x64xf32>
    %cst_128 = arith.constant dense<0.000000e+00> : vector<48x64xf32>
    %264 = tpu.matmul %261, %263, %cst_128 {dimension_numbers = #tpu.dot_dimension_numbers<[1], [0], [0], [1], [0, 0, 1, 1], [], []>} : vector<48x32xf32>, vector<32x64xf32>, vector<48x64xf32> -> vector<48x64xf32>
    %265 = arith.addf %207, %264 : vector<48x64xf32>
    %266 = vector.extract_strided_slice %265 {offsets = [0, 0], sizes = [48, 32], strides = [1, 1]} : vector<48x64xf32> to vector<48x32xf32>
    %267 = arith.addf %11, %266 : vector<48x32xf32>
    %268 = vector.extract_strided_slice %265 {offsets = [0, 32], sizes = [48, 32], strides = [1, 1]} : vector<48x64xf32> to vector<48x32xf32>
    %269 = arith.addf %13, %268 : vector<48x32xf32>
    %c46_i32 = arith.constant 46 : i32
    %270 = tpu.dynamic_rotate %267 by %c46_i32 dim 0 : vector<48x32xf32>, i32 -> vector<48x32xf32>
    %c22_i32 = arith.constant 22 : i32
    %271 = vector.broadcast %c22_i32 : i32 to vector<48x32xi32>
    %272 = arith.cmpi slt, %25, %271 : vector<48x32xi32>
    %cst_129 = arith.constant 0.000000e+00 : f32
    %273 = vector.broadcast %cst_129 : f32 to vector<48x32xf32>
    %274 = arith.select %272, %270, %273 : vector<48x32xi1>, vector<48x32xf32>
    %c1_130 = arith.constant 1 : index
    %c0_131 = arith.constant 0 : index
    %c0_132 = arith.constant 0 : index
    %275 = vector.load %arg10[%c1_130, %c0_131, %c0_132] : memref<2x1x64xf32, #tpu.memory_space<vmem>>, vector<1x1x64xf32>
    %276 = vector.shape_cast %275 : vector<1x1x64xf32> to vector<1x64xf32>
    %c8 = arith.constant 8 : index
    %c0_133 = arith.constant 0 : index
    %c0_134 = arith.constant 0 : index
    %277 = vector.load %arg7[%c8, %c0_133, %c0_134] : memref<16x1x32xf32, #tpu.memory_space<vmem>>, vector<1x1x32xf32>
    %278 = vector.shape_cast %277 : vector<1x1x32xf32> to vector<1x32xf32>
    %279 = vector.broadcast %278 : vector<1x32xf32> to vector<48x32xf32>
    %280 = arith.mulf %267, %279 : vector<48x32xf32>
    %c12 = arith.constant 12 : index
    %c0_135 = arith.constant 0 : index
    %c0_136 = arith.constant 0 : index
    %281 = vector.load %arg7[%c12, %c0_135, %c0_136] : memref<16x1x32xf32, #tpu.memory_space<vmem>>, vector<1x1x32xf32>
    %282 = vector.shape_cast %281 : vector<1x1x32xf32> to vector<1x32xf32>
    %283 = vector.broadcast %282 : vector<1x32xf32> to vector<48x32xf32>
    %284 = arith.mulf %274, %283 : vector<48x32xf32>
    %285 = arith.addf %280, %284 : vector<48x32xf32>
    %c4_137 = arith.constant 4 : index
    %c0_138 = arith.constant 0 : index
    %c0_139 = arith.constant 0 : index
    %286 = vector.load %arg8[%c4_137, %c0_138, %c0_139] : memref<8x1x32xf32, #tpu.memory_space<vmem>>, vector<1x1x32xf32>
    %287 = vector.shape_cast %286 : vector<1x1x32xf32> to vector<1x32xf32>
    %288 = vector.broadcast %287 : vector<1x32xf32> to vector<48x32xf32>
    %289 = arith.addf %285, %288 : vector<48x32xf32>
    %cst_140 = arith.constant 5.000000e-01 : f32
    %290 = vector.broadcast %cst_140 : f32 to vector<48x32xf32>
    %291 = arith.mulf %290, %289 : vector<48x32xf32>
    %cst_141 = arith.constant 0.707106769 : f32
    %292 = vector.broadcast %cst_141 : f32 to vector<48x32xf32>
    %293 = arith.mulf %289, %292 : vector<48x32xf32>
    %cst_142 = arith.constant 0.000000e+00 : f32
    %294 = vector.broadcast %cst_142 : f32 to vector<48x32xf32>
    %295 = arith.cmpf oge, %293, %294 : vector<48x32xf32>
    %cst_143 = arith.constant 1.000000e+00 : f32
    %cst_144 = arith.constant -1.000000e+00 : f32
    %296 = vector.broadcast %cst_143 : f32 to vector<48x32xf32>
    %297 = vector.broadcast %cst_144 : f32 to vector<48x32xf32>
    %298 = arith.select %295, %296, %297 : vector<48x32xi1>, vector<48x32xf32>
    %299 = math.absf %293 : vector<48x32xf32>
    %cst_145 = arith.constant 0.327591091 : f32
    %300 = vector.broadcast %cst_145 : f32 to vector<48x32xf32>
    %301 = arith.mulf %300, %299 : vector<48x32xf32>
    %cst_146 = arith.constant 1.000000e+00 : f32
    %302 = vector.broadcast %cst_146 : f32 to vector<48x32xf32>
    %303 = arith.addf %302, %301 : vector<48x32xf32>
    %cst_147 = arith.constant 1.000000e+00 : f32
    %304 = vector.broadcast %cst_147 : f32 to vector<48x32xf32>
    %305 = arith.divf %304, %303 : vector<48x32xf32>
    %cst_148 = arith.constant 1.06140542 : f32
    %306 = vector.broadcast %cst_148 : f32 to vector<48x32xf32>
    %307 = arith.mulf %306, %305 : vector<48x32xf32>
    %cst_149 = arith.constant -1.45315206 : f32
    %308 = vector.broadcast %cst_149 : f32 to vector<48x32xf32>
    %309 = arith.addf %307, %308 : vector<48x32xf32>
    %310 = arith.mulf %309, %305 : vector<48x32xf32>
    %cst_150 = arith.constant 1.42141378 : f32
    %311 = vector.broadcast %cst_150 : f32 to vector<48x32xf32>
    %312 = arith.addf %310, %311 : vector<48x32xf32>
    %313 = arith.mulf %312, %305 : vector<48x32xf32>
    %cst_151 = arith.constant -0.284496725 : f32
    %314 = vector.broadcast %cst_151 : f32 to vector<48x32xf32>
    %315 = arith.addf %313, %314 : vector<48x32xf32>
    %316 = arith.mulf %315, %305 : vector<48x32xf32>
    %cst_152 = arith.constant 0.254829586 : f32
    %317 = vector.broadcast %cst_152 : f32 to vector<48x32xf32>
    %318 = arith.addf %316, %317 : vector<48x32xf32>
    %319 = arith.mulf %318, %305 : vector<48x32xf32>
    %cst_153 = arith.constant 0.000000e+00 : f32
    %320 = vector.broadcast %cst_153 : f32 to vector<48x32xf32>
    %321 = arith.subf %320, %299 : vector<48x32xf32>
    %322 = arith.mulf %321, %299 : vector<48x32xf32>
    %323 = math.exp %322 : vector<48x32xf32>
    %324 = arith.mulf %319, %323 : vector<48x32xf32>
    %cst_154 = arith.constant 1.000000e+00 : f32
    %325 = vector.broadcast %cst_154 : f32 to vector<48x32xf32>
    %326 = arith.subf %325, %324 : vector<48x32xf32>
    %327 = arith.mulf %298, %326 : vector<48x32xf32>
    %cst_155 = arith.constant 1.000000e+00 : f32
    %328 = vector.broadcast %cst_155 : f32 to vector<48x32xf32>
    %329 = arith.addf %328, %327 : vector<48x32xf32>
    %330 = arith.mulf %291, %329 : vector<48x32xf32>
    %c4_156 = arith.constant 4 : index
    %c0_157 = arith.constant 0 : index
    %c0_158 = arith.constant 0 : index
    %331 = vector.load %arg9[%c4_156, %c0_157, %c0_158] : memref<8x32x64xf32, #tpu.memory_space<vmem>>, vector<1x32x64xf32>
    %332 = vector.shape_cast %331 : vector<1x32x64xf32> to vector<32x64xf32>
    %cst_159 = arith.constant dense<0.000000e+00> : vector<48x64xf32>
    %333 = tpu.matmul %330, %332, %cst_159 {dimension_numbers = #tpu.dot_dimension_numbers<[1], [0], [0], [1], [0, 0, 1, 1], [], []>} : vector<48x32xf32>, vector<32x64xf32>, vector<48x64xf32> -> vector<48x64xf32>
    %334 = vector.broadcast %276 : vector<1x64xf32> to vector<48x64xf32>
    %335 = arith.addf %334, %333 : vector<48x64xf32>
    %c9 = arith.constant 9 : index
    %c0_160 = arith.constant 0 : index
    %c0_161 = arith.constant 0 : index
    %336 = vector.load %arg7[%c9, %c0_160, %c0_161] : memref<16x1x32xf32, #tpu.memory_space<vmem>>, vector<1x1x32xf32>
    %337 = vector.shape_cast %336 : vector<1x1x32xf32> to vector<1x32xf32>
    %338 = vector.broadcast %337 : vector<1x32xf32> to vector<48x32xf32>
    %339 = arith.mulf %267, %338 : vector<48x32xf32>
    %c13 = arith.constant 13 : index
    %c0_162 = arith.constant 0 : index
    %c0_163 = arith.constant 0 : index
    %340 = vector.load %arg7[%c13, %c0_162, %c0_163] : memref<16x1x32xf32, #tpu.memory_space<vmem>>, vector<1x1x32xf32>
    %341 = vector.shape_cast %340 : vector<1x1x32xf32> to vector<1x32xf32>
    %342 = vector.broadcast %341 : vector<1x32xf32> to vector<48x32xf32>
    %343 = arith.mulf %274, %342 : vector<48x32xf32>
    %344 = arith.addf %339, %343 : vector<48x32xf32>
    %c5_164 = arith.constant 5 : index
    %c0_165 = arith.constant 0 : index
    %c0_166 = arith.constant 0 : index
    %345 = vector.load %arg8[%c5_164, %c0_165, %c0_166] : memref<8x1x32xf32, #tpu.memory_space<vmem>>, vector<1x1x32xf32>
    %346 = vector.shape_cast %345 : vector<1x1x32xf32> to vector<1x32xf32>
    %347 = vector.broadcast %346 : vector<1x32xf32> to vector<48x32xf32>
    %348 = arith.addf %344, %347 : vector<48x32xf32>
    %cst_167 = arith.constant 5.000000e-01 : f32
    %349 = vector.broadcast %cst_167 : f32 to vector<48x32xf32>
    %350 = arith.mulf %349, %348 : vector<48x32xf32>
    %cst_168 = arith.constant 0.707106769 : f32
    %351 = vector.broadcast %cst_168 : f32 to vector<48x32xf32>
    %352 = arith.mulf %348, %351 : vector<48x32xf32>
    %cst_169 = arith.constant 0.000000e+00 : f32
    %353 = vector.broadcast %cst_169 : f32 to vector<48x32xf32>
    %354 = arith.cmpf oge, %352, %353 : vector<48x32xf32>
    %cst_170 = arith.constant 1.000000e+00 : f32
    %cst_171 = arith.constant -1.000000e+00 : f32
    %355 = vector.broadcast %cst_170 : f32 to vector<48x32xf32>
    %356 = vector.broadcast %cst_171 : f32 to vector<48x32xf32>
    %357 = arith.select %354, %355, %356 : vector<48x32xi1>, vector<48x32xf32>
    %358 = math.absf %352 : vector<48x32xf32>
    %cst_172 = arith.constant 0.327591091 : f32
    %359 = vector.broadcast %cst_172 : f32 to vector<48x32xf32>
    %360 = arith.mulf %359, %358 : vector<48x32xf32>
    %cst_173 = arith.constant 1.000000e+00 : f32
    %361 = vector.broadcast %cst_173 : f32 to vector<48x32xf32>
    %362 = arith.addf %361, %360 : vector<48x32xf32>
    %cst_174 = arith.constant 1.000000e+00 : f32
    %363 = vector.broadcast %cst_174 : f32 to vector<48x32xf32>
    %364 = arith.divf %363, %362 : vector<48x32xf32>
    %cst_175 = arith.constant 1.06140542 : f32
    %365 = vector.broadcast %cst_175 : f32 to vector<48x32xf32>
    %366 = arith.mulf %365, %364 : vector<48x32xf32>
    %cst_176 = arith.constant -1.45315206 : f32
    %367 = vector.broadcast %cst_176 : f32 to vector<48x32xf32>
    %368 = arith.addf %366, %367 : vector<48x32xf32>
    %369 = arith.mulf %368, %364 : vector<48x32xf32>
    %cst_177 = arith.constant 1.42141378 : f32
    %370 = vector.broadcast %cst_177 : f32 to vector<48x32xf32>
    %371 = arith.addf %369, %370 : vector<48x32xf32>
    %372 = arith.mulf %371, %364 : vector<48x32xf32>
    %cst_178 = arith.constant -0.284496725 : f32
    %373 = vector.broadcast %cst_178 : f32 to vector<48x32xf32>
    %374 = arith.addf %372, %373 : vector<48x32xf32>
    %375 = arith.mulf %374, %364 : vector<48x32xf32>
    %cst_179 = arith.constant 0.254829586 : f32
    %376 = vector.broadcast %cst_179 : f32 to vector<48x32xf32>
    %377 = arith.addf %375, %376 : vector<48x32xf32>
    %378 = arith.mulf %377, %364 : vector<48x32xf32>
    %cst_180 = arith.constant 0.000000e+00 : f32
    %379 = vector.broadcast %cst_180 : f32 to vector<48x32xf32>
    %380 = arith.subf %379, %358 : vector<48x32xf32>
    %381 = arith.mulf %380, %358 : vector<48x32xf32>
    %382 = math.exp %381 : vector<48x32xf32>
    %383 = arith.mulf %378, %382 : vector<48x32xf32>
    %cst_181 = arith.constant 1.000000e+00 : f32
    %384 = vector.broadcast %cst_181 : f32 to vector<48x32xf32>
    %385 = arith.subf %384, %383 : vector<48x32xf32>
    %386 = arith.mulf %357, %385 : vector<48x32xf32>
    %cst_182 = arith.constant 1.000000e+00 : f32
    %387 = vector.broadcast %cst_182 : f32 to vector<48x32xf32>
    %388 = arith.addf %387, %386 : vector<48x32xf32>
    %389 = arith.mulf %350, %388 : vector<48x32xf32>
    %c5_183 = arith.constant 5 : index
    %c0_184 = arith.constant 0 : index
    %c0_185 = arith.constant 0 : index
    %390 = vector.load %arg9[%c5_183, %c0_184, %c0_185] : memref<8x32x64xf32, #tpu.memory_space<vmem>>, vector<1x32x64xf32>
    %391 = vector.shape_cast %390 : vector<1x32x64xf32> to vector<32x64xf32>
    %cst_186 = arith.constant dense<0.000000e+00> : vector<48x64xf32>
    %392 = tpu.matmul %389, %391, %cst_186 {dimension_numbers = #tpu.dot_dimension_numbers<[1], [0], [0], [1], [0, 0, 1, 1], [], []>} : vector<48x32xf32>, vector<32x64xf32>, vector<48x64xf32> -> vector<48x64xf32>
    %393 = arith.addf %335, %392 : vector<48x64xf32>
    %c10 = arith.constant 10 : index
    %c0_187 = arith.constant 0 : index
    %c0_188 = arith.constant 0 : index
    %394 = vector.load %arg7[%c10, %c0_187, %c0_188] : memref<16x1x32xf32, #tpu.memory_space<vmem>>, vector<1x1x32xf32>
    %395 = vector.shape_cast %394 : vector<1x1x32xf32> to vector<1x32xf32>
    %396 = vector.broadcast %395 : vector<1x32xf32> to vector<48x32xf32>
    %397 = arith.mulf %267, %396 : vector<48x32xf32>
    %c14 = arith.constant 14 : index
    %c0_189 = arith.constant 0 : index
    %c0_190 = arith.constant 0 : index
    %398 = vector.load %arg7[%c14, %c0_189, %c0_190] : memref<16x1x32xf32, #tpu.memory_space<vmem>>, vector<1x1x32xf32>
    %399 = vector.shape_cast %398 : vector<1x1x32xf32> to vector<1x32xf32>
    %400 = vector.broadcast %399 : vector<1x32xf32> to vector<48x32xf32>
    %401 = arith.mulf %274, %400 : vector<48x32xf32>
    %402 = arith.addf %397, %401 : vector<48x32xf32>
    %c6_191 = arith.constant 6 : index
    %c0_192 = arith.constant 0 : index
    %c0_193 = arith.constant 0 : index
    %403 = vector.load %arg8[%c6_191, %c0_192, %c0_193] : memref<8x1x32xf32, #tpu.memory_space<vmem>>, vector<1x1x32xf32>
    %404 = vector.shape_cast %403 : vector<1x1x32xf32> to vector<1x32xf32>
    %405 = vector.broadcast %404 : vector<1x32xf32> to vector<48x32xf32>
    %406 = arith.addf %402, %405 : vector<48x32xf32>
    %cst_194 = arith.constant 5.000000e-01 : f32
    %407 = vector.broadcast %cst_194 : f32 to vector<48x32xf32>
    %408 = arith.mulf %407, %406 : vector<48x32xf32>
    %cst_195 = arith.constant 0.707106769 : f32
    %409 = vector.broadcast %cst_195 : f32 to vector<48x32xf32>
    %410 = arith.mulf %406, %409 : vector<48x32xf32>
    %cst_196 = arith.constant 0.000000e+00 : f32
    %411 = vector.broadcast %cst_196 : f32 to vector<48x32xf32>
    %412 = arith.cmpf oge, %410, %411 : vector<48x32xf32>
    %cst_197 = arith.constant 1.000000e+00 : f32
    %cst_198 = arith.constant -1.000000e+00 : f32
    %413 = vector.broadcast %cst_197 : f32 to vector<48x32xf32>
    %414 = vector.broadcast %cst_198 : f32 to vector<48x32xf32>
    %415 = arith.select %412, %413, %414 : vector<48x32xi1>, vector<48x32xf32>
    %416 = math.absf %410 : vector<48x32xf32>
    %cst_199 = arith.constant 0.327591091 : f32
    %417 = vector.broadcast %cst_199 : f32 to vector<48x32xf32>
    %418 = arith.mulf %417, %416 : vector<48x32xf32>
    %cst_200 = arith.constant 1.000000e+00 : f32
    %419 = vector.broadcast %cst_200 : f32 to vector<48x32xf32>
    %420 = arith.addf %419, %418 : vector<48x32xf32>
    %cst_201 = arith.constant 1.000000e+00 : f32
    %421 = vector.broadcast %cst_201 : f32 to vector<48x32xf32>
    %422 = arith.divf %421, %420 : vector<48x32xf32>
    %cst_202 = arith.constant 1.06140542 : f32
    %423 = vector.broadcast %cst_202 : f32 to vector<48x32xf32>
    %424 = arith.mulf %423, %422 : vector<48x32xf32>
    %cst_203 = arith.constant -1.45315206 : f32
    %425 = vector.broadcast %cst_203 : f32 to vector<48x32xf32>
    %426 = arith.addf %424, %425 : vector<48x32xf32>
    %427 = arith.mulf %426, %422 : vector<48x32xf32>
    %cst_204 = arith.constant 1.42141378 : f32
    %428 = vector.broadcast %cst_204 : f32 to vector<48x32xf32>
    %429 = arith.addf %427, %428 : vector<48x32xf32>
    %430 = arith.mulf %429, %422 : vector<48x32xf32>
    %cst_205 = arith.constant -0.284496725 : f32
    %431 = vector.broadcast %cst_205 : f32 to vector<48x32xf32>
    %432 = arith.addf %430, %431 : vector<48x32xf32>
    %433 = arith.mulf %432, %422 : vector<48x32xf32>
    %cst_206 = arith.constant 0.254829586 : f32
    %434 = vector.broadcast %cst_206 : f32 to vector<48x32xf32>
    %435 = arith.addf %433, %434 : vector<48x32xf32>
    %436 = arith.mulf %435, %422 : vector<48x32xf32>
    %cst_207 = arith.constant 0.000000e+00 : f32
    %437 = vector.broadcast %cst_207 : f32 to vector<48x32xf32>
    %438 = arith.subf %437, %416 : vector<48x32xf32>
    %439 = arith.mulf %438, %416 : vector<48x32xf32>
    %440 = math.exp %439 : vector<48x32xf32>
    %441 = arith.mulf %436, %440 : vector<48x32xf32>
    %cst_208 = arith.constant 1.000000e+00 : f32
    %442 = vector.broadcast %cst_208 : f32 to vector<48x32xf32>
    %443 = arith.subf %442, %441 : vector<48x32xf32>
    %444 = arith.mulf %415, %443 : vector<48x32xf32>
    %cst_209 = arith.constant 1.000000e+00 : f32
    %445 = vector.broadcast %cst_209 : f32 to vector<48x32xf32>
    %446 = arith.addf %445, %444 : vector<48x32xf32>
    %447 = arith.mulf %408, %446 : vector<48x32xf32>
    %c6_210 = arith.constant 6 : index
    %c0_211 = arith.constant 0 : index
    %c0_212 = arith.constant 0 : index
    %448 = vector.load %arg9[%c6_210, %c0_211, %c0_212] : memref<8x32x64xf32, #tpu.memory_space<vmem>>, vector<1x32x64xf32>
    %449 = vector.shape_cast %448 : vector<1x32x64xf32> to vector<32x64xf32>
    %cst_213 = arith.constant dense<0.000000e+00> : vector<48x64xf32>
    %450 = tpu.matmul %447, %449, %cst_213 {dimension_numbers = #tpu.dot_dimension_numbers<[1], [0], [0], [1], [0, 0, 1, 1], [], []>} : vector<48x32xf32>, vector<32x64xf32>, vector<48x64xf32> -> vector<48x64xf32>
    %451 = arith.addf %393, %450 : vector<48x64xf32>
    %c11 = arith.constant 11 : index
    %c0_214 = arith.constant 0 : index
    %c0_215 = arith.constant 0 : index
    %452 = vector.load %arg7[%c11, %c0_214, %c0_215] : memref<16x1x32xf32, #tpu.memory_space<vmem>>, vector<1x1x32xf32>
    %453 = vector.shape_cast %452 : vector<1x1x32xf32> to vector<1x32xf32>
    %454 = vector.broadcast %453 : vector<1x32xf32> to vector<48x32xf32>
    %455 = arith.mulf %267, %454 : vector<48x32xf32>
    %c15 = arith.constant 15 : index
    %c0_216 = arith.constant 0 : index
    %c0_217 = arith.constant 0 : index
    %456 = vector.load %arg7[%c15, %c0_216, %c0_217] : memref<16x1x32xf32, #tpu.memory_space<vmem>>, vector<1x1x32xf32>
    %457 = vector.shape_cast %456 : vector<1x1x32xf32> to vector<1x32xf32>
    %458 = vector.broadcast %457 : vector<1x32xf32> to vector<48x32xf32>
    %459 = arith.mulf %274, %458 : vector<48x32xf32>
    %460 = arith.addf %455, %459 : vector<48x32xf32>
    %c7_218 = arith.constant 7 : index
    %c0_219 = arith.constant 0 : index
    %c0_220 = arith.constant 0 : index
    %461 = vector.load %arg8[%c7_218, %c0_219, %c0_220] : memref<8x1x32xf32, #tpu.memory_space<vmem>>, vector<1x1x32xf32>
    %462 = vector.shape_cast %461 : vector<1x1x32xf32> to vector<1x32xf32>
    %463 = vector.broadcast %462 : vector<1x32xf32> to vector<48x32xf32>
    %464 = arith.addf %460, %463 : vector<48x32xf32>
    %cst_221 = arith.constant 5.000000e-01 : f32
    %465 = vector.broadcast %cst_221 : f32 to vector<48x32xf32>
    %466 = arith.mulf %465, %464 : vector<48x32xf32>
    %cst_222 = arith.constant 0.707106769 : f32
    %467 = vector.broadcast %cst_222 : f32 to vector<48x32xf32>
    %468 = arith.mulf %464, %467 : vector<48x32xf32>
    %cst_223 = arith.constant 0.000000e+00 : f32
    %469 = vector.broadcast %cst_223 : f32 to vector<48x32xf32>
    %470 = arith.cmpf oge, %468, %469 : vector<48x32xf32>
    %cst_224 = arith.constant 1.000000e+00 : f32
    %cst_225 = arith.constant -1.000000e+00 : f32
    %471 = vector.broadcast %cst_224 : f32 to vector<48x32xf32>
    %472 = vector.broadcast %cst_225 : f32 to vector<48x32xf32>
    %473 = arith.select %470, %471, %472 : vector<48x32xi1>, vector<48x32xf32>
    %474 = math.absf %468 : vector<48x32xf32>
    %cst_226 = arith.constant 0.327591091 : f32
    %475 = vector.broadcast %cst_226 : f32 to vector<48x32xf32>
    %476 = arith.mulf %475, %474 : vector<48x32xf32>
    %cst_227 = arith.constant 1.000000e+00 : f32
    %477 = vector.broadcast %cst_227 : f32 to vector<48x32xf32>
    %478 = arith.addf %477, %476 : vector<48x32xf32>
    %cst_228 = arith.constant 1.000000e+00 : f32
    %479 = vector.broadcast %cst_228 : f32 to vector<48x32xf32>
    %480 = arith.divf %479, %478 : vector<48x32xf32>
    %cst_229 = arith.constant 1.06140542 : f32
    %481 = vector.broadcast %cst_229 : f32 to vector<48x32xf32>
    %482 = arith.mulf %481, %480 : vector<48x32xf32>
    %cst_230 = arith.constant -1.45315206 : f32
    %483 = vector.broadcast %cst_230 : f32 to vector<48x32xf32>
    %484 = arith.addf %482, %483 : vector<48x32xf32>
    %485 = arith.mulf %484, %480 : vector<48x32xf32>
    %cst_231 = arith.constant 1.42141378 : f32
    %486 = vector.broadcast %cst_231 : f32 to vector<48x32xf32>
    %487 = arith.addf %485, %486 : vector<48x32xf32>
    %488 = arith.mulf %487, %480 : vector<48x32xf32>
    %cst_232 = arith.constant -0.284496725 : f32
    %489 = vector.broadcast %cst_232 : f32 to vector<48x32xf32>
    %490 = arith.addf %488, %489 : vector<48x32xf32>
    %491 = arith.mulf %490, %480 : vector<48x32xf32>
    %cst_233 = arith.constant 0.254829586 : f32
    %492 = vector.broadcast %cst_233 : f32 to vector<48x32xf32>
    %493 = arith.addf %491, %492 : vector<48x32xf32>
    %494 = arith.mulf %493, %480 : vector<48x32xf32>
    %cst_234 = arith.constant 0.000000e+00 : f32
    %495 = vector.broadcast %cst_234 : f32 to vector<48x32xf32>
    %496 = arith.subf %495, %474 : vector<48x32xf32>
    %497 = arith.mulf %496, %474 : vector<48x32xf32>
    %498 = math.exp %497 : vector<48x32xf32>
    %499 = arith.mulf %494, %498 : vector<48x32xf32>
    %cst_235 = arith.constant 1.000000e+00 : f32
    %500 = vector.broadcast %cst_235 : f32 to vector<48x32xf32>
    %501 = arith.subf %500, %499 : vector<48x32xf32>
    %502 = arith.mulf %473, %501 : vector<48x32xf32>
    %cst_236 = arith.constant 1.000000e+00 : f32
    %503 = vector.broadcast %cst_236 : f32 to vector<48x32xf32>
    %504 = arith.addf %503, %502 : vector<48x32xf32>
    %505 = arith.mulf %466, %504 : vector<48x32xf32>
    %c7_237 = arith.constant 7 : index
    %c0_238 = arith.constant 0 : index
    %c0_239 = arith.constant 0 : index
    %506 = vector.load %arg9[%c7_237, %c0_238, %c0_239] : memref<8x32x64xf32, #tpu.memory_space<vmem>>, vector<1x32x64xf32>
    %507 = vector.shape_cast %506 : vector<1x32x64xf32> to vector<32x64xf32>
    %cst_240 = arith.constant dense<0.000000e+00> : vector<48x64xf32>
    %508 = tpu.matmul %505, %507, %cst_240 {dimension_numbers = #tpu.dot_dimension_numbers<[1], [0], [0], [1], [0, 0, 1, 1], [], []>} : vector<48x32xf32>, vector<32x64xf32>, vector<48x64xf32> -> vector<48x64xf32>
    %509 = arith.addf %451, %508 : vector<48x64xf32>
    %510 = vector.extract_strided_slice %509 {offsets = [0, 32], sizes = [48, 32], strides = [1, 1]} : vector<48x64xf32> to vector<48x32xf32>
    %511 = arith.addf %269, %510 : vector<48x32xf32>
    %c1_i32 = arith.constant 1 : i32
    %512 = tpu.dynamic_rotate %5 by %c1_i32 dim 0 : vector<32x32xf32>, i32 -> vector<32x32xf32>
    %c1_i32_241 = arith.constant 1 : i32
    %513 = vector.broadcast %c1_i32_241 : i32 to vector<32x32xi32>
    %514 = arith.cmpi sge, %19, %513 : vector<32x32xi32>
    %cst_242 = arith.constant 0.000000e+00 : f32
    %515 = vector.broadcast %cst_242 : f32 to vector<32x32xf32>
    %516 = arith.select %514, %512, %515 : vector<32x32xi1>, vector<32x32xf32>
    %517 = tpu.concatenate %516, %5 in 1 : vector<32x32xf32>, vector<32x32xf32> -> vector<32x64xf32>
    %c0_243 = arith.constant 0 : index
    %c0_244 = arith.constant 0 : index
    %c0_245 = arith.constant 0 : index
    %518 = vector.load %arg11[%c0_243, %c0_244, %c0_245] : memref<2x64x128xf32, #tpu.memory_space<vmem>>, vector<1x64x128xf32>
    %519 = vector.shape_cast %518 : vector<1x64x128xf32> to vector<64x128xf32>
    %cst_246 = arith.constant dense<0.000000e+00> : vector<32x128xf32>
    %520 = tpu.matmul %517, %519, %cst_246 {dimension_numbers = #tpu.dot_dimension_numbers<[1], [0], [0], [1], [0, 0, 1, 1], [], []>} : vector<32x64xf32>, vector<64x128xf32>, vector<32x128xf32> -> vector<32x128xf32>
    %c0_247 = arith.constant 0 : index
    %c0_248 = arith.constant 0 : index
    %c0_249 = arith.constant 0 : index
    %521 = vector.load %arg12[%c0_247, %c0_248, %c0_249] : memref<2x1x128xf32, #tpu.memory_space<vmem>>, vector<1x1x128xf32>
    %522 = vector.shape_cast %521 : vector<1x1x128xf32> to vector<1x128xf32>
    %523 = vector.broadcast %522 : vector<1x128xf32> to vector<32x128xf32>
    %524 = arith.addf %520, %523 : vector<32x128xf32>
    %cst_250 = arith.constant 5.000000e-01 : f32
    %525 = vector.broadcast %cst_250 : f32 to vector<32x128xf32>
    %526 = arith.mulf %525, %524 : vector<32x128xf32>
    %cst_251 = arith.constant 0.707106769 : f32
    %527 = vector.broadcast %cst_251 : f32 to vector<32x128xf32>
    %528 = arith.mulf %524, %527 : vector<32x128xf32>
    %cst_252 = arith.constant 0.000000e+00 : f32
    %529 = vector.broadcast %cst_252 : f32 to vector<32x128xf32>
    %530 = arith.cmpf oge, %528, %529 : vector<32x128xf32>
    %cst_253 = arith.constant 1.000000e+00 : f32
    %cst_254 = arith.constant -1.000000e+00 : f32
    %531 = vector.broadcast %cst_253 : f32 to vector<32x128xf32>
    %532 = vector.broadcast %cst_254 : f32 to vector<32x128xf32>
    %533 = arith.select %530, %531, %532 : vector<32x128xi1>, vector<32x128xf32>
    %534 = math.absf %528 : vector<32x128xf32>
    %cst_255 = arith.constant 0.327591091 : f32
    %535 = vector.broadcast %cst_255 : f32 to vector<32x128xf32>
    %536 = arith.mulf %535, %534 : vector<32x128xf32>
    %cst_256 = arith.constant 1.000000e+00 : f32
    %537 = vector.broadcast %cst_256 : f32 to vector<32x128xf32>
    %538 = arith.addf %537, %536 : vector<32x128xf32>
    %cst_257 = arith.constant 1.000000e+00 : f32
    %539 = vector.broadcast %cst_257 : f32 to vector<32x128xf32>
    %540 = arith.divf %539, %538 : vector<32x128xf32>
    %cst_258 = arith.constant 1.06140542 : f32
    %541 = vector.broadcast %cst_258 : f32 to vector<32x128xf32>
    %542 = arith.mulf %541, %540 : vector<32x128xf32>
    %cst_259 = arith.constant -1.45315206 : f32
    %543 = vector.broadcast %cst_259 : f32 to vector<32x128xf32>
    %544 = arith.addf %542, %543 : vector<32x128xf32>
    %545 = arith.mulf %544, %540 : vector<32x128xf32>
    %cst_260 = arith.constant 1.42141378 : f32
    %546 = vector.broadcast %cst_260 : f32 to vector<32x128xf32>
    %547 = arith.addf %545, %546 : vector<32x128xf32>
    %548 = arith.mulf %547, %540 : vector<32x128xf32>
    %cst_261 = arith.constant -0.284496725 : f32
    %549 = vector.broadcast %cst_261 : f32 to vector<32x128xf32>
    %550 = arith.addf %548, %549 : vector<32x128xf32>
    %551 = arith.mulf %550, %540 : vector<32x128xf32>
    %cst_262 = arith.constant 0.254829586 : f32
    %552 = vector.broadcast %cst_262 : f32 to vector<32x128xf32>
    %553 = arith.addf %551, %552 : vector<32x128xf32>
    %554 = arith.mulf %553, %540 : vector<32x128xf32>
    %cst_263 = arith.constant 0.000000e+00 : f32
    %555 = vector.broadcast %cst_263 : f32 to vector<32x128xf32>
    %556 = arith.subf %555, %534 : vector<32x128xf32>
    %557 = arith.mulf %556, %534 : vector<32x128xf32>
    %558 = math.exp %557 : vector<32x128xf32>
    %559 = arith.mulf %554, %558 : vector<32x128xf32>
    %cst_264 = arith.constant 1.000000e+00 : f32
    %560 = vector.broadcast %cst_264 : f32 to vector<32x128xf32>
    %561 = arith.subf %560, %559 : vector<32x128xf32>
    %562 = arith.mulf %533, %561 : vector<32x128xf32>
    %cst_265 = arith.constant 1.000000e+00 : f32
    %563 = vector.broadcast %cst_265 : f32 to vector<32x128xf32>
    %564 = arith.addf %563, %562 : vector<32x128xf32>
    %565 = arith.mulf %526, %564 : vector<32x128xf32>
    %c0_266 = arith.constant 0 : index
    %c0_267 = arith.constant 0 : index
    %c0_268 = arith.constant 0 : index
    %566 = vector.load %arg13[%c0_266, %c0_267, %c0_268] : memref<2x128x64xf32, #tpu.memory_space<vmem>>, vector<1x128x64xf32>
    %567 = vector.shape_cast %566 : vector<1x128x64xf32> to vector<128x64xf32>
    %cst_269 = arith.constant dense<0.000000e+00> : vector<32x64xf32>
    %568 = tpu.matmul %565, %567, %cst_269 {dimension_numbers = #tpu.dot_dimension_numbers<[1], [0], [0], [1], [0, 0, 1, 1], [], []>} : vector<32x128xf32>, vector<128x64xf32>, vector<32x64xf32> -> vector<32x64xf32>
    %c0_270 = arith.constant 0 : index
    %c0_271 = arith.constant 0 : index
    %c0_272 = arith.constant 0 : index
    %569 = vector.load %arg14[%c0_270, %c0_271, %c0_272] : memref<2x1x64xf32, #tpu.memory_space<vmem>>, vector<1x1x64xf32>
    %570 = vector.shape_cast %569 : vector<1x1x64xf32> to vector<1x64xf32>
    %571 = vector.broadcast %570 : vector<1x64xf32> to vector<32x64xf32>
    %572 = arith.addf %568, %571 : vector<32x64xf32>
    %573 = vector.extract_strided_slice %572 {offsets = [0, 0], sizes = [32, 32], strides = [1, 1]} : vector<32x64xf32> to vector<32x32xf32>
    %574 = arith.addf %5, %573 : vector<32x32xf32>
    %575 = vector.extract_strided_slice %572 {offsets = [0, 32], sizes = [32, 32], strides = [1, 1]} : vector<32x64xf32> to vector<32x32xf32>
    %576 = arith.addf %12, %575 : vector<32x32xf32>
    %c2_i32 = arith.constant 2 : i32
    %577 = tpu.dynamic_rotate %574 by %c2_i32 dim 0 : vector<32x32xf32>, i32 -> vector<32x32xf32>
    %c2_i32_273 = arith.constant 2 : i32
    %578 = vector.broadcast %c2_i32_273 : i32 to vector<32x32xi32>
    %579 = arith.cmpi sge, %19, %578 : vector<32x32xi32>
    %cst_274 = arith.constant 0.000000e+00 : f32
    %580 = vector.broadcast %cst_274 : f32 to vector<32x32xf32>
    %581 = arith.select %579, %577, %580 : vector<32x32xi1>, vector<32x32xf32>
    %582 = tpu.concatenate %581, %574 in 1 : vector<32x32xf32>, vector<32x32xf32> -> vector<32x64xf32>
    %c1_275 = arith.constant 1 : index
    %c0_276 = arith.constant 0 : index
    %c0_277 = arith.constant 0 : index
    %583 = vector.load %arg11[%c1_275, %c0_276, %c0_277] : memref<2x64x128xf32, #tpu.memory_space<vmem>>, vector<1x64x128xf32>
    %584 = vector.shape_cast %583 : vector<1x64x128xf32> to vector<64x128xf32>
    %cst_278 = arith.constant dense<0.000000e+00> : vector<32x128xf32>
    %585 = tpu.matmul %582, %584, %cst_278 {dimension_numbers = #tpu.dot_dimension_numbers<[1], [0], [0], [1], [0, 0, 1, 1], [], []>} : vector<32x64xf32>, vector<64x128xf32>, vector<32x128xf32> -> vector<32x128xf32>
    %c1_279 = arith.constant 1 : index
    %c0_280 = arith.constant 0 : index
    %c0_281 = arith.constant 0 : index
    %586 = vector.load %arg12[%c1_279, %c0_280, %c0_281] : memref<2x1x128xf32, #tpu.memory_space<vmem>>, vector<1x1x128xf32>
    %587 = vector.shape_cast %586 : vector<1x1x128xf32> to vector<1x128xf32>
    %588 = vector.broadcast %587 : vector<1x128xf32> to vector<32x128xf32>
    %589 = arith.addf %585, %588 : vector<32x128xf32>
    %cst_282 = arith.constant 5.000000e-01 : f32
    %590 = vector.broadcast %cst_282 : f32 to vector<32x128xf32>
    %591 = arith.mulf %590, %589 : vector<32x128xf32>
    %cst_283 = arith.constant 0.707106769 : f32
    %592 = vector.broadcast %cst_283 : f32 to vector<32x128xf32>
    %593 = arith.mulf %589, %592 : vector<32x128xf32>
    %cst_284 = arith.constant 0.000000e+00 : f32
    %594 = vector.broadcast %cst_284 : f32 to vector<32x128xf32>
    %595 = arith.cmpf oge, %593, %594 : vector<32x128xf32>
    %cst_285 = arith.constant 1.000000e+00 : f32
    %cst_286 = arith.constant -1.000000e+00 : f32
    %596 = vector.broadcast %cst_285 : f32 to vector<32x128xf32>
    %597 = vector.broadcast %cst_286 : f32 to vector<32x128xf32>
    %598 = arith.select %595, %596, %597 : vector<32x128xi1>, vector<32x128xf32>
    %599 = math.absf %593 : vector<32x128xf32>
    %cst_287 = arith.constant 0.327591091 : f32
    %600 = vector.broadcast %cst_287 : f32 to vector<32x128xf32>
    %601 = arith.mulf %600, %599 : vector<32x128xf32>
    %cst_288 = arith.constant 1.000000e+00 : f32
    %602 = vector.broadcast %cst_288 : f32 to vector<32x128xf32>
    %603 = arith.addf %602, %601 : vector<32x128xf32>
    %cst_289 = arith.constant 1.000000e+00 : f32
    %604 = vector.broadcast %cst_289 : f32 to vector<32x128xf32>
    %605 = arith.divf %604, %603 : vector<32x128xf32>
    %cst_290 = arith.constant 1.06140542 : f32
    %606 = vector.broadcast %cst_290 : f32 to vector<32x128xf32>
    %607 = arith.mulf %606, %605 : vector<32x128xf32>
    %cst_291 = arith.constant -1.45315206 : f32
    %608 = vector.broadcast %cst_291 : f32 to vector<32x128xf32>
    %609 = arith.addf %607, %608 : vector<32x128xf32>
    %610 = arith.mulf %609, %605 : vector<32x128xf32>
    %cst_292 = arith.constant 1.42141378 : f32
    %611 = vector.broadcast %cst_292 : f32 to vector<32x128xf32>
    %612 = arith.addf %610, %611 : vector<32x128xf32>
    %613 = arith.mulf %612, %605 : vector<32x128xf32>
    %cst_293 = arith.constant -0.284496725 : f32
    %614 = vector.broadcast %cst_293 : f32 to vector<32x128xf32>
    %615 = arith.addf %613, %614 : vector<32x128xf32>
    %616 = arith.mulf %615, %605 : vector<32x128xf32>
    %cst_294 = arith.constant 0.254829586 : f32
    %617 = vector.broadcast %cst_294 : f32 to vector<32x128xf32>
    %618 = arith.addf %616, %617 : vector<32x128xf32>
    %619 = arith.mulf %618, %605 : vector<32x128xf32>
    %cst_295 = arith.constant 0.000000e+00 : f32
    %620 = vector.broadcast %cst_295 : f32 to vector<32x128xf32>
    %621 = arith.subf %620, %599 : vector<32x128xf32>
    %622 = arith.mulf %621, %599 : vector<32x128xf32>
    %623 = math.exp %622 : vector<32x128xf32>
    %624 = arith.mulf %619, %623 : vector<32x128xf32>
    %cst_296 = arith.constant 1.000000e+00 : f32
    %625 = vector.broadcast %cst_296 : f32 to vector<32x128xf32>
    %626 = arith.subf %625, %624 : vector<32x128xf32>
    %627 = arith.mulf %598, %626 : vector<32x128xf32>
    %cst_297 = arith.constant 1.000000e+00 : f32
    %628 = vector.broadcast %cst_297 : f32 to vector<32x128xf32>
    %629 = arith.addf %628, %627 : vector<32x128xf32>
    %630 = arith.mulf %591, %629 : vector<32x128xf32>
    %c1_298 = arith.constant 1 : index
    %c0_299 = arith.constant 0 : index
    %c0_300 = arith.constant 0 : index
    %631 = vector.load %arg13[%c1_298, %c0_299, %c0_300] : memref<2x128x64xf32, #tpu.memory_space<vmem>>, vector<1x128x64xf32>
    %632 = vector.shape_cast %631 : vector<1x128x64xf32> to vector<128x64xf32>
    %cst_301 = arith.constant dense<0.000000e+00> : vector<32x64xf32>
    %633 = tpu.matmul %630, %632, %cst_301 {dimension_numbers = #tpu.dot_dimension_numbers<[1], [0], [0], [1], [0, 0, 1, 1], [], []>} : vector<32x128xf32>, vector<128x64xf32>, vector<32x64xf32> -> vector<32x64xf32>
    %c1_302 = arith.constant 1 : index
    %c0_303 = arith.constant 0 : index
    %c0_304 = arith.constant 0 : index
    %634 = vector.load %arg14[%c1_302, %c0_303, %c0_304] : memref<2x1x64xf32, #tpu.memory_space<vmem>>, vector<1x1x64xf32>
    %635 = vector.shape_cast %634 : vector<1x1x64xf32> to vector<1x64xf32>
    %636 = vector.broadcast %635 : vector<1x64xf32> to vector<32x64xf32>
    %637 = arith.addf %633, %636 : vector<32x64xf32>
    %638 = vector.extract_strided_slice %637 {offsets = [0, 32], sizes = [32, 32], strides = [1, 1]} : vector<32x64xf32> to vector<32x32xf32>
    %639 = arith.addf %576, %638 : vector<32x32xf32>
    %640 = vector.extract_strided_slice %511 {offsets = [12, 0], sizes = [4, 32], strides = [1, 1]} : vector<48x32xf32> to vector<4x32xf32>
    %641 = vector.extract_strided_slice %639 {offsets = [12, 0], sizes = [4, 32], strides = [1, 1]} : vector<32x32xf32> to vector<4x32xf32>
    %642 = tpu.concatenate %640, %641 in 1 : vector<4x32xf32>, vector<4x32xf32> -> vector<4x64xf32>
    %643 = vector.extract_strided_slice %511 {offsets = [36, 0], sizes = [4, 32], strides = [1, 1]} : vector<48x32xf32> to vector<4x32xf32>
    %644 = vector.extract_strided_slice %639 {offsets = [28, 0], sizes = [4, 32], strides = [1, 1]} : vector<32x32xf32> to vector<4x32xf32>
    %645 = tpu.concatenate %643, %644 in 1 : vector<4x32xf32>, vector<4x32xf32> -> vector<4x64xf32>
    %646 = tpu.concatenate %642, %645 in 0 : vector<4x64xf32>, vector<4x64xf32> -> vector<8x64xf32>
    %c0_305 = arith.constant 0 : index
    %c0_306 = arith.constant 0 : index
    %647 = vector.load %arg15[%c0_305, %c0_306] : memref<64x4xf32, #tpu.memory_space<vmem>>, vector<64x4xf32>
    %cst_307 = arith.constant dense<0.000000e+00> : vector<8x4xf32>
    %648 = tpu.matmul %646, %647, %cst_307 {dimension_numbers = #tpu.dot_dimension_numbers<[1], [0], [0], [1], [0, 0, 1, 1], [], []>} : vector<8x64xf32>, vector<64x4xf32>, vector<8x4xf32> -> vector<8x4xf32>
    %c0_308 = arith.constant 0 : index
    %c0_309 = arith.constant 0 : index
    %649 = vector.load %arg16[%c0_308, %c0_309] : memref<1x4xf32, #tpu.memory_space<vmem>>, vector<1x4xf32>
    %650 = vector.broadcast %649 : vector<1x4xf32> to vector<8x4xf32>
    %651 = arith.addf %648, %650 : vector<8x4xf32>
    %cst_310 = arith.constant 0.000000e+00 : f32
    %652 = vector.broadcast %cst_310 : f32 to vector<8x4xf32>
    %653 = arith.maximumf %651, %652 : vector<8x4xf32>
    %654 = math.absf %651 : vector<8x4xf32>
    %cst_311 = arith.constant 0.000000e+00 : f32
    %655 = vector.broadcast %cst_311 : f32 to vector<8x4xf32>
    %656 = arith.subf %655, %654 : vector<8x4xf32>
    %657 = math.exp %656 : vector<8x4xf32>
    %cst_312 = arith.constant 1.000000e+00 : f32
    %658 = vector.broadcast %cst_312 : f32 to vector<8x4xf32>
    %659 = arith.addf %658, %657 : vector<8x4xf32>
    %660 = math.log %659 : vector<8x4xf32>
    %661 = arith.addf %653, %660 : vector<8x4xf32>
    %c0_313 = arith.constant 0 : index
    %c0_314 = arith.constant 0 : index
    %662 = vector.load %arg17[%c0_313, %c0_314] : memref<8x4xf32, #tpu.memory_space<vmem>>, vector<8x4xf32>
    tpu.vector_store %arg17[%c0_313, %c0_314], %661 {strides = array<i32>} : memref<8x4xf32, #tpu.memory_space<vmem>>, vector<8x4xf32>,
    return
  }
  func.func @transform_0(%arg0: i32) -> (i32, i32) {
    %c0_i32 = arith.constant 0 : i32
    %c0_i32_0 = arith.constant 0 : i32
    %c0_i32_1 = arith.constant 0 : i32
    return %c0_i32, %c0_i32_0 : i32, i32
  }
  func.func @transform_1(%arg0: i32) -> (i32, i32) {
    %c0_i32 = arith.constant 0 : i32
    %c0_i32_0 = arith.constant 0 : i32
    %c0_i32_1 = arith.constant 0 : i32
    return %c0_i32, %c0_i32_0 : i32, i32
  }
  func.func @transform_2(%arg0: i32) -> (i32, i32) {
    %c0_i32 = arith.constant 0 : i32
    %c0_i32_0 = arith.constant 0 : i32
    %c0_i32_1 = arith.constant 0 : i32
    return %c0_i32, %c0_i32_0 : i32, i32
  }
  func.func @transform_3(%arg0: i32) -> (i32, i32) {
    %c0_i32 = arith.constant 0 : i32
    %c0_i32_0 = arith.constant 0 : i32
    %c0_i32_1 = arith.constant 0 : i32
    return %c0_i32, %c0_i32_0 : i32, i32
  }
  func.func @transform_4(%arg0: i32) -> (i32, i32) {
    %c0_i32 = arith.constant 0 : i32
    %c0_i32_0 = arith.constant 0 : i32
    %c0_i32_1 = arith.constant 0 : i32
    return %c0_i32, %c0_i32_0 : i32, i32
  }
  func.func @transform_5(%arg0: i32) -> (i32, i32) {
    %c0_i32 = arith.constant 0 : i32
    %c0_i32_0 = arith.constant 0 : i32
    %c0_i32_1 = arith.constant 0 : i32
    return %c0_i32, %c0_i32_0 : i32, i32
  }
  func.func @transform_6(%arg0: i32) -> (i32, i32, i32) {
    %c0_i32 = arith.constant 0 : i32
    %c0_i32_0 = arith.constant 0 : i32
    %c0_i32_1 = arith.constant 0 : i32
    %c0_i32_2 = arith.constant 0 : i32
    return %c0_i32, %c0_i32_0, %c0_i32_1 : i32, i32, i32
  }
  func.func @transform_7(%arg0: i32) -> (i32, i32, i32) {
    %c0_i32 = arith.constant 0 : i32
    %c0_i32_0 = arith.constant 0 : i32
    %c0_i32_1 = arith.constant 0 : i32
    %c0_i32_2 = arith.constant 0 : i32
    return %c0_i32, %c0_i32_0, %c0_i32_1 : i32, i32, i32
  }
  func.func @transform_8(%arg0: i32) -> (i32, i32, i32) {
    %c0_i32 = arith.constant 0 : i32
    %c0_i32_0 = arith.constant 0 : i32
    %c0_i32_1 = arith.constant 0 : i32
    %c0_i32_2 = arith.constant 0 : i32
    return %c0_i32, %c0_i32_0, %c0_i32_1 : i32, i32, i32
  }
  func.func @transform_9(%arg0: i32) -> (i32, i32, i32) {
    %c0_i32 = arith.constant 0 : i32
    %c0_i32_0 = arith.constant 0 : i32
    %c0_i32_1 = arith.constant 0 : i32
    %c0_i32_2 = arith.constant 0 : i32
    return %c0_i32, %c0_i32_0, %c0_i32_1 : i32, i32, i32
  }
  func.func @transform_10(%arg0: i32) -> (i32, i32, i32) {
    %c0_i32 = arith.constant 0 : i32
    %c0_i32_0 = arith.constant 0 : i32
    %c0_i32_1 = arith.constant 0 : i32
    %c0_i32_2 = arith.constant 0 : i32
    return %c0_i32, %c0_i32_0, %c0_i32_1 : i32, i32, i32
  }
  func.func @transform_11(%arg0: i32) -> (i32, i32, i32) {
    %c0_i32 = arith.constant 0 : i32
    %c0_i32_0 = arith.constant 0 : i32
    %c0_i32_1 = arith.constant 0 : i32
    %c0_i32_2 = arith.constant 0 : i32
    return %c0_i32, %c0_i32_0, %c0_i32_1 : i32, i32, i32
  }
  func.func @transform_12(%arg0: i32) -> (i32, i32, i32) {
    %c0_i32 = arith.constant 0 : i32
    %c0_i32_0 = arith.constant 0 : i32
    %c0_i32_1 = arith.constant 0 : i32
    %c0_i32_2 = arith.constant 0 : i32
    return %c0_i32, %c0_i32_0, %c0_i32_1 : i32, i32, i32
  }
  func.func @transform_13(%arg0: i32) -> (i32, i32, i32) {
    %c0_i32 = arith.constant 0 : i32
    %c0_i32_0 = arith.constant 0 : i32
    %c0_i32_1 = arith.constant 0 : i32
    %c0_i32_2 = arith.constant 0 : i32
    return %c0_i32, %c0_i32_0, %c0_i32_1 : i32, i32, i32
  }
  func.func @transform_14(%arg0: i32) -> (i32, i32) {
    %c0_i32 = arith.constant 0 : i32
    %c0_i32_0 = arith.constant 0 : i32
    %c0_i32_1 = arith.constant 0 : i32
    return %c0_i32, %c0_i32_0 : i32, i32
  }
  func.func @transform_15(%arg0: i32) -> (i32, i32) {
    %c0_i32 = arith.constant 0 : i32
    %c0_i32_0 = arith.constant 0 : i32
    %c0_i32_1 = arith.constant 0 : i32
    return %c0_i32, %c0_i32_0 : i32, i32
  }
  func.func @transform_16(%arg0: i32) -> (i32, i32) {
    %c0_i32 = arith.constant 0 : i32
    %c0_i32_0 = arith.constant 0 : i32
    %c0_i32_1 = arith.constant 0 : i32
    return %c0_i32, %c0_i32_0 : i32, i32
  }
}

</mosaic_0001>

<bundles_post_ra>
// kernel: tpu_custom_call.1
= control target key start
LH: loop header
LB: loop body
LE: loop exit
PB: predicated region body
PF: predicated region fallthrough
CT: control target
= control target key end

     0   :  { %s7075_s0 = inlined_call_operand.vmem [shape: f32[32,10], index: 0, kind: input, shape index: {}]   ;;  %s7076_s1 = inlined_call_operand.vmem [shape: f32[48,7], index: 1, kind: input, shape index: {}]   ;;  %s7077_s2 = inlined_call_operand.vmem [shape: f32[10,32], index: 2, kind: input, shape index: {}]   ;;  %s7078_s3 = inlined_call_operand.vmem [shape: f32[1,32], index: 3, kind: input, shape index: {}]   ;;  %s7079_s4 = inlined_call_operand.vmem [shape: f32[7,32], index: 4, kind: input, shape index: {}]   ;;  %s7080_s5 = inlined_call_operand.hbm [shape: f32[1,32], index: 5, kind: input, shape index: {}]   ;;  %s7081_s6 = inlined_call_operand.vmem [shape: f32[16,1,32], index: 6, kind: input, shape index: {}]   ;;  %s7082_s7 = inlined_call_operand.vmem [shape: f32[8,1,32], index: 7, kind: input, shape index: {}]   ;;  %s7083_s8 = inlined_call_operand.vmem [shape: f32[8,32,64], index: 8, kind: input, shape index: {}]   ;;  %s7084_s9 = inlined_call_operand.vmem [shape: f32[2,1,64], index: 9, kind: input, shape index: {}]   ;;  %s7085_s10 = inlined_call_operand.vmem [shape: f32[2,64,128], index: 10, kind: input, shape index: {}]   ;;  %s7086_s11 = inlined_call_operand.vmem [shape: f32[2,1,128], index: 11, kind: input, shape index: {}]   ;;  %s7087_s12 = inlined_call_operand.vmem [shape: f32[2,128,64], index: 12, kind: input, shape index: {}]   ;;  %s7088_s13 = inlined_call_operand.hbm [shape: f32[2,1,64], index: 13, kind: input, shape index: {}]   ;;  %s7089_s14 = inlined_call_operand.vmem [shape: f32[64,4], index: 14, kind: input, shape index: {}]   ;;  %s7090_s15 = inlined_call_operand.hbm [shape: f32[1,4], index: 15, kind: input, shape index: {}]   ;;  %s7091_s16 = inlined_call_operand.vmem [shape: f32[8,4], index: 16, kind: output, shape index: {}]  }
   0x1   :  { %7115 = sst [smem:[#allocation19_spill]] %s7075_s0 }
   0x2   :  { %21 = vsyncpa [#allocation3], 0 }
   0x3   :  { %22 = vsyncpa [#allocation5], 0  ;;  %s62_s23 = sshll.u32 %s7088_s13, 4  ;;  %s4236_s24 = smov [#allocation4]   ;;  %s63_s23 = int_to_ptr.hbm [resolvable:$true] %s62_s23 }
   0x4   :  { %s64_s25 = sshll.u32 %s4236_s24, 4  ;;  %s38_s28 = sshll.u32 %s7080_s5, 4  ;;  %s65_s25 = int_to_ptr.vmem [resolvable:$true] %s64_s25  ;;  %s39_s28 = int_to_ptr.hbm [resolvable:$true] %s38_s28 }
   0x5   :  { %s4237_s29 = smov 16   ;;  %s4238_s30 = smov 1  }
   0x6   :  { %70 = dma.hbm_to_vmem [thread:$0]  %s63_s23, 32, %s65_s25, [#allocation5], %s4237_s29, %s4237_s29, %s4238_s30  }
   0x7   :  { %s4239_s0 = smov [#allocation2]   ;;  %s78_s20 = sshll.u32 %s7090_s15, 4  ;;  %s79_s20 = int_to_ptr.hbm [resolvable:$true] %s78_s20 }
   0x8   :  { %s40_s17 = sshll.u32 %s4239_s0, 4  ;;  %s4240_s13 = smov [#allocation6]   ;;  %s41_s17 = int_to_ptr.vmem [resolvable:$true] %s40_s17 }
   0x9   :  { %43 = dma.hbm_to_vmem [thread:$0]  %s39_s28, 16, %s41_s17, [#allocation3]  }
   0xa   :  { %s80_s21 = sshll.u32 %s4240_s13, 4  ;;  %s81_s21 = int_to_ptr.vmem [resolvable:$true] %s80_s21 }
   0xb   :  { %83 = dma.hbm_to_vmem [thread:$0]  %s79_s20, 16, %s81_s21, [#allocation5]  }
   0xc   :  { %4232 = dma.done.wait [#allocation3], 16  }
   0xd   :  { %4233 = vsyncadd [#allocation3], 4294967280 }
   0xe   :  { %4234 = dma.done.wait [#allocation5], 48  }
   0xf   :  { %4235 = vsyncadd [#allocation5], 4294967248  ;;  %vm119_vm0 = vcmask 1041408   ;;  %v101_v0 = vld [vmem:[%s7077_s2 + $0x8] sm:$0x3]  ;;  %v100_v1 = vld [vmem:[%s7077_s2] sm:$0xff]  ;;  %v221_v21 = vlaneseq }
  0x10   :  { %3711 = vmatpush.msk.msra.mxu0 %vm119_vm0, %v101_v0  ;;  %3864 = vmatpush.msk.msra.mxu1 %vm119_vm0, %v101_v0  ;;  %s7116_s26 = sld [smem:[#allocation19_spill]]  ;;  %vm106_vm1 = vcmask 80896   ;;  %v158_v4 = vld [vmem:[%s7079_s4] sm:$0x7f]  ;;  %vm182_vm2 = vcmask 1046528   ;;  %vm163_vm3 = vcmask 56320  }
  0x11   :  { %v152_v6 = vld [vmem:[%s7076_s1] sm:$0xff]  ;;  %v153_v8 = vld [vmem:[%s7076_s1 + $0x8] sm:$0xff]  ;;  %v154_v9 = vld [vmem:[%s7076_s1 + $0x10] sm:$0xff]  ;;  %s4241_s29 = smov 32   ;;  %v4407_v23 = vshrl.u32 %v221_v21, 7  ;;  %s4243_s28 = smov 96  }
  0x12   :  { %138 = vmatpush.msra.mxu0 %v100_v1  ;;  %3865 = vmatpush.msra.mxu1 %v100_v1  ;;  %v155_v10 = vld [vmem:[%s7076_s1 + $0x18] sm:$0xff]  ;;  %v156_v11 = vld [vmem:[%s7076_s1 + $0x20] sm:$0xff]  ;;  %v157_v12 = vld [vmem:[%s7076_s1 + $0x28] sm:$0xff] }
  0x13   :  { %v4390_v13 = vld [vmem:[%s7078_s3] ss:$0 sm:$0xff]  ;;  %v4412_v24 = vld [vmem:[%s7081_s6 + $0x3] ss:$0 sm:$0xff]  ;;  %vm262_vm4 = vcmp.lt.s32.totalorder %v4407_v23, 7  ;;  %v562_v36 = vld [vmem:[%s7083_s8 + $0x18] sm:$0xff] }
  0x14   :  { %3716 = vmatpush.msk.msrb.mxu1 %vm182_vm2, %v158_v4  ;;  %v4400_v20 = vld [vmem:[#allocation2] ss:$0 sm:$0xff]  ;;  %v4429_v30 = vld [vmem:[%s7081_s6 + $0x2] ss:$0 sm:$0xff]  ;;  %v4434_v31 = vld [vmem:[%s7081_s6 + $0x4] ss:$0 sm:$0xff]  ;;  %594 = vmatpush.msra.mxu2 %v562_v36 }
  0x15   :  { %v4424_v29 = vld [vmem:[%s7081_s6] ss:$0 sm:$0xff]  ;;  %v4439_v32 = vld [vmem:[%s7081_s6 + $0x6] ss:$0 sm:$0xff]  ;;  %v4444_v33 = vld [vmem:[%s7081_s6 + $0x7] ss:$0 sm:$0xff]  ;;  %3866 = vmatpush.msra.mxu3 %v562_v36 }
  0x16   :  { %v96_v2 = vld [vmem:[%s7116_s26] sm:$0xff]  ;;  %v99_v3 = vld [vmem:[%s7116_s26 + $0x18] sm:$0xff]  ;;  %v97_v5 = vld [vmem:[%s7116_s26 + $0x8] sm:$0xff] }
  0x17   :  { %3712 = vmatmul.msk.f32.vlgmr.msra.gmra.mxu0 %vm106_vm1, %v96_v2  ;;  %3715 = vmatmul.msk.f32.vlgmr.msra.gmra.mxu1 %vm106_vm1, %v99_v3  ;;  %v98_v7 = vld [vmem:[%s7116_s26 + $0x10] sm:$0xff]  ;;  %v3757_v37 = vld [vmem:[%s7083_s8 + $0x58] sm:$0xff]  ;;  %v560_v43 = vld [vmem:[%s7083_s8 + $0x8] sm:$0xff] }
  0x18   :  { %v3770_v38 = vld [vmem:[%s7083_s8 + $0x78] sm:$0xff]  ;;  %1283 = vmatpush.msrb.mxu0 %v3757_v37  ;;  %v561_v40 = vld [vmem:[%s7083_s8 + $0x10] sm:$0xff]  ;;  %v3755_v44 = vld [vmem:[%s7083_s8 + $0x48] sm:$0xff] }
  0x19   :  { %v3756_v41 = vld [vmem:[%s7083_s8 + $0x50] sm:$0xff]  ;;  %1626 = vmatpush.msra.mxu1 %v3770_v38  ;;  %v4489_v47 = vld [vmem:[%s7082_s7] ss:$0 sm:$0xff]  ;;  %595 = vmatpush.msra.mxu2 %v561_v40  ;;  %v3768_v49 = vld [vmem:[%s7083_s8 + $0x68] sm:$0xff] }
  0x1a   :  { %v3769_v42 = vld [vmem:[%s7083_s8 + $0x70] sm:$0xff]  ;;  %1284 = vmatpush.msrb.mxu0 %v3756_v41  ;;  %v4503_v52 = vld [vmem:[%s7082_s7 + $0x2] ss:$0 sm:$0xff]  ;;  %v4510_v54 = vld [vmem:[%s7082_s7 + $0x3] ss:$0 sm:$0xff]  ;;  %3867 = vmatpush.msra.mxu3 %v561_v40 }
  0x1b   :  { %1627 = vmatpush.msra.mxu1 %v3769_v42  ;;  %v559_v55 = vld [vmem:[%s7083_s8] sm:$0xff]  ;;  %596 = vmatpush.msra.mxu2 %v560_v43 }
  0x1c   :  { %v3754_v56 = vld [vmem:[%s7083_s8 + $0x40] sm:$0xff]  ;;  %1285 = vmatpush.msrb.mxu0 %v3755_v44  ;;  %3868 = vmatpush.msra.mxu3 %v560_v43 }
  0x1d   :  { %v3767_v58 = vld [vmem:[%s7083_s8 + $0x60] sm:$0xff]  ;;  %1628 = vmatpush.msra.mxu1 %v3768_v49  ;;  %597 = vmatpush.msra.mxu2 %v559_v55 }
  0x1e   :  { %1286 = vmatpush.msrb.mxu0 %v3754_v56  ;;  %3869 = vmatpush.msra.mxu3 %v559_v55 }
  0x1f   :  { %3713 = vmatmul.msk.f32.gmra.mxu0 %vm106_vm1, %v97_v5  ;;  %3717 = vmatmul.msk.f32.vlgmr.msrb.gmra.mxu1 %vm163_vm3, %v152_v6 }
  0x20   :  { %1629 = vmatpush.msra.mxu1 %v3767_v58 }
  0x27   :  { %3714 = vmatmul.msk.f32.gmra.mxu0 %vm106_vm1, %v98_v7  ;;  %3718 = vmatmul.msk.f32.gmra.mxu1 %vm163_vm3, %v153_v8 }
  0x2f   :  { %3719 = vmatmul.msk.f32.gmra.mxu1 %vm163_vm3, %v154_v9 }
  0x37   :  { %3720 = vmatmul.msk.f32.gmra.mxu1 %vm163_vm3, %v155_v10 }
  0x3f   :  { %3721 = vmatmul.msk.f32.gmra.mxu1 %vm163_vm3, %v156_v11 }
  0x47   :  { %3722 = vmatmul.msk.f32.gmra.mxu1 %vm163_vm3, %v157_v12 }
  0x94   :  { %v140_v14 = vpop.f32.mrf.mxu0  ;;  %v149_v15 = vpop.f32.mrf.mxu1 }
  0x95   :  { %v4393_v16 = vadd.f32 %v4390_v13, %v140_v14  ;;  %v4522_v62 = vadd.f32 %v4390_v13, %v149_v15 }
  0x97   :  { %7117 = vst [vmem:[#allocation9_spill] sm:$0xff] %v4393_v16  ;;  %3056 = vrot.lane.b32.xlu0 %v4393_v16, %s4241_s29 }
  0x98   :  { %7120 = vst [vmem:[#allocation12_spill] sm:$0xff] %v4522_v62 }
  0x9c   :  { %v143_v17 = vpop.f32.mrf.mxu0  ;;  %v203_v18 = vpop.f32.mrf.mxu1 }
  0x9d   :  { %v4398_v19 = vadd.f32 %v4390_v13, %v143_v17  ;;  %v4405_v22 = vadd.f32 %v4400_v20, %v203_v18 }
  0x9f   :  { %7118 = vst [vmem:[#allocation10_spill] sm:$0xff] %v4398_v19  ;;  %3058 = vrot.lane.b32.xlu0 %v4398_v19, %s4241_s29  ;;  %v7093_v34 = vrot.slane %v4405_v22, 1  ;;  %v1317_v39 = vmul.f32 %v4412_v24, %v4405_v22  ;;  %v286_v46 = vmul.f32 %v4424_v29, %v4405_v22  ;;  %v974_v48 = vmul.f32 %v4429_v30, %v4405_v22 }
  0xa4   :  { %v146_v25 = vpop.f32.mrf.mxu0  ;;  %v206_v26 = vpop.f32.mrf.mxu1 }
  0xa5   :  { %v4415_v27 = vadd.f32 %v4390_v13, %v146_v25  ;;  %v4418_v28 = vadd.f32 %v4400_v20, %v206_v26 }
  0xa7   :  { %7119 = vst [vmem:[#allocation11_spill] sm:$0xff] %v4415_v27  ;;  %v257_v35 = vrot.slane %v4418_v28, 1  ;;  %3060 = vrot.lane.b32.xlu1 %v4415_v27, %s4241_s29  ;;  %v287_v21 = vmul.f32 %v4424_v29, %v4418_v28  ;;  %v975_v36 = vmul.f32 %v4429_v30, %v4418_v28  ;;  %v1318_v37 = vmul.f32 %v4412_v24, %v4418_v28 }
  0xa9   :  { %v4482_v45 = vsel %vm262_vm4, %v7093_v34, %v257_v35 }
  0xaa   :  { %v297_v50 = vmul.f32 %v4434_v31, %v4482_v45  ;;  %v985_v51 = vmul.f32 %v4439_v32, %v4482_v45  ;;  %v1328_v53 = vmul.f32 %v4444_v33, %v4482_v45 }
  0xac   :  { %v209_v57 = vpop.f32.mrf.mxu1  ;;  %v303_v59 = vadd.f32 %v297_v50, %v286_v46  ;;  %v991_v60 = vadd.f32 %v985_v51, %v974_v48  ;;  %v1334_v61 = vadd.f32 %v1328_v53, %v1317_v39  ;;  %v7095_v46 = vmov -1.0  }
  0xad   :  { %v4525_v63 = vadd.f32 %v4400_v20, %v209_v57 }
  0xae   :  { %v313_v0 = vadd.f32 %v4489_v47, %v303_v59  ;;  %v1002_v1 = vadd.f32 %v4503_v52, %v991_v60  ;;  %v1345_v2 = vadd.f32 %v4510_v54, %v1334_v61 }
  0xaf   :  { %3062 = vrot.lane.b32.xlu1 %v4522_v62, %s4241_s29  ;;  %v258_v6 = vrot.slane %v4525_v63, 1  ;;  %v4562_v40 = vmul.f32 %v4424_v29, %v4525_v63 }
  0xb0   :  { %v325_v3 = vmul.f32 0.70710677, %v313_v0  ;;  %v1014_v4 = vmul.f32 0.70710677, %v1002_v1  ;;  %v1357_v5 = vmul.f32 0.70710677, %v1345_v2 }
  0xb1   :  { %v4543_v15 = vsel %vm262_vm4, %v257_v35, %v258_v6  ;;  %v4564_v41 = vmul.f32 0.5, %v313_v0  ;;  %v4566_v43 = vmul.f32 0.5, %v1002_v1  ;;  %v4568_v44 = vmul.f32 0.5, %v1345_v2 }
  0xb2   :  { %v343_v7 = vand.u32 2147483647, %v325_v3  ;;  %v1032_v8 = vand.u32 2147483647, %v1014_v4  ;;  %v1375_v9 = vand.u32 2147483647, %v1357_v5  ;;  %v298_v26 = vmul.f32 %v4434_v31, %v4543_v15 }
  0xb3   :  { %vm331_vm5 = vcmp.ge.f32.partialorder %v325_v3, 0.0  ;;  %vm1020_vm6 = vcmp.ge.f32.partialorder %v1014_v4, 0.0  ;;  %vm1363_vm7 = vcmp.ge.f32.partialorder %v1357_v5, 0.0  ;;  %v986_v57 = vmul.f32 %v4439_v32, %v4543_v15 }
  0xb4   :  { %v349_v10 = vmul.f32 0.3275911, %v343_v7  ;;  %v1038_v11 = vmul.f32 0.3275911, %v1032_v8  ;;  %v1381_v12 = vmul.f32 0.3275911, %v1375_v9  ;;  %v212_v17 = vpop.f32.mrf.mxu1  ;;  %v304_v50 = vadd.f32 %v298_v26, %v287_v21 }
  0xb5   :  { %v505_v18 = vsub.f32 0.0, %v343_v7  ;;  %v1194_v35 = vsub.f32 0.0, %v1032_v8  ;;  %v4558_v38 = vadd.f32 %v4400_v20, %v212_v17  ;;  %v1537_v39 = vsub.f32 0.0, %v1375_v9 }
  0xb6   :  { %v4533_v13 = vadd.f32 1.0, %v349_v10  ;;  %v4535_v14 = vadd.f32 1.0, %v1038_v11  ;;  %v4549_v25 = vadd.f32 1.0, %v1381_v12  ;;  %v4571_v48 = vsel %vm331_vm5, 1.0, %v7095_v46 }
  0xb7   :  { %v511_v42 = vmul.f32 %v505_v18, %v343_v7  ;;  %v4574_v49 = vsel %vm1020_vm6, 1.0, %v7095_v46  ;;  %v1200_v55 = vmul.f32 %v1194_v35, %v1032_v8  ;;  %v4579_v56 = vsel %vm1363_vm7, 1.0, %v7095_v46 }
  0xb8   :  { %3911 = vrcp.f32 %v4533_v13  ;;  %v370_v53 = vand.u32 2147483647, %v4533_v13  ;;  %v7094_v59 = vrot.slane %v4558_v38, 1  ;;  %v1543_v61 = vmul.f32 %v1537_v39, %v1375_v9 }
  0xb9   :  { %3913 = vrcp.f32 %v4535_v14  ;;  %v4586_v0 = vadd.f32 %v4489_v47, %v304_v50  ;;  %vm366_vm8 = vweird.f32 %v4533_v13  ;;  %v372_v1 = vand.u32 2147483648, %v4533_v13 }
  0xba   :  { %3915 = vrcp.f32 %v4549_v25  ;;  %v517_v2 = vmul.f32 1.442695, %v511_v42  ;;  %v1059_v5 = vand.u32 2147483647, %v4535_v14  ;;  %v992_v8 = vadd.f32 %v986_v57, %v975_v36 }
  0xbb   :  { %v4593_v7 = vmul.f32 0.70710677, %v4586_v0  ;;  %vm4595_vm9 = vcmp.eq.f32.partialorder %v370_v53, 8.507059e+37  ;;  %vm1055_vm10 = vweird.f32 %v4535_v14  ;;  %v1061_v11 = vand.u32 2147483648, %v4535_v14 }
  0xbc   :  { %v1329_v21 = vmul.f32 %v4444_v33, %v4543_v15  ;;  %v373_v26 = vor.u32 1.1754944e-38, %v372_v1  ;;  %vm4605_vm13 = vcmp.eq.f32.partialorder %v1059_v5, 8.507059e+37  ;;  %v4610_v53 = vadd.f32 %v4503_v52, %v992_v8 }
  0xbd   :  { %v344_v18 = vand.u32 2147483647, %v4593_v7  ;;  %v1402_v1 = vand.u32 2147483647, %v4549_v25  ;;  %v1404_v5 = vand.u32 2147483648, %v4549_v25  ;;  %vm1398_vm1 = vweird.f32 %v4549_v25 }
  0xbe   :  { %v3912_v51 = vpop.eup %3911 }
  0xbf   :  { %v3914_v58 = vpop.eup %3913  ;;  %v362_v60 = vmul.f32 %v3912_v51, %v4533_v13  ;;  %vm367_vm11 = vweird.f32 %v3912_v51  ;;  %v350_v50 = vmul.f32 0.3275911, %v344_v18  ;;  %vm1403_vm3 = vcmp.eq.f32.partialorder %v1402_v1, 8.507059e+37 }
  0xc0   :  { %v1051_v3 = vmul.f32 %v3914_v58, %v4535_v14  ;;  %v3916_v12 = vpop.eup %3915  ;;  %vm1056_vm12 = vweird.f32 %v3914_v58  ;;  %vm368_vm14 = vmor %vm366_vm8, %vm367_vm11  ;;  %v4631_v14 = vmul.f32 0.70710677, %v4610_v53 }
  0xc1   :  { %v363_v4 = vsub.f32 1.0, %v362_v60  ;;  %v1394_v36 = vmul.f32 %v3916_v12, %v4549_v25  ;;  %v1062_v60 = vor.u32 1.1754944e-38, %v1061_v11  ;;  %vm1057_vm15 = vmor %vm1055_vm10, %vm1056_vm12  ;;  %vm1399_vm0 = vweird.f32 %v3916_v12 }
  0xc2   :  { %v1052_v9 = vsub.f32 1.0, %v1051_v3  ;;  %vm1400_vm2 = vmor %vm1398_vm1, %vm1399_vm0  ;;  %vm563_vm10 = vcmask 261120  }
  0xc3   :  { %v364_v17 = vmul.f32 %v3912_v51, %v363_v4  ;;  %v1395_v3 = vsub.f32 1.0, %v1394_v36  ;;  %v1549_v36 = vmul.f32 1.442695, %v1543_v61 }
  0xc4   :  { %v1053_v35 = vmul.f32 %v3914_v58, %v1052_v9  ;;  %v4618_v9 = vadd.f32 1.0, %v350_v50 }
  0xc5   :  { %v365_v39 = vadd.f32 %v3912_v51, %v364_v17  ;;  %v1335_v17 = vadd.f32 %v1329_v21, %v1318_v37  ;;  %v1396_v34 = vmul.f32 %v3916_v12, %v1395_v3  ;;  %v1206_v21 = vmul.f32 1.442695, %v1200_v55 }
  0xc6   :  { %v1054_v57 = vadd.f32 %v3914_v58, %v1053_v35  ;;  %3917 = vrcp.f32 %v4618_v9  ;;  %v1405_v35 = vor.u32 1.1754944e-38, %v1404_v5  ;;  %v4639_v3 = vand.u32 2147483647, %v4631_v14 }
  0xc7   :  { %v369_v4 = vsel %vm368_vm14, %v3912_v51, %v365_v39  ;;  %v1397_v10 = vadd.f32 %v3916_v12, %v1396_v34  ;;  %v506_v39 = vsub.f32 0.0, %v344_v18  ;;  %3919 = vpow2.f32 %v517_v2 }
  0xc8   :  { %v4622_v8 = vsel %vm4595_vm9, %v373_v26, %v369_v4  ;;  %v1058_v13 = vsel %vm1057_vm15, %v3914_v58, %v1054_v57  ;;  %v215_v58 = vpop.f32.mrf.mxu1  ;;  %v4642_v34 = vadd.f32 %v4510_v54, %v1335_v17  ;;  %3921 = vpow2.f32 %v1206_v21 }
  0xc9   :  { %v451_v11 = vmul.f32 1.0614054, %v4622_v8  ;;  %v4627_v51 = vsel %vm4605_vm13, %v1062_v60, %v1058_v13  ;;  %v1401_v50 = vsel %vm1400_vm2, %v3916_v12, %v1397_v10  ;;  %v4645_v25 = vadd.f32 %v4400_v20, %v215_v58 }
  0xca   :  { %v1140_v37 = vmul.f32 1.0614054, %v4627_v51  ;;  %v4636_v60 = vsel %vm1403_vm3, %v1405_v35, %v1401_v50  ;;  %3923 = vpow2.f32 %v1549_v36  ;;  %v512_v1 = vmul.f32 %v506_v39, %v344_v18 }
  0xcb   :  { %v457_v26 = vadd.f32 -1.4531521, %v451_v11  ;;  %v1483_v61 = vmul.f32 1.0614054, %v4636_v60  ;;  %v1039_v4 = vmul.f32 0.3275911, %v4639_v3  ;;  %v265_v39 = vsel %vm262_vm4, %v258_v6, %v7094_v59 }
  0xcc   :  { %v1146_v42 = vadd.f32 -1.4531521, %v1140_v37  ;;  %v3918_v2 = vpop.eup %3917  ;;  %v4652_v17 = vadd.s32 16, %v4407_v23  ;;  %v385_v10 = vand.u32 2147483647, %v4618_v9  ;;  %v387_v50 = vand.u32 2147483648, %v4618_v9 }
  0xcd   :  { %v463_v57 = vmul.f32 %v457_v26, %v4622_v8  ;;  %v1489_v13 = vadd.f32 -1.4531521, %v1483_v61  ;;  %v377_v11 = vmul.f32 %v3918_v2, %v4618_v9  ;;  %v4656_v21 = vadd.f32 1.0, %v1039_v4  ;;  %v3920_v26 = vpop.eup %3919 }
  0xce   :  { %v1152_v55 = vmul.f32 %v1146_v42, %v4627_v51  ;;  %v4659_v58 = vmul.f32 0.70710677, %v4642_v34  ;;  %vm382_vm5 = vweird.f32 %v3918_v2  ;;  %vm381_vm6 = vweird.f32 %v4618_v9 }
  0xcf   :  { %v469_v12 = vadd.f32 1.4214138, %v463_v57  ;;  %v1495_v35 = vmul.f32 %v1489_v13, %v4636_v60  ;;  %v378_v36 = vsub.f32 1.0, %v377_v11  ;;  %v519_v57 = vmul.f32 1.442695, %v512_v1  ;;  %vm383_vm9 = vmor %vm381_vm6, %vm382_vm5 }
  0xd0   :  { %v1158_v5 = vadd.f32 1.4214138, %v1152_v55  ;;  %3925 = vrcp.f32 %v4656_v21  ;;  %v3922_v55 = vpop.eup %3921  ;;  %vm4673_vm7 = vcmp.eq.f32.partialorder %v385_v10, 8.507059e+37  ;;  %v4678_v6 = vand.u32 2147483647, %v4659_v58 }
  0xd1   :  { %v475_v37 = vmul.f32 %v469_v12, %v4622_v8  ;;  %v1501_v12 = vadd.f32 1.4214138, %v1495_v35  ;;  %v379_v4 = vmul.f32 %v3918_v2, %v378_v36  ;;  %vm271_vm8 = vcmp.lt.s32.totalorder %v4652_v17, 23 }
  0xd2   :  { %v1164_v18 = vmul.f32 %v1158_v5, %v4627_v51  ;;  %v3924_v5 = vpop.eup %3923  ;;  %v388_v36 = vor.u32 1.1754944e-38, %v387_v50  ;;  %v1382_v9 = vmul.f32 0.3275911, %v4678_v6  ;;  %3927 = vpow2.f32 %v519_v57 }
  0xd3   :  { %v481_v42 = vadd.f32 -0.28449672, %v475_v37  ;;  %v1507_v37 = vmul.f32 %v1501_v12, %v4636_v60  ;;  %vm1070_vm12 = vweird.f32 %v4656_v21  ;;  %vm332_vm15 = vcmp.ge.f32.partialorder %v4593_v7, 0.0 }
  0xd4   :  { %v1170_v61 = vadd.f32 -0.28449672, %v1164_v18  ;;  %v380_v18 = vadd.f32 %v3918_v2, %v379_v4  ;;  %v4690_v12 = vadd.f32 1.0, %v1382_v9  ;;  %v4692_v4 = vsel %vm271_vm8, %v265_v39, 0.0 }
  0xd5   :  { %v487_v13 = vmul.f32 %v481_v42, %v4622_v8  ;;  %v1195_v42 = vsub.f32 0.0, %v4639_v3  ;;  %v1513_v59 = vadd.f32 -0.28449672, %v1507_v37  ;;  %vm1021_vm5 = vcmp.ge.f32.partialorder %v4631_v14, 0.0 }
  0xd6   :  { %v1176_v1 = vmul.f32 %v1170_v61, %v4627_v51  ;;  %v384_v46 = vsel %vm383_vm9, %v3918_v2, %v380_v18  ;;  %v3926_v27 = vpop.eup %3925  ;;  %3929 = vrcp.f32 %v4690_v12  ;;  %vm1413_vm1 = vweird.f32 %v4690_v12 }
  0xd7   :  { %v493_v35 = vadd.f32 0.2548296, %v487_v13  ;;  %v4688_v61 = vsel %vm4673_vm7, %v388_v36, %v384_v46  ;;  %v1519_v13 = vmul.f32 %v1513_v59, %v4636_v60  ;;  %v1066_v2 = vmul.f32 %v3926_v27, %v4656_v21 }
  0xd8   :  { %v1182_v10 = vadd.f32 0.2548296, %v1176_v1  ;;  %v452_v1 = vmul.f32 1.0614054, %v4688_v61  ;;  %v1201_v11 = vmul.f32 %v1195_v42, %v4639_v3  ;;  %vm1071_vm11 = vweird.f32 %v3926_v27  ;;  %v4704_v36 = vpop.eup %3927 }
  0xd9   :  { %v499_v19 = vmul.f32 %v493_v35, %v4622_v8  ;;  %v1074_v8 = vand.u32 2147483647, %v4656_v21  ;;  %v1525_v37 = vadd.f32 0.2548296, %v1519_v13  ;;  %v1067_v18 = vsub.f32 1.0, %v1066_v2  ;;  %vm1072_vm14 = vmor %vm1070_vm12, %vm1071_vm11 }
  0xda   :  { %v1188_v50 = vmul.f32 %v1182_v10, %v4627_v51  ;;  %v458_v39 = vadd.f32 -1.4531521, %v452_v1  ;;  %v1076_v51 = vand.u32 2147483648, %v4656_v21  ;;  %v299_v59 = vmul.f32 %v4434_v31, %v4692_v4 }
  0xdb   :  { %v529_v57 = vmul.f32 %v3920_v26, %v499_v19  ;;  %v1531_v26 = vmul.f32 %v1525_v37, %v4636_v60  ;;  %v1068_v42 = vmul.f32 %v3926_v27, %v1067_v18  ;;  %vm4710_vm13 = vcmp.eq.f32.partialorder %v1074_v8, 8.507059e+37 }
  0xdc   :  { %v1218_v46 = vmul.f32 %v3922_v55, %v1188_v50  ;;  %v464_v3 = vmul.f32 %v458_v39, %v4688_v61  ;;  %v4714_v10 = vmul.f32 1.442695, %v1201_v11  ;;  %v987_v21 = vmul.f32 %v4439_v32, %v4692_v4 }
  0xdd   :  { %v535_v35 = vsub.f32 1.0, %v529_v57  ;;  %v1561_v13 = vmul.f32 %v3924_v5, %v1531_v26  ;;  %v1069_v2 = vadd.f32 %v3926_v27, %v1068_v42  ;;  %v3930_v57 = vpop.eup %3929  ;;  %vm1364_vm6 = vcmp.ge.f32.partialorder %v4659_v58, 0.0 }
  0xde   :  { %v1224_v19 = vsub.f32 1.0, %v1218_v46  ;;  %v470_v1 = vadd.f32 1.4214138, %v464_v3  ;;  %v1077_v46 = vor.u32 1.1754944e-38, %v1076_v51  ;;  %v1409_v18 = vmul.f32 %v3930_v57, %v4690_v12 }
  0xdf   :  { %v541_v55 = vmul.f32 %v535_v35, %v4571_v48  ;;  %v305_v48 = vadd.f32 %v299_v59, %v4562_v40  ;;  %v1567_v37 = vsub.f32 1.0, %v1561_v13  ;;  %v1073_v39 = vsel %vm1072_vm14, %v3926_v27, %v1069_v2 }
  0xe0   :  { %v1230_v50 = vmul.f32 %v1224_v19, %v4574_v49  ;;  %v476_v11 = vmul.f32 %v470_v1, %v4688_v61  ;;  %v4725_v5 = vsel %vm4710_vm13, %v1077_v46, %v1073_v39  ;;  %v976_v35 = vmul.f32 %v4429_v30, %v4525_v63 }
  0xe1   :  { %v547_v60 = vadd.f32 1.0, %v541_v55  ;;  %v1573_v51 = vmul.f32 %v1567_v37, %v4579_v56  ;;  %v1141_v27 = vmul.f32 1.0614054, %v4725_v5  ;;  %v1417_v19 = vand.u32 2147483647, %v4690_v12 }
  0xe2   :  { %v1236_v8 = vadd.f32 1.0, %v1230_v50  ;;  %v482_v59 = vadd.f32 -0.28449672, %v476_v11  ;;  %v4737_v26 = vadd.f32 %v4489_v47, %v305_v48  ;;  %v993_v3 = vadd.f32 %v987_v21, %v976_v35  ;;  %v218_v35 = vpop.f32.mrf.mxu1 }
  0xe3   :  { %v553_v49 = vmul.f32 %v547_v60, %v4564_v41  ;;  %v1410_v41 = vsub.f32 1.0, %v1409_v18  ;;  %v1579_v42 = vadd.f32 1.0, %v1573_v51  ;;  %v1147_v56 = vadd.f32 -1.4531521, %v1141_v27 }
  0xe4   :  { %v1242_v40 = vmul.f32 %v1236_v8, %v4566_v43  ;;  %v488_v43 = vmul.f32 %v482_v59, %v4688_v61  ;;  %v1419_v55 = vand.u32 2147483648, %v4690_v12  ;;  %vm1414_vm0 = vweird.f32 %v3930_v57 }
  0xe5   :  { %3732 = vmatmul.msk.f32.vlgmr.msra.gmra.mxu2 %vm563_vm10, %v553_v49  ;;  %v1411_v9 = vmul.f32 %v3930_v57, %v1410_v41  ;;  %v4743_v50 = vmul.f32 0.70710677, %v4737_v26  ;;  %v4746_v13 = vadd.f32 %v4503_v52, %v993_v3  ;;  %v1585_v1 = vmul.f32 %v1579_v42, %v4568_v44  ;;  %vm1415_vm2 = vmor %vm1413_vm1, %vm1414_vm0 }
  0xe6   :  { %3758 = vmatmul.msk.f32.vlgmr.msrb.gmra.mxu0 %vm563_vm10, %v1242_v40  ;;  %v494_v2 = vadd.f32 0.2548296, %v488_v43  ;;  %v1153_v60 = vmul.f32 %v1147_v56, %v4725_v5  ;;  %v1538_v46 = vsub.f32 0.0, %v4678_v6  ;;  %v1330_v8 = vmul.f32 %v4444_v33, %v4692_v4 }
  0xe7   :  { %v1412_v48 = vadd.f32 %v3930_v57, %v1411_v9  ;;  %v4753_v21 = vand.u32 2147483647, %v4743_v50  ;;  %3771 = vmatmul.msk.f32.vlgmr.msra.gmra.mxu1 %vm563_vm10, %v1585_v1  ;;  %v1420_v44 = vor.u32 1.1754944e-38, %v1419_v55  ;;  %v4760_v39 = vmul.f32 0.70710677, %v4746_v13 }
  0xe8   :  { %v500_v37 = vmul.f32 %v494_v2, %v4688_v61  ;;  %v1159_v11 = vadd.f32 1.4214138, %v1153_v60  ;;  %vm1418_vm3 = vcmp.eq.f32.partialorder %v1417_v19, 8.507059e+37  ;;  %v1319_v18 = vmul.f32 %v4412_v24, %v4525_v63 }
  0xe9   :  { %v1416_v49 = vsel %vm1415_vm2, %v3930_v57, %v1412_v48  ;;  %v351_v12 = vmul.f32 0.3275911, %v4753_v21  ;;  %v1544_v61 = vmul.f32 %v1538_v46, %v4678_v6  ;;  %v260_v27 = vrot.slane %v4645_v25, 1 }
  0xea   :  { %v530_v40 = vmul.f32 %v4704_v36, %v500_v37  ;;  %v1165_v51 = vmul.f32 %v1159_v11, %v4725_v5  ;;  %v4767_v59 = vsel %vm1418_vm3, %v1420_v44, %v1416_v49  ;;  %v1336_v19 = vadd.f32 %v1330_v8, %v1319_v18 }
  0xeb   :  { %v1484_v41 = vmul.f32 1.0614054, %v4767_v59  ;;  %v4772_v57 = vadd.f32 1.0, %v351_v12  ;;  %3931 = vpow2.f32 %v4714_v10  ;;  %v4776_v43 = vand.u32 2147483647, %v4760_v39 }
  0xec   :  { %v536_v3 = vsub.f32 1.0, %v530_v40  ;;  %v1171_v42 = vadd.f32 -0.28449672, %v1165_v51  ;;  %v4779_v36 = vadd.f32 %v4400_v20, %v218_v35  ;;  %v7129_v56 = vmov -1.0  }
  0xed   :  { %v338_v6 = vsel %vm332_vm15, 1.0, %v7129_v56  ;;  %v1490_v55 = vadd.f32 -1.4531521, %v1484_v41  ;;  %3933 = vrcp.f32 %v4772_v57  ;;  %v1551_v2 = vmul.f32 1.442695, %v1544_v61 }
  0xee   :  { %v542_v9 = vmul.f32 %v536_v3, %v338_v6  ;;  %v1177_v1 = vmul.f32 %v1171_v42, %v4725_v5  ;;  %v320_v10 = vmul.f32 0.5, %v4586_v0  ;;  %v1040_v20 = vmul.f32 0.3275911, %v4776_v43 }
  0xef   :  { %v1496_v60 = vmul.f32 %v1490_v55, %v4767_v59  ;;  %v4791_v46 = vadd.f32 %v4510_v54, %v1336_v19  ;;  %v1009_v48 = vmul.f32 0.5, %v4610_v53  ;;  %v261_v14 = vrot.slane %v4779_v36, 1 }
  0xf0   :  { %v548_v7 = vadd.f32 1.0, %v542_v9  ;;  %v1183_v8 = vadd.f32 0.2548296, %v1177_v1  ;;  %v1027_v37 = vsel %vm1021_vm5, 1.0, %v7129_v56  ;;  %v4797_v44 = vadd.f32 1.0, %v1040_v20 }
  0xf1   :  { %v1502_v11 = vadd.f32 1.4214138, %v1496_v60  ;;  %v3932_v0 = vpop.eup %3931  ;;  %v4801_v18 = vmul.f32 0.5, %v4642_v34  ;;  %3935 = vpow2.f32 %v1551_v2  ;;  %v1370_v53 = vsel %vm1364_vm6, 1.0, %v7129_v56 }
  0xf2   :  { %v554_v49 = vmul.f32 %v548_v7, %v320_v10  ;;  %v1189_v12 = vmul.f32 %v1183_v8, %v4725_v5  ;;  %3937 = vrcp.f32 %v4797_v44  ;;  %v4807_v40 = vmul.f32 0.70710677, %v4791_v46 }
  0xf3   :  { %v3934_v35 = vpop.eup %3933  ;;  %v1508_v58 = vmul.f32 %v1502_v11, %v4767_v59  ;;  %v400_v5 = vand.u32 2147483647, %v4772_v57  ;;  %v7130_v34 = vrot.slane %v4558_v38, 1  ;;  %v4821_v3 = vmul.f32 0.5, %v4737_v26 }
  0xf4   :  { %3733 = vmatmul.msk.f32.gmra.mxu2 %vm563_vm10, %v554_v49  ;;  %v1219_v51 = vmul.f32 %v3932_v0, %v1189_v12  ;;  %v392_v61 = vmul.f32 %v3934_v35, %v4772_v57  ;;  %vm333_vm7 = vcmp.ge.f32.partialorder %v4743_v50, 0.0  ;;  %v402_v42 = vand.u32 2147483648, %v4772_v57 }
  0xf5   :  { %v4818_v41 = vsel %vm262_vm4, %v7130_v34, %v260_v27  ;;  %v1514_v19 = vadd.f32 -0.28449672, %v1508_v58  ;;  %vm396_vm8 = vweird.f32 %v4772_v57  ;;  %v507_v9 = vsub.f32 0.0, %v4753_v21 }
  0xf6   :  { %v1225_v6 = vsub.f32 1.0, %v1219_v51  ;;  %v393_v55 = vsub.f32 1.0, %v392_v61  ;;  %v4829_v2 = vand.u32 2147483647, %v4807_v40  ;;  %v289_v10 = vmul.f32 %v4424_v29, %v4558_v38 }
  0xf7   :  { %v1520_v1 = vmul.f32 %v1514_v19, %v4767_v59  ;;  %v300_v26 = vmul.f32 %v4434_v31, %v4818_v41  ;;  %v3936_v60 = vpop.eup %3935  ;;  %vm397_vm9 = vweird.f32 %v3934_v35  ;;  %vm4835_vm11 = vcmp.eq.f32.partialorder %v400_v5, 8.507059e+37 }
  0xf8   :  { %v1231_v20 = vmul.f32 %v1225_v6, %v1027_v37  ;;  %v394_v7 = vmul.f32 %v3934_v35, %v393_v55  ;;  %v3938_v11 = vpop.eup %3937  ;;  %v403_v49 = vor.u32 1.1754944e-38, %v402_v42  ;;  %v1383_v12 = vmul.f32 0.3275911, %v4829_v2  ;;  %vm398_vm12 = vmor %vm396_vm8, %vm397_vm9 }
  0xf9   :  { %v1526_v0 = vadd.f32 0.2548296, %v1520_v1  ;;  %v306_v58 = vadd.f32 %v300_v26, %v289_v10  ;;  %v1081_v34 = vmul.f32 %v3938_v11, %v4797_v44  ;;  %v988_v19 = vmul.f32 %v4439_v32, %v4818_v41 }
  0xfa   :  { %v1237_v51 = vadd.f32 1.0, %v1231_v20  ;;  %v395_v61 = vadd.f32 %v3934_v35, %v394_v7  ;;  %v1089_v5 = vand.u32 2147483647, %v4797_v44  ;;  %v4847_v6 = vadd.f32 1.0, %v1383_v12 }
  0xfb   :  { %v1532_v37 = vmul.f32 %v1526_v0, %v4767_v59  ;;  %v4850_v42 = vadd.f32 %v4489_v47, %v306_v58  ;;  %v1082_v10 = vsub.f32 1.0, %v1081_v34  ;;  %v977_v26 = vmul.f32 %v4429_v30, %v4558_v38 }
  0xfc   :  { %v1243_v55 = vmul.f32 %v1237_v51, %v1009_v48  ;;  %v399_v1 = vsel %vm398_vm12, %v3934_v35, %v395_v61  ;;  %v1091_v59 = vand.u32 2147483648, %v4797_v44  ;;  %3939 = vrcp.f32 %v4847_v6 }
  0xfd   :  { %v1562_v20 = vmul.f32 %v3936_v60, %v1532_v37  ;;  %v4856_v32 = vsel %vm4835_vm11, %v403_v49, %v399_v1  ;;  %v1083_v7 = vmul.f32 %v3938_v11, %v1082_v10  ;;  %vm1086_vm13 = vweird.f32 %v3938_v11 }
  0xfe   :  { %3759 = vmatmul.msk.f32.gmra.mxu0 %vm563_vm10, %v1243_v55  ;;  %v453_v57 = vmul.f32 1.0614054, %v4856_v32  ;;  %v994_v48 = vadd.f32 %v988_v19, %v977_v26  ;;  %v4863_v0 = vmul.f32 0.5, %v4746_v13  ;;  %v1196_v30 = vsub.f32 0.0, %v4776_v43 }
  0xff   :  { %v1568_v35 = vsub.f32 1.0, %v1562_v20  ;;  %v4867_v60 = vmul.f32 0.70710677, %v4850_v42  ;;  %v4872_v8 = vsel %vm333_vm7, 1.0, %v7129_v56  ;;  %v1084_v12 = vadd.f32 %v3938_v11, %v1083_v7 }
 0x100   :  { %v459_v49 = vadd.f32 -1.4531521, %v453_v57  ;;  %vm1085_vm14 = vweird.f32 %v4797_v44  ;;  %v513_v51 = vmul.f32 %v507_v9, %v4753_v21  ;;  %v1092_v13 = vor.u32 1.1754944e-38, %v1091_v59 }
 0x101   :  { %v1574_v58 = vmul.f32 %v1568_v35, %v1370_v53  ;;  %vm1087_vm15 = vmor %vm1085_vm14, %vm1086_vm13  ;;  %v346_v61 = vand.u32 2147483647, %v4867_v60  ;;  %vm1090_vm0 = vcmp.eq.f32.partialorder %v1089_v5, 8.507059e+37  ;;  %v4879_v37 = vadd.f32 %v4503_v52, %v994_v48 }
 0x102   :  { %v465_v34 = vmul.f32 %v459_v49, %v4856_v32  ;;  %v1088_v19 = vsel %vm1087_vm15, %v3938_v11, %v1084_v12  ;;  %v3940_v50 = vpop.eup %3939  ;;  %v1202_v44 = vmul.f32 %v1196_v30, %v4776_v43  ;;  %vm1022_vm1 = vcmp.ge.f32.partialorder %v4760_v39, 0.0 }
 0x103   :  { %v1580_v55 = vadd.f32 1.0, %v1574_v58  ;;  %v4881_v1 = vsel %vm1090_vm0, %v1092_v13, %v1088_v19  ;;  %v352_v53 = vmul.f32 0.3275911, %v346_v61  ;;  %v1424_v9 = vmul.f32 %v3940_v50, %v4847_v6 }
 0x104   :  { %v471_v10 = vadd.f32 1.4214138, %v465_v34  ;;  %v1142_v21 = vmul.f32 1.0614054, %v4881_v1  ;;  %v521_v5 = vmul.f32 1.442695, %v513_v51  ;;  %vm1429_vm2 = vweird.f32 %v3940_v50 }
 0x105   :  { %v1586_v11 = vmul.f32 %v1580_v55, %v4801_v18  ;;  %v1539_v52 = vsub.f32 0.0, %v4829_v2  ;;  %v4889_v26 = vadd.f32 1.0, %v352_v53  ;;  %v1425_v57 = vsub.f32 1.0, %v1424_v9 }
 0x106   :  { %v477_v20 = vmul.f32 %v471_v10, %v4856_v32  ;;  %v1148_v59 = vadd.f32 -1.4531521, %v1142_v21  ;;  %v4893_v43 = vmul.f32 0.70710677, %v4879_v37  ;;  %v1210_v7 = vmul.f32 1.442695, %v1202_v44 }
 0x107   :  { %3772 = vmatmul.msk.f32.gmra.mxu1 %vm563_vm10, %v1586_v11  ;;  %v1432_v48 = vand.u32 2147483647, %v4847_v6  ;;  %v1434_v35 = vand.u32 2147483648, %v4847_v6  ;;  %3941 = vrcp.f32 %v4889_v26  ;;  %v1426_v49 = vmul.f32 %v3940_v50, %v1425_v57 }
 0x108   :  { %v483_v18 = vadd.f32 -0.28449672, %v477_v20  ;;  %v1154_v30 = vmul.f32 %v1148_v59, %v4881_v1  ;;  %3943 = vpow2.f32 %v521_v5  ;;  %v4903_v12 = vsel %vm1022_vm1, 1.0, %v7129_v56 }
 0x109   :  { %v1545_v58 = vmul.f32 %v1539_v52, %v4829_v2  ;;  %v4907_v51 = vand.u32 2147483647, %v4893_v43  ;;  %v1427_v19 = vadd.f32 %v3940_v50, %v1426_v49  ;;  %vm1428_vm3 = vweird.f32 %v4847_v6 }
 0x10a   :  { %v489_v13 = vmul.f32 %v483_v18, %v4856_v32  ;;  %v1160_v34 = vadd.f32 1.4214138, %v1154_v30  ;;  %3945 = vpow2.f32 %v1210_v7  ;;  %vm1430_vm5 = vmor %vm1428_vm3, %vm1429_vm2  ;;  %v1435_v55 = vor.u32 1.1754944e-38, %v1434_v35 }
 0x10b   :  { %v508_v44 = vsub.f32 0.0, %v346_v61  ;;  %v1041_v53 = vmul.f32 0.3275911, %v4907_v51  ;;  %v1431_v21 = vsel %vm1430_vm5, %v3940_v50, %v1427_v19  ;;  %vm1433_vm6 = vcmp.eq.f32.partialorder %v1432_v48, 8.507059e+37 }
 0x10c   :  { %v495_v39 = vadd.f32 0.2548296, %v489_v13  ;;  %v1166_v10 = vmul.f32 %v1160_v34, %v4881_v1  ;;  %v4913_v9 = vsel %vm1433_vm6, %v1435_v55, %v1431_v21  ;;  %v1553_v11 = vmul.f32 1.442695, %v1545_v58 }
 0x10d   :  { %v3942_v2 = vpop.eup %3941  ;;  %v4915_v5 = vadd.f32 1.0, %v1041_v53  ;;  %v1331_v6 = vmul.f32 %v4444_v33, %v4818_v41  ;;  %v1485_v59 = vmul.f32 1.0614054, %v4913_v9  ;;  %v415_v50 = vand.u32 2147483647, %v4889_v26 }
 0x10e   :  { %v501_v52 = vmul.f32 %v495_v39, %v4856_v32  ;;  %v1172_v20 = vadd.f32 -0.28449672, %v1166_v10  ;;  %v407_v57 = vmul.f32 %v3942_v2, %v4889_v26  ;;  %v3944_v7 = vpop.eup %3943  ;;  %v514_v48 = vmul.f32 %v508_v44, %v346_v61 }
 0x10f   :  { %3947 = vrcp.f32 %v4915_v5  ;;  %v1320_v35 = vmul.f32 %v4412_v24, %v4558_v38  ;;  %v1491_v33 = vadd.f32 -1.4531521, %v1485_v59  ;;  %vm412_vm7 = vweird.f32 %v3942_v2 }
 0x110   :  { %v531_v18 = vmul.f32 %v3944_v7, %v501_v52  ;;  %v1178_v30 = vmul.f32 %v1172_v20, %v4881_v1  ;;  %v408_v49 = vsub.f32 1.0, %v407_v57  ;;  %v3946_v32 = vpop.eup %3945  ;;  %v417_v58 = vand.u32 2147483648, %v4889_v26 }
 0x111   :  { %v1337_v13 = vadd.f32 %v1331_v6, %v1320_v35  ;;  %v4934_v61 = vsel %vm262_vm4, %v260_v27, %v261_v14  ;;  %v1497_v19 = vmul.f32 %v1491_v33, %v4913_v9  ;;  %3949 = vpow2.f32 %v1553_v11 }
 0x112   :  { %v537_v34 = vsub.f32 1.0, %v531_v18  ;;  %v1184_v24 = vadd.f32 0.2548296, %v1178_v30  ;;  %v409_v55 = vmul.f32 %v3942_v2, %v408_v49  ;;  %vm411_vm8 = vweird.f32 %v4889_v26 }
 0x113   :  { %v4938_v44 = vmul.f32 1.442695, %v514_v48  ;;  %v4941_v53 = vadd.f32 %v4510_v54, %v1337_v13  ;;  %v1503_v21 = vadd.f32 1.4214138, %v1497_v19  ;;  %vm413_vm9 = vmor %vm411_vm8, %vm412_vm7  ;;  %vm416_vm11 = vcmp.eq.f32.partialorder %v415_v50, 8.507059e+37 }
 0x114   :  { %v543_v39 = vmul.f32 %v537_v34, %v4872_v8  ;;  %v1190_v10 = vmul.f32 %v1184_v24, %v4881_v1  ;;  %v410_v27 = vadd.f32 %v3942_v2, %v409_v55  ;;  %v418_v52 = vor.u32 1.1754944e-38, %v417_v58 }
 0x115   :  { %v3948_v6 = vpop.eup %3947  ;;  %v4947_v11 = vmul.f32 0.70710677, %v4941_v53  ;;  %v301_v26 = vmul.f32 %v4434_v31, %v4934_v61  ;;  %v1509_v59 = vmul.f32 %v1503_v21, %v4913_v9  ;;  %vm1365_vm12 = vcmp.ge.f32.partialorder %v4807_v40, 0.0 }
 0x116   :  { %v549_v20 = vadd.f32 1.0, %v543_v39  ;;  %v1220_v54 = vmul.f32 %v3946_v32, %v1190_v10  ;;  %v414_v8 = vsel %vm413_vm9, %v3942_v2, %v410_v27  ;;  %v1096_v57 = vmul.f32 %v3948_v6, %v4915_v5 }
 0x117   :  { %v4953_v1 = vsel %vm416_vm11, %v418_v52, %v414_v8  ;;  %v1104_v7 = vand.u32 2147483647, %v4915_v5  ;;  %v290_v50 = vmul.f32 %v4424_v29, %v4645_v25  ;;  %v1515_v31 = vadd.f32 -0.28449672, %v1509_v59  ;;  %v3950_v30 = vpop.eup %3949 }
 0x118   :  { %v555_v48 = vmul.f32 %v549_v20, %v4821_v3  ;;  %v1226_v35 = vsub.f32 1.0, %v1220_v54  ;;  %v454_v18 = vmul.f32 1.0614054, %v4953_v1  ;;  %v1097_v33 = vsub.f32 1.0, %v1096_v57 }
 0x119   :  { %v1106_v2 = vand.u32 2147483648, %v4915_v5  ;;  %v4963_v49 = vand.u32 2147483647, %v4947_v11  ;;  %v307_v32 = vadd.f32 %v301_v26, %v290_v50  ;;  %v1521_v29 = vmul.f32 %v1515_v31, %v4913_v9 }
 0x11a   :  { %3734 = vmatmul.msk.f32.gmra.mxu2 %vm563_vm10, %v555_v48  ;;  %v1232_v58 = vmul.f32 %v1226_v35, %v4903_v12  ;;  %v460_v13 = vadd.f32 -1.4531521, %v454_v18  ;;  %v238_v3 = vadd.s32 40, %v4407_v23  ;;  %v1098_v34 = vmul.f32 %v3948_v6, %v1097_v33 }
 0x11b   :  { %vm1101_vm13 = vweird.f32 %v3948_v6  ;;  %v1384_v24 = vmul.f32 0.3275911, %v4963_v49  ;;  %v4971_v19 = vadd.f32 %v4489_v47, %v307_v32  ;;  %v1527_v39 = vadd.f32 0.2548296, %v1521_v29 }
 0x11c   :  { %v1238_v55 = vadd.f32 1.0, %v1232_v58  ;;  %v466_v10 = vmul.f32 %v460_v13, %v4953_v1  ;;  %v1197_v21 = vsub.f32 0.0, %v4907_v51  ;;  %v1099_v27 = vadd.f32 %v3948_v6, %v1098_v34 }
 0x11d   :  { %vm1100_vm14 = vweird.f32 %v4915_v5  ;;  %vm1105_vm15 = vcmp.eq.f32.partialorder %v1104_v7, 8.507059e+37  ;;  %v4976_v12 = vadd.f32 1.0, %v1384_v24  ;;  %v1533_v26 = vmul.f32 %v1527_v39, %v4913_v9 }
 0x11e   :  { %v1244_v52 = vmul.f32 %v1238_v55, %v4863_v0  ;;  %v472_v20 = vadd.f32 1.4214138, %v466_v10  ;;  %vm1102_vm0 = vmor %vm1100_vm14, %vm1101_vm13  ;;  %v1107_v47 = vor.u32 1.1754944e-38, %v1106_v2  ;;  %v4982_v59 = vmul.f32 0.70710677, %v4971_v19 }
 0x11f   :  { %v1103_v54 = vsel %vm1102_vm0, %v3948_v6, %v1099_v27  ;;  %3951 = vrcp.f32 %v4976_v12  ;;  %v4984_v8 = vadd.s32 4294967272, %v238_v3  ;;  %v1563_v5 = vmul.f32 %v3950_v30, %v1533_v26 }
 0x120   :  { %3760 = vmatmul.msk.f32.gmra.mxu0 %vm563_vm10, %v1244_v52  ;;  %v478_v57 = vmul.f32 %v472_v20, %v4953_v1  ;;  %v4988_v7 = vsel %vm1105_vm15, %v1107_v47, %v1103_v54  ;;  %v7134_v9 = vrot.slane %v4405_v22, 1  ;;  %v1371_v50 = vsel %vm1365_vm12, 1.0, %v7129_v56 }
 0x121   :  { %7133 = vst [vmem:[#allocation13_spill] sm:$0xff] %v4984_v8  ;;  %v1143_v0 = vmul.f32 1.0614054, %v4988_v7  ;;  %v1569_v48 = vsub.f32 1.0, %v1563_v5  ;;  %3953 = vpow2.f32 %v4938_v44  ;;  %v1203_v18 = vmul.f32 %v1197_v21, %v4907_v51  ;;  %v4139_v51 = vld [vmem:[%s7081_s6] ss:$0 sm:$0xff] }
 0x122   :  { %v268_v6 = vsel %vm262_vm4, %v261_v14, %v7134_v9  ;;  %v484_v35 = vadd.f32 -0.28449672, %v478_v57  ;;  %v5003_v30 = vand.u32 2147483647, %v4982_v59  ;;  %vm274_vm1 = vcmp.lt.s32.totalorder %v4984_v8, 23 }
 0x123   :  { %v1149_v31 = vadd.f32 -1.4531521, %v1143_v0  ;;  %v1353_v33 = vmul.f32 0.5, %v4791_v46  ;;  %v1575_v2 = vmul.f32 %v1569_v48, %v1371_v50  ;;  %v5008_v32 = vsel %vm274_vm1, %v268_v6, 0.0  ;;  %v4140_v46 = vld [vmem:[%s7081_s6 + $0x4] ss:$0 sm:$0xff] }
 0x124   :  { %v490_v14 = vmul.f32 %v484_v35, %v4953_v1  ;;  %v353_v44 = vmul.f32 0.3275911, %v5003_v30  ;;  %v291_v29 = vmul.f32 %v4139_v51, %v4779_v36  ;;  %v302_v13 = vmul.f32 %v4140_v46, %v5008_v32  ;;  %v5039_v50 = vld [vmem:[%s7081_s6 + $0x6] ss:$0 sm:$0xff] }
 0x125   :  { %v3952_v40 = vpop.eup %3951  ;;  %v1155_v58 = vmul.f32 %v1149_v31, %v4988_v7  ;;  %v1581_v3 = vadd.f32 1.0, %v1575_v2  ;;  %vm334_vm4 = vcmp.ge.f32.partialorder %v4867_v60, 0.0  ;;  %v1212_v39 = vmul.f32 1.442695, %v1203_v18  ;;  %v5047_v18 = vld [vmem:[%s7081_s6 + $0x2] ss:$0 sm:$0xff] }
 0x126   :  { %v496_v34 = vadd.f32 0.2548296, %v490_v14  ;;  %v1439_v24 = vmul.f32 %v3952_v40, %v4976_v12  ;;  %v5022_v10 = vadd.f32 1.0, %v353_v44  ;;  %v308_v21 = vadd.f32 %v302_v13, %v291_v29 }
 0x127   :  { %v1161_v55 = vadd.f32 1.4214138, %v1155_v58  ;;  %v3954_v27 = vpop.eup %3953  ;;  %v1587_v52 = vmul.f32 %v1581_v3, %v1353_v33  ;;  %v340_v47 = vsel %vm334_vm4, 1.0, %v7129_v56  ;;  %v1449_v5 = vand.u32 2147483648, %v4976_v12 }
 0x128   :  { %v502_v26 = vmul.f32 %v496_v34, %v4953_v1  ;;  %v1440_v20 = vsub.f32 1.0, %v1439_v24  ;;  %3955 = vrcp.f32 %v5022_v10  ;;  %vm1444_vm2 = vweird.f32 %v3952_v40  ;;  %v4141_v1 = vld [vmem:[%s7082_s7] ss:$0 sm:$0xff] }
 0x129   :  { %v1167_v54 = vmul.f32 %v1161_v55, %v4988_v7  ;;  %3773 = vmatmul.msk.f32.gmra.mxu1 %vm563_vm10, %v1587_v52  ;;  %v1447_v0 = vand.u32 2147483647, %v4976_v12  ;;  %3957 = vpow2.f32 %v1212_v39  ;;  %v5034_v6 = vadd.f32 %v4141_v1, %v308_v21 }
 0x12a   :  { %v532_v60 = vmul.f32 %v3954_v27, %v502_v26  ;;  %v1441_v57 = vmul.f32 %v3952_v40, %v1440_v20  ;;  %v989_v48 = vmul.f32 %v5039_v50, %v4934_v61  ;;  %vm1443_vm3 = vweird.f32 %v4976_v12 }
 0x12b   :  { %v1173_v9 = vadd.f32 -0.28449672, %v1167_v54  ;;  %v978_v33 = vmul.f32 %v5047_v18, %v4645_v25  ;;  %vm1445_vm5 = vmor %vm1443_vm3, %vm1444_vm2  ;;  %v1450_v14 = vor.u32 1.1754944e-38, %v1449_v5  ;;  %v1540_v58 = vsub.f32 0.0, %v4963_v49  ;;  %v5072_v5 = vld [vmem:[%s7082_s7 + $0x2] ss:$0 sm:$0xff] }
 0x12c   :  { %v538_v35 = vsub.f32 1.0, %v532_v60  ;;  %v1442_v31 = vadd.f32 %v3952_v40, %v1441_v57  ;;  %v5054_v44 = vmul.f32 0.70710677, %v5034_v6  ;;  %vm1448_vm6 = vcmp.eq.f32.partialorder %v1447_v0, 8.507059e+37 }
 0x12d   :  { %v1179_v2 = vmul.f32 %v1173_v9, %v4988_v7  ;;  %v995_v12 = vadd.f32 %v989_v48, %v978_v33  ;;  %v322_v13 = vmul.f32 0.5, %v4850_v42  ;;  %vm1023_vm7 = vcmp.ge.f32.partialorder %v4893_v43, 0.0 }
 0x12e   :  { %v544_v51 = vmul.f32 %v538_v35, %v340_v47  ;;  %v1446_v29 = vsel %vm1445_vm5, %v3952_v40, %v1442_v31  ;;  %v3956_v46 = vpop.eup %3955  ;;  %v5060_v24 = vand.u32 2147483647, %v5054_v44  ;;  %v1546_v52 = vmul.f32 %v1540_v58, %v4963_v49  ;;  %v5083_v49 = vld [vmem:[%s7081_s6 + $0x7] ss:$0 sm:$0xff] }
 0x12f   :  { %v1185_v3 = vadd.f32 0.2548296, %v1179_v2  ;;  %v5057_v34 = vsel %vm1448_vm6, %v1450_v14, %v1446_v29  ;;  %v422_v21 = vmul.f32 %v3956_v46, %v5022_v10  ;;  %v3958_v27 = vpop.eup %3957  ;;  %v430_v42 = vand.u32 2147483647, %v5022_v10  ;;  %v5099_v2 = vld [vmem:[%s7081_s6 + $0x3] ss:$0 sm:$0xff] }
 0x130   :  { %v550_v55 = vadd.f32 1.0, %v544_v51  ;;  %v1486_v39 = vmul.f32 1.0614054, %v5057_v34  ;;  %v354_v26 = vmul.f32 0.3275911, %v5060_v24  ;;  %v5075_v60 = vadd.f32 %v5072_v5, %v995_v12 }
 0x131   :  { %v1191_v40 = vmul.f32 %v1185_v3, %v4988_v7  ;;  %v423_v54 = vsub.f32 1.0, %v422_v21  ;;  %v432_v7 = vand.u32 2147483648, %v5022_v10  ;;  %v1332_v9 = vmul.f32 %v5083_v49, %v4934_v61 }
 0x132   :  { %v556_v20 = vmul.f32 %v550_v55, %v322_v13  ;;  %v1492_v47 = vadd.f32 -1.4531521, %v1486_v39  ;;  %v5078_v0 = vadd.f32 1.0, %v354_v26  ;;  %vm427_vm8 = vweird.f32 %v3956_v46 }
 0x133   :  { %v1221_v57 = vmul.f32 %v3958_v27, %v1191_v40  ;;  %v424_v48 = vmul.f32 %v3956_v46, %v423_v54  ;;  %v5090_v35 = vmul.f32 0.70710677, %v5075_v60  ;;  %v1029_v31 = vsel %vm1023_vm7, 1.0, %v7129_v56 }
 0x134   :  { %3735 = vmatmul.msk.f32.gmra.mxu2 %vm563_vm10, %v556_v20  ;;  %v1498_v1 = vmul.f32 %v1492_v47, %v5057_v34  ;;  %3959 = vrcp.f32 %v5078_v0  ;;  %v1321_v14 = vmul.f32 %v5099_v2, %v4645_v25  ;;  %v1555_v51 = vmul.f32 1.442695, %v1546_v52 }
 0x135   :  { %v1227_v33 = vsub.f32 1.0, %v1221_v57  ;;  %v425_v29 = vadd.f32 %v3956_v46, %v424_v48  ;;  %vm426_vm9 = vweird.f32 %v5022_v10  ;;  %v433_v43 = vor.u32 1.1754944e-38, %v432_v7 }
 0x136   :  { %v1504_v58 = vadd.f32 1.4214138, %v1498_v1  ;;  %vm428_vm11 = vmor %vm426_vm9, %vm427_vm8  ;;  %v5105_v13 = vand.u32 2147483647, %v5090_v35  ;;  %v1338_v3 = vadd.f32 %v1332_v9, %v1321_v14  ;;  %v1011_v55 = vmul.f32 0.5, %v4879_v37 }
 0x137   :  { %v1233_v12 = vmul.f32 %v1227_v33, %v1029_v31  ;;  %v429_v21 = vsel %vm428_vm11, %v3956_v46, %v425_v29  ;;  %vm431_vm12 = vcmp.eq.f32.partialorder %v430_v42, 8.507059e+37  ;;  %v509_v52 = vsub.f32 0.0, %v5003_v30  ;;  %v5120_v46 = vld [vmem:[%s7082_s7 + $0x3] ss:$0 sm:$0xff] }
 0x138   :  { %v1510_v39 = vmul.f32 %v1504_v58, %v5057_v34  ;;  %v5109_v40 = vsel %vm431_vm12, %v433_v43, %v429_v21  ;;  %v1042_v10 = vmul.f32 0.3275911, %v5105_v13  ;;  %vm1366_vm13 = vcmp.ge.f32.partialorder %v4947_v11, 0.0 }
 0x139   :  { %v1239_v27 = vadd.f32 1.0, %v1233_v12  ;;  %v455_v20 = vmul.f32 1.0614054, %v5109_v40  ;;  %3961 = vpow2.f32 %v1555_v51  ;;  %v5123_v42 = vadd.f32 %v5120_v46, %v1338_v3 }
 0x13a   :  { %v1516_v26 = vadd.f32 -0.28449672, %v1510_v39  ;;  %v3960_v47 = vpop.eup %3959  ;;  %v5115_v37 = vadd.f32 1.0, %v1042_v10  ;;  %v1354_v1 = vmul.f32 0.5, %v4941_v53  ;;  %v515_v48 = vmul.f32 %v509_v52, %v5003_v30 }
 0x13b   :  { %v1245_v54 = vmul.f32 %v1239_v27, %v1011_v55  ;;  %v461_v7 = vadd.f32 -1.4531521, %v455_v20  ;;  %v437_v9 = vmul.f32 %v3960_v47, %v5078_v0  ;;  %v1372_v31 = vsel %vm1366_vm13, 1.0, %v7129_v56 }
 0x13c   :  { %v1522_v57 = vmul.f32 %v1516_v26, %v5057_v34  ;;  %3963 = vrcp.f32 %v5115_v37  ;;  %vm335_vm14 = vcmp.ge.f32.partialorder %v4982_v59, 0.0  ;;  %v445_v51 = vand.u32 2147483647, %v5078_v0  ;;  %v5167_v59 = vld [vmem:[%s7081_s6 + $0x1] ss:$0 sm:$0xff] }
 0x13d   :  { %3761 = vmatmul.msk.f32.gmra.mxu0 %vm563_vm10, %v1245_v54  ;;  %v467_v14 = vmul.f32 %v461_v7, %v5109_v40  ;;  %v438_v58 = vsub.f32 1.0, %v437_v9  ;;  %v447_v29 = vand.u32 2147483648, %v5078_v0  ;;  %v5139_v53 = vmul.f32 0.70710677, %v5123_v42 }
 0x13e   :  { %v1528_v33 = vadd.f32 0.2548296, %v1522_v57  ;;  %vm442_vm15 = vweird.f32 %v3960_v47  ;;  %v5143_v3 = vmul.f32 0.5, %v4971_v19  ;;  %v525_v55 = vmul.f32 1.442695, %v515_v48 }
 0x13f   :  { %v473_v12 = vadd.f32 1.4214138, %v467_v14  ;;  %v439_v43 = vmul.f32 %v3960_v47, %v438_v58  ;;  %v3962_v11 = vpop.eup %3961  ;;  %v510_v39 = vsub.f32 0.0, %v5060_v24  ;;  %v5147_v21 = vand.u32 2147483647, %v5139_v53 }
 0x140   :  { %v1534_v30 = vmul.f32 %v1528_v33, %v5057_v34  ;;  %vm441_vm0 = vweird.f32 %v5078_v0  ;;  %v3744_v34 = vld [vmem:[%s7083_s8 + $0x38] sm:$0xff]  ;;  %v341_v19 = vsel %vm335_vm14, 1.0, %v7129_v56  ;;  %vm446_vm4 = vcmp.eq.f32.partialorder %v445_v51, 8.507059e+37  ;;  %v5172_v58 = vld [vmem:[%s7081_s6 + $0x5] ss:$0 sm:$0xff] }
 0x141   :  { %v479_v52 = vmul.f32 %v473_v12, %v5109_v40  ;;  %v440_v10 = vadd.f32 %v3960_v47, %v439_v43  ;;  %vm443_vm1 = vmor %vm441_vm0, %vm442_vm15  ;;  %v448_v20 = vor.u32 1.1754944e-38, %v447_v29  ;;  %940 = vmatpush.msrb.mxu3 %v3744_v34  ;;  %v1385_v54 = vmul.f32 0.3275911, %v5147_v21 }
 0x142   :  { %v1564_v27 = vmul.f32 %v3962_v11, %v1534_v30  ;;  %v3964_v26 = vpop.eup %3963  ;;  %3965 = vpow2.f32 %v525_v55  ;;  %v516_v33 = vmul.f32 %v510_v39, %v5060_v24  ;;  %v1119_v24 = vand.u32 2147483647, %v5115_v37 }
 0x143   :  { %v485_v7 = vadd.f32 -0.28449672, %v479_v52  ;;  %v444_v9 = vsel %vm443_vm1, %v3960_v47, %v440_v10  ;;  %v1111_v0 = vmul.f32 %v3964_v26, %v5115_v37  ;;  %v5162_v14 = vadd.f32 1.0, %v1385_v54  ;;  %v5188_v10 = vld [vmem:[%s7082_s7 + $0x1] ss:$0 sm:$0xff] }
 0x144   :  { %v1570_v57 = vsub.f32 1.0, %v1564_v27  ;;  %v5159_v48 = vsel %vm446_vm4, %v448_v20, %v444_v9  ;;  %vm1116_vm2 = vweird.f32 %v3964_v26  ;;  %v1121_v12 = vand.u32 2147483648, %v5115_v37 }
 0x145   :  { %v491_v51 = vmul.f32 %v485_v7, %v5109_v40  ;;  %v456_v29 = vmul.f32 1.0614054, %v5159_v48  ;;  %v1112_v30 = vsub.f32 1.0, %v1111_v0  ;;  %3967 = vrcp.f32 %v5162_v14 }
 0x146   :  { %v1576_v47 = vmul.f32 %v1570_v57, %v1372_v31  ;;  %vm1115_vm3 = vweird.f32 %v5115_v37  ;;  %v1198_v31 = vsub.f32 0.0, %v5105_v13  ;;  %v631_v27 = vmul.f32 %v5167_v59, %v4405_v22 }
 0x147   :  { %v497_v11 = vadd.f32 0.2548296, %v491_v51  ;;  %v462_v55 = vadd.f32 -1.4531521, %v456_v29  ;;  %v1113_v39 = vmul.f32 %v3964_v26, %v1112_v30  ;;  %v642_v52 = vmul.f32 %v5172_v58, %v4482_v45  ;;  %vm1117_vm5 = vmor %vm1115_vm3, %vm1116_vm2 }
 0x148   :  { %v1582_v43 = vadd.f32 1.0, %v1576_v47  ;;  %v3966_v37 = vpop.eup %3965  ;;  %v5193_v7 = vmul.f32 0.5, %v5034_v6  ;;  %v527_v9 = vmul.f32 1.442695, %v516_v33  ;;  %v1122_v0 = vor.u32 1.1754944e-38, %v1121_v12 }
 0x149   :  { %v503_v20 = vmul.f32 %v497_v11, %v5109_v40  ;;  %v468_v54 = vmul.f32 %v462_v55, %v5159_v48  ;;  %v1114_v57 = vadd.f32 %v3964_v26, %v1113_v39  ;;  %v648_v45 = vadd.f32 %v642_v52, %v631_v27 }
 0x14a   :  { %v1588_v34 = vmul.f32 %v1582_v43, %v1354_v1  ;;  %vm1120_vm6 = vcmp.eq.f32.partialorder %v1119_v24, 8.507059e+37  ;;  %vm336_vm7 = vcmp.ge.f32.partialorder %v5054_v44, 0.0  ;;  %v1204_v30 = vmul.f32 %v1198_v31, %v5105_v13 }
 0x14b   :  { %v533_v47 = vmul.f32 %v3966_v37, %v503_v20  ;;  %v474_v51 = vadd.f32 1.4214138, %v468_v54  ;;  %v1118_v29 = vsel %vm1117_vm5, %v3964_v26, %v1114_v57  ;;  %v3968_v1 = vpop.eup %3967  ;;  %v5202_v6 = vadd.f32 %v5188_v10, %v648_v45 }
 0x14c   :  { %3774 = vmatmul.msk.f32.gmra.mxu1 %vm563_vm10, %v1588_v34  ;;  %v5198_v40 = vsel %vm1120_vm6, %v1122_v0, %v1118_v29  ;;  %v1454_v11 = vmul.f32 %v3968_v1, %v5162_v14  ;;  %3969 = vpow2.f32 %v527_v9  ;;  %v1462_v26 = vand.u32 2147483647, %v5162_v14 }
 0x14d   :  { %v539_v33 = vsub.f32 1.0, %v533_v47  ;;  %v480_v12 = vmul.f32 %v474_v51, %v5159_v48  ;;  %v1144_v43 = vmul.f32 1.0614054, %v5198_v40  ;;  %v1541_v24 = vsub.f32 0.0, %v5147_v21 }
 0x14e   :  { %v5210_v55 = vmul.f32 0.70710677, %v5202_v6  ;;  %v1455_v27 = vsub.f32 1.0, %v1454_v11  ;;  %v1214_v52 = vmul.f32 1.442695, %v1204_v30  ;;  %vm1459_vm8 = vweird.f32 %v3968_v1 }
 0x14f   :  { %v545_v39 = vmul.f32 %v539_v33, %v341_v19  ;;  %v486_v13 = vadd.f32 -0.28449672, %v480_v12  ;;  %v1150_v31 = vadd.f32 -1.4531521, %v1144_v43  ;;  %v1464_v34 = vand.u32 2147483648, %v5162_v14  ;;  %v3743_v33 = vld [vmem:[%s7083_s8 + $0x30] sm:$0xff] }
 0x150   :  { %v5214_v20 = vand.u32 2147483647, %v5210_v55  ;;  %v1456_v9 = vmul.f32 %v3968_v1, %v1455_v27  ;;  %vm1458_vm9 = vweird.f32 %v5162_v14  ;;  %vm5219_vm11 = vcmp.eq.f32.partialorder %v1462_v26, 8.507059e+37  ;;  %v3742_v14 = vld [vmem:[%s7083_s8 + $0x28] sm:$0xff]  ;;  %941 = vmatpush.msrb.mxu3 %v3743_v33 }
 0x151   :  { %v551_v54 = vadd.f32 1.0, %v545_v39  ;;  %v492_v57 = vmul.f32 %v486_v13, %v5159_v48  ;;  %v1156_v37 = vmul.f32 %v1150_v31, %v5198_v40  ;;  %v1547_v0 = vmul.f32 %v1541_v24, %v5147_v21  ;;  %vm1460_vm12 = vmor %vm1458_vm9, %vm1459_vm8  ;;  %v3741_v13 = vld [vmem:[%s7083_s8 + $0x20] sm:$0xff] }
 0x152   :  { %v695_v45 = vmul.f32 0.3275911, %v5214_v20  ;;  %v1457_v30 = vadd.f32 %v3968_v1, %v1456_v9  ;;  %v3970_v12 = vpop.eup %3969  ;;  %v1465_v43 = vor.u32 1.1754944e-38, %v1464_v34  ;;  %v643_v11 = vmul.f32 %v5172_v58, %v4543_v15  ;;  %942 = vmatpush.msrb.mxu3 %v3742_v14 }
 0x153   :  { %v557_v47 = vmul.f32 %v551_v54, %v5143_v3  ;;  %v498_v51 = vadd.f32 0.2548296, %v492_v57  ;;  %v1162_v29 = vadd.f32 1.4214138, %v1156_v37  ;;  %v990_v3 = vmul.f32 %v5039_v50, %v5008_v32 }
 0x154   :  { %v5233_v21 = vadd.f32 1.0, %v695_v45  ;;  %v1461_v39 = vsel %vm1460_vm12, %v3968_v1, %v1457_v30  ;;  %v1333_v31 = vmul.f32 %v5083_v49, %v5008_v32  ;;  %v979_v15 = vmul.f32 %v5047_v18, %v4779_v36  ;;  %943 = vmatpush.msrb.mxu3 %v3741_v13 }
 0x155   :  { %3736 = vmatmul.msk.f32.gmra.mxu2 %vm563_vm10, %v557_v47  ;;  %v504_v26 = vmul.f32 %v498_v51, %v5159_v48  ;;  %v1168_v24 = vmul.f32 %v1162_v29, %v5198_v40  ;;  %v5249_v50 = vsel %vm5219_vm11, %v1465_v43, %v1461_v39  ;;  %v1322_v48 = vmul.f32 %v5099_v2, %v4779_v36 }
 0x156   :  { %3971 = vrcp.f32 %v5233_v21  ;;  %v342_v1 = vsel %vm336_vm7, 1.0, %v7129_v56  ;;  %v1487_v49 = vmul.f32 1.0614054, %v5249_v50  ;;  %v996_v54 = vadd.f32 %v990_v3, %v979_v15 }
 0x157   :  { %v534_v27 = vmul.f32 %v3970_v12, %v504_v26  ;;  %v1174_v34 = vadd.f32 -0.28449672, %v1168_v24  ;;  %3973 = vpow2.f32 %v1214_v52  ;;  %v1339_v57 = vadd.f32 %v1333_v31, %v1322_v48 }
 0x158   :  { %v632_v37 = vmul.f32 %v5167_v59, %v4418_v28  ;;  %vm1024_vm13 = vcmp.ge.f32.partialorder %v5090_v35, 0.0  ;;  %v1493_v2 = vadd.f32 -1.4531521, %v1487_v49  ;;  %v1557_v19 = vmul.f32 1.442695, %v1547_v0 }
 0x159   :  { %v540_v9 = vsub.f32 1.0, %v534_v27  ;;  %v1180_v18 = vmul.f32 %v1174_v34, %v5198_v40  ;;  %v5265_v44 = vadd.f32 %v5072_v5, %v996_v54  ;;  %v5268_v45 = vadd.f32 %v5120_v46, %v1339_v57 }
 0x15a   :  { %v649_v52 = vadd.f32 %v643_v11, %v632_v37  ;;  %v1012_v51 = vmul.f32 0.5, %v5075_v60  ;;  %v1499_v30 = vmul.f32 %v1493_v2, %v5249_v50  ;;  %v1030_v35 = vsel %vm1024_vm13, 1.0, %v7129_v56 }
 0x15b   :  { %v546_v47 = vmul.f32 %v540_v9, %v342_v1  ;;  %v1186_v29 = vadd.f32 0.2548296, %v1180_v18  ;;  %v5274_v14 = vmul.f32 0.5, %v5123_v42  ;;  %v5277_v0 = vmul.f32 0.70710677, %v5265_v44 }
 0x15c   :  { %v3972_v33 = vpop.eup %3971  ;;  %v5280_v5 = vmul.f32 0.70710677, %v5268_v45  ;;  %v1505_v43 = vadd.f32 1.4214138, %v1499_v30  ;;  %3975 = vpow2.f32 %v1557_v19  ;;  %v851_v11 = vsub.f32 0.0, %v5214_v20 }
 0x15d   :  { %v552_v46 = vadd.f32 1.0, %v546_v47  ;;  %v1192_v12 = vmul.f32 %v1186_v29, %v5198_v40  ;;  %v708_v60 = vmul.f32 %v3972_v33, %v5233_v21  ;;  %v3974_v3 = vpop.eup %3973  ;;  %v1037_v26 = vand.u32 2147483647, %v5277_v0 }
 0x15e   :  { %v5287_v42 = vadd.f32 %v5188_v10, %v649_v52  ;;  %v1511_v13 = vmul.f32 %v1505_v43, %v5249_v50  ;;  %vm713_vm14 = vweird.f32 %v3972_v33  ;;  %v716_v40 = vand.u32 2147483647, %v5233_v21 }
 0x15f   :  { %v558_v24 = vmul.f32 %v552_v46, %v5193_v7  ;;  %v1222_v39 = vmul.f32 %v3974_v3, %v1192_v12  ;;  %v709_v31 = vsub.f32 1.0, %v708_v60  ;;  %v718_v15 = vand.u32 2147483648, %v5233_v21 }
 0x160   :  { %v1043_v48 = vmul.f32 0.3275911, %v1037_v26  ;;  %v1517_v27 = vadd.f32 -0.28449672, %v1511_v13  ;;  %v5295_v49 = vand.u32 2147483647, %v5280_v5  ;;  %vm712_vm15 = vweird.f32 %v5233_v21 }
 0x161   :  { %3737 = vmatmul.msk.f32.vlgmr.msra.gmra.mxu3 %vm563_vm10, %v558_v24  ;;  %v1228_v1 = vsub.f32 1.0, %v1222_v39  ;;  %v710_v34 = vmul.f32 %v3972_v33, %v709_v31  ;;  %v857_v7 = vmul.f32 %v851_v11, %v5214_v20  ;;  %v5302_v57 = vmul.f32 0.70710677, %v5287_v42  ;;  %vm714_vm1 = vmor %vm712_vm15, %vm713_vm14 }
 0x162   :  { %v5299_v54 = vadd.f32 1.0, %v1043_v48  ;;  %v1523_v9 = vmul.f32 %v1517_v27, %v5249_v50  ;;  %v1386_v2 = vmul.f32 0.3275911, %v5295_v49  ;;  %v3976_v19 = vpop.eup %3975  ;;  %vm1367_vm0 = vcmp.ge.f32.partialorder %v5139_v53, 0.0 }
 0x163   :  { %v1234_v37 = vmul.f32 %v1228_v1, %v1030_v35  ;;  %v711_v18 = vadd.f32 %v3972_v33, %v710_v34  ;;  %vm717_vm4 = vcmp.eq.f32.partialorder %v716_v40, 8.507059e+37  ;;  %v719_v21 = vor.u32 1.1754944e-38, %v718_v15 }
 0x164   :  { %3977 = vrcp.f32 %v5299_v54  ;;  %v1529_v52 = vadd.f32 0.2548296, %v1523_v9  ;;  %v1199_v29 = vsub.f32 0.0, %v1037_v26  ;;  %v863_v35 = vmul.f32 1.442695, %v857_v7 }
 0x165   :  { %v1240_v20 = vadd.f32 1.0, %v1234_v37  ;;  %v715_v47 = vsel %vm714_vm1, %v3972_v33, %v711_v18  ;;  %v5311_v46 = vadd.f32 1.0, %v1386_v2  ;;  %v5314_v12 = vand.u32 2147483647, %v5302_v57 }
 0x166   :  { %v5309_v30 = vsel %vm717_vm4, %v719_v21, %v715_v47  ;;  %v1535_v60 = vmul.f32 %v1529_v52, %v5249_v50  ;;  %vm677_vm2 = vcmp.ge.f32.partialorder %v5210_v55, 0.0  ;;  %v1373_v33 = vsel %vm1367_vm0, 1.0, %v7129_v56 }
 0x167   :  { %v1246_v43 = vmul.f32 %v1240_v20, %v1012_v51  ;;  %v797_v3 = vmul.f32 1.0614054, %v5309_v30  ;;  %3979 = vrcp.f32 %v5311_v46  ;;  %v633_v11 = vmul.f32 %v5167_v59, %v4525_v63 }
 0x168   :  { %v634_v24 = vmul.f32 %v5167_v59, %v4558_v38  ;;  %v1565_v51 = vmul.f32 %v3976_v19, %v1535_v60  ;;  %v5329_v50 = vmul.f32 0.5, %v5202_v6  ;;  %v1205_v39 = vmul.f32 %v1199_v29, %v1037_v26 }
 0x169   :  { %3762 = vmatmul.msk.f32.gmra.mxu0 %vm563_vm10, %v1246_v43  ;;  %v803_v55 = vadd.f32 -1.4531521, %v797_v3  ;;  %v5332_v53 = vsel %vm677_vm2, 1.0, %v7129_v56  ;;  %3981 = vpow2.f32 %v863_v35  ;;  %v696_v31 = vmul.f32 0.3275911, %v5314_v12 }
 0x16a   :  { %v3978_v13 = vpop.eup %3977  ;;  %v644_v40 = vmul.f32 %v5172_v58, %v4692_v4  ;;  %v1571_v15 = vsub.f32 1.0, %v1565_v51  ;;  %v5339_v1 = vmul.f32 0.5, %v5265_v44  ;;  %vm1130_vm3 = vweird.f32 %v5299_v54 }
 0x16b   :  { %v809_v48 = vmul.f32 %v803_v55, %v5309_v30  ;;  %v1126_v6 = vmul.f32 %v3978_v13, %v5299_v54  ;;  %v1134_v26 = vand.u32 2147483647, %v5299_v54  ;;  %v1136_v27 = vand.u32 2147483648, %v5299_v54 }
 0x16c   :  { %v5345_v34 = vadd.f32 1.0, %v696_v31  ;;  %v1577_v7 = vmul.f32 %v1571_v15, %v1373_v33  ;;  %v5347_v4 = vmul.f32 1.442695, %v1205_v39  ;;  %vm1131_vm5 = vweird.f32 %v3978_v13 }
 0x16d   :  { %v815_v37 = vadd.f32 1.4214138, %v809_v48  ;;  %v1127_v9 = vsub.f32 1.0, %v1126_v6  ;;  %v3980_v18 = vpop.eup %3979  ;;  %v1477_v44 = vand.u32 2147483647, %v5311_v46  ;;  %v650_v2 = vadd.f32 %v644_v40, %v633_v11  ;;  %vm1132_vm7 = vmor %vm1130_vm3, %vm1131_vm5 }
 0x16e   :  { %3983 = vrcp.f32 %v5345_v34  ;;  %v1583_v19 = vadd.f32 1.0, %v1577_v7  ;;  %v1469_v52 = vmul.f32 %v3980_v18, %v5311_v46  ;;  %vm5353_vm6 = vcmp.eq.f32.partialorder %v1134_v26, 8.507059e+37 }
 0x16f   :  { %v821_v21 = vmul.f32 %v815_v37, %v5309_v30  ;;  %v1128_v20 = vmul.f32 %v3978_v13, %v1127_v9  ;;  %v3982_v47 = vpop.eup %3981  ;;  %v1137_v35 = vor.u32 1.1754944e-38, %v1136_v27  ;;  %v1479_v43 = vand.u32 2147483648, %v5311_v46 }
 0x170   :  { %v645_v60 = vmul.f32 %v5172_v58, %v4818_v41  ;;  %v1589_v3 = vmul.f32 %v1583_v19, %v5274_v14  ;;  %v1470_v51 = vsub.f32 1.0, %v1469_v52  ;;  %vm1473_vm8 = vweird.f32 %v5311_v46 }
 0x171   :  { %v827_v33 = vadd.f32 -0.28449672, %v821_v21  ;;  %v1129_v11 = vadd.f32 %v3978_v13, %v1128_v20  ;;  %vm5365_vm9 = vcmp.eq.f32.partialorder %v1477_v44, 8.507059e+37  ;;  %v1542_v39 = vsub.f32 0.0, %v5295_v49 }
 0x172   :  { %v5371_v31 = vadd.f32 %v5188_v10, %v650_v2  ;;  %3775 = vmatmul.msk.f32.gmra.mxu1 %vm563_vm10, %v1589_v3  ;;  %v1471_v40 = vmul.f32 %v3980_v18, %v1470_v51  ;;  %vm1474_vm11 = vweird.f32 %v3980_v18  ;;  %v1480_v48 = vor.u32 1.1754944e-38, %v1479_v43 }
 0x173   :  { %v833_v41 = vmul.f32 %v827_v33, %v5309_v30  ;;  %v1133_v14 = vsel %vm1132_vm7, %v3978_v13, %v1129_v11  ;;  %v651_v26 = vadd.f32 %v645_v60, %v634_v24  ;;  %vm1475_vm12 = vmor %vm1473_vm8, %vm1474_vm11  ;;  %v731_v13 = vand.u32 2147483647, %v5345_v34 }
 0x174   :  { %v3984_v54 = vpop.eup %3983  ;;  %v5377_v15 = vsel %vm5353_vm6, %v1137_v35, %v1133_v14  ;;  %v5380_v6 = vmul.f32 0.70710677, %v5371_v31  ;;  %v1472_v37 = vadd.f32 %v3980_v18, %v1471_v40  ;;  %v733_v44 = vand.u32 2147483648, %v5345_v34 }
 0x175   :  { %v839_v27 = vadd.f32 0.2548296, %v833_v41  ;;  %v1145_v7 = vmul.f32 1.0614054, %v5377_v15  ;;  %v723_v9 = vmul.f32 %v3984_v54, %v5345_v34  ;;  %v852_v2 = vsub.f32 0.0, %v5314_v12 }
 0x176   :  { %v5390_v19 = vand.u32 2147483647, %v5380_v6  ;;  %v1476_v20 = vsel %vm1475_vm12, %v3980_v18, %v1472_v37  ;;  %vm728_vm13 = vweird.f32 %v3984_v54  ;;  %v5399_v35 = vadd.f32 %v5188_v10, %v651_v26 }
 0x177   :  { %v845_v24 = vmul.f32 %v839_v27, %v5309_v30  ;;  %v1151_v21 = vadd.f32 -1.4531521, %v1145_v7  ;;  %v724_v52 = vsub.f32 1.0, %v723_v9  ;;  %v5395_v29 = vsel %vm5365_vm9, %v1480_v48, %v1476_v20 }
 0x178   :  { %v697_v46 = vmul.f32 0.3275911, %v5390_v19  ;;  %v1488_v3 = vmul.f32 1.0614054, %v5395_v29  ;;  %v1548_v30 = vmul.f32 %v1542_v39, %v5295_v49  ;;  %vm727_vm14 = vweird.f32 %v5345_v34 }
 0x179   :  { %v875_v43 = vmul.f32 %v3982_v47, %v845_v24  ;;  %v1157_v60 = vmul.f32 %v1151_v21, %v5377_v15  ;;  %v725_v33 = vmul.f32 %v3984_v54, %v724_v52  ;;  %v858_v18 = vmul.f32 %v852_v2, %v5314_v12  ;;  %vm729_vm15 = vmor %vm727_vm14, %vm728_vm13 }
 0x17a   :  { %v5406_v11 = vadd.f32 1.0, %v697_v46  ;;  %v1494_v41 = vadd.f32 -1.4531521, %v1488_v3  ;;  %vm732_vm0 = vcmp.eq.f32.partialorder %v731_v13, 8.507059e+37  ;;  %v734_v47 = vor.u32 1.1754944e-38, %v733_v44 }
 0x17b   :  { %v881_v51 = vsub.f32 1.0, %v875_v43  ;;  %v1163_v55 = vadd.f32 1.4214138, %v1157_v60  ;;  %v726_v14 = vadd.f32 %v3984_v54, %v725_v33  ;;  %v5411_v40 = vmul.f32 0.70710677, %v5399_v35 }
 0x17c   :  { %3985 = vrcp.f32 %v5406_v11  ;;  %v1500_v12 = vmul.f32 %v1494_v41, %v5395_v29  ;;  %vm1025_vm1 = vcmp.ge.f32.partialorder %v5277_v0, 0.0  ;;  %v5418_v48 = vmul.f32 0.5, %v5268_v45 }
 0x17d   :  { %v887_v49 = vmul.f32 %v881_v51, %v5332_v53  ;;  %v1169_v34 = vmul.f32 %v1163_v55, %v5377_v15  ;;  %v730_v39 = vsel %vm729_vm15, %v3984_v54, %v726_v14  ;;  %v1559_v26 = vmul.f32 1.442695, %v1548_v30 }
 0x17e   :  { %v5420_v27 = vsel %vm732_vm0, %v734_v47, %v730_v39  ;;  %vm1368_vm4 = vcmp.ge.f32.partialorder %v5280_v5, 0.0  ;;  %v1506_v9 = vadd.f32 1.4214138, %v1500_v12  ;;  %3987 = vpow2.f32 %v5347_v4 }
 0x17f   :  { %v893_v7 = vadd.f32 1.0, %v887_v49  ;;  %v1175_v37 = vadd.f32 -0.28449672, %v1169_v34  ;;  %v798_v53 = vmul.f32 1.0614054, %v5420_v27  ;;  %v646_v24 = vmul.f32 %v5172_v58, %v4934_v61 }
 0x180   :  { %v865_v13 = vmul.f32 1.442695, %v858_v18  ;;  %v5426_v54 = vand.u32 2147483647, %v5411_v40  ;;  %v1512_v2 = vmul.f32 %v1506_v9, %v5395_v29  ;;  %v1031_v4 = vsel %vm1025_vm1, 1.0, %v7129_v56 }
 0x181   :  { %v899_v44 = vmul.f32 %v893_v7, %v5329_v50  ;;  %v1181_v45 = vmul.f32 %v1175_v37, %v5377_v15  ;;  %v804_v20 = vadd.f32 -1.4531521, %v798_v53  ;;  %v635_v46 = vmul.f32 %v5167_v59, %v4645_v25 }
 0x182   :  { %v3986_v21 = vpop.eup %3985  ;;  %v698_v52 = vmul.f32 0.3275911, %v5426_v54  ;;  %v1374_v43 = vsel %vm1368_vm4, 1.0, %v7129_v56  ;;  %v1518_v60 = vadd.f32 -0.28449672, %v1512_v2  ;;  %3989 = vpow2.f32 %v1559_v26 }
 0x183   :  { %3745 = vmatmul.msk.f32.vlgmr.msrb.gmra.mxu3 %vm563_vm10, %v899_v44  ;;  %v1187_v50 = vadd.f32 0.2548296, %v1181_v45  ;;  %v738_v61 = vmul.f32 %v3986_v21, %v5406_v11  ;;  %v810_v0 = vmul.f32 %v804_v20, %v5420_v27  ;;  %v652_v33 = vadd.f32 %v646_v24, %v635_v46 }
 0x184   :  { %v5445_v3 = vadd.f32 1.0, %v698_v52  ;;  %v1524_v18 = vmul.f32 %v1518_v60, %v5395_v29  ;;  %3991 = vpow2.f32 %v865_v13  ;;  %v3988_v55 = vpop.eup %3987  ;;  %v746_v5 = vand.u32 2147483647, %v5406_v11 }
 0x185   :  { %v1193_v30 = vmul.f32 %v1187_v50, %v5377_v15  ;;  %v739_v51 = vsub.f32 1.0, %v738_v61  ;;  %v816_v41 = vadd.f32 1.4214138, %v810_v0  ;;  %v748_v14 = vand.u32 2147483648, %v5406_v11 }
 0x186   :  { %3993 = vrcp.f32 %v5445_v3  ;;  %v1530_v49 = vadd.f32 0.2548296, %v1524_v18  ;;  %vm743_vm2 = vweird.f32 %v3986_v21  ;;  %v853_v15 = vsub.f32 0.0, %v5390_v19 }
 0x187   :  { %v1223_v47 = vmul.f32 %v3988_v55, %v1193_v30  ;;  %v740_v34 = vmul.f32 %v3986_v21, %v739_v51  ;;  %v822_v12 = vmul.f32 %v816_v41, %v5420_v27  ;;  %v5455_v39 = vadd.f32 %v5188_v10, %v652_v33 }
 0x188   :  { %v647_v26 = vmul.f32 %v5172_v58, %v5008_v32  ;;  %v1536_v37 = vmul.f32 %v1530_v49, %v5395_v29  ;;  %vm678_vm3 = vcmp.ge.f32.partialorder %v5302_v57, 0.0  ;;  %vm742_vm5 = vweird.f32 %v5406_v11  ;;  %v3990_v53 = vpop.eup %3989 }
 0x189   :  { %v1229_v7 = vsub.f32 1.0, %v1223_v47  ;;  %v741_v9 = vadd.f32 %v3986_v21, %v740_v34  ;;  %v828_v13 = vadd.f32 -0.28449672, %v822_v12  ;;  %vm744_vm6 = vmor %vm742_vm5, %vm743_vm2  ;;  %v749_v44 = vor.u32 1.1754944e-38, %v748_v14 }
 0x18a   :  { %v5463_v45 = vmul.f32 0.70710677, %v5455_v39  ;;  %v636_v2 = vmul.f32 %v5167_v59, %v4779_v36  ;;  %v3992_v24 = vpop.eup %3991  ;;  %v1566_v58 = vmul.f32 %v3990_v53, %v1536_v37  ;;  %vm747_vm7 = vcmp.eq.f32.partialorder %v746_v5, 8.507059e+37 }
 0x18b   :  { %v1235_v32 = vmul.f32 %v1229_v7, %v1031_v4  ;;  %v745_v20 = vsel %vm744_vm6, %v3986_v21, %v741_v9  ;;  %v834_v52 = vmul.f32 %v828_v13, %v5420_v27  ;;  %v859_v4 = vmul.f32 %v853_v15, %v5390_v19 }
 0x18c   :  { %v3994_v29 = vpop.eup %3993  ;;  %v5468_v46 = vsel %vm747_vm7, %v749_v44, %v745_v20  ;;  %v5471_v11 = vand.u32 2147483647, %v5463_v45  ;;  %v653_v50 = vadd.f32 %v647_v26, %v636_v2  ;;  %v1572_v61 = vsub.f32 1.0, %v1566_v58 }
 0x18d   :  { %v1241_v60 = vadd.f32 1.0, %v1235_v32  ;;  %v799_v0 = vmul.f32 1.0614054, %v5468_v46  ;;  %v753_v59 = vmul.f32 %v3994_v29, %v5445_v3  ;;  %v840_v33 = vadd.f32 0.2548296, %v834_v52 }
 0x18e   :  { %v761_v21 = vand.u32 2147483647, %v5445_v3  ;;  %v699_v30 = vmul.f32 0.3275911, %v5471_v11  ;;  %v1578_v51 = vmul.f32 %v1572_v61, %v1374_v43  ;;  %vm758_vm8 = vweird.f32 %v3994_v29 }
 0x18f   :  { %v1247_v18 = vmul.f32 %v1241_v60, %v5339_v1  ;;  %v805_v55 = vadd.f32 -1.4531521, %v799_v0  ;;  %v754_v41 = vsub.f32 1.0, %v753_v59  ;;  %v846_v5 = vmul.f32 %v840_v33, %v5420_v27 }
 0x190   :  { %v763_v14 = vand.u32 2147483648, %v5445_v3  ;;  %v5481_v47 = vadd.f32 1.0, %v699_v30  ;;  %v1584_v49 = vadd.f32 1.0, %v1578_v51  ;;  %v5486_v12 = vadd.f32 %v5188_v10, %v653_v50 }
 0x191   :  { %3763 = vmatmul.msk.f32.gmra.mxu0 %vm563_vm10, %v1247_v18  ;;  %v811_v19 = vmul.f32 %v805_v55, %v5468_v46  ;;  %v755_v34 = vmul.f32 %v3994_v29, %v754_v41  ;;  %v876_v1 = vmul.f32 %v3992_v24, %v846_v5  ;;  %vm757_vm9 = vweird.f32 %v5445_v3 }
 0x192   :  { %3995 = vrcp.f32 %v5481_v47  ;;  %v1590_v43 = vmul.f32 %v1584_v49, %v5418_v48  ;;  %v684_v26 = vsel %vm678_vm3, 1.0, %v7129_v56  ;;  %v867_v37 = vmul.f32 1.442695, %v859_v4  ;;  %vm759_vm11 = vmor %vm757_vm9, %vm758_vm8 }
 0x193   :  { %v817_v27 = vadd.f32 1.4214138, %v811_v19  ;;  %v756_v15 = vadd.f32 %v3994_v29, %v755_v34  ;;  %v882_v7 = vsub.f32 1.0, %v876_v1  ;;  %v764_v9 = vor.u32 1.1754944e-38, %v763_v14 }
 0x194   :  { %3776 = vmatmul.msk.f32.gmra.mxu1 %vm563_vm10, %v1590_v43  ;;  %vm762_vm12 = vcmp.eq.f32.partialorder %v761_v21, 8.507059e+37  ;;  %v5498_v48 = vmul.f32 0.70710677, %v5486_v12  ;;  %v854_v44 = vsub.f32 0.0, %v5426_v54  ;;  %v666_v32 = vmul.f32 0.5, %v5287_v42 }
 0x195   :  { %v823_v10 = vmul.f32 %v817_v27, %v5468_v46  ;;  %v760_v53 = vsel %vm759_vm11, %v3994_v29, %v756_v15  ;;  %v888_v13 = vmul.f32 %v882_v7, %v684_v26  ;;  %3997 = vpow2.f32 %v867_v37 }
 0x196   :  { %v765_v3 = vsel %vm762_vm12, %v764_v9, %v760_v53  ;;  %v5503_v20 = vand.u32 2147483647, %v5498_v48  ;;  %v860_v61 = vmul.f32 %v854_v44, %v5426_v54  ;;  %v776_v42 = vand.u32 2147483647, %v5481_v47 }
 0x197   :  { %v829_v57 = vadd.f32 -0.28449672, %v823_v10  ;;  %v800_v2 = vmul.f32 1.0614054, %v765_v3  ;;  %v894_v58 = vadd.f32 1.0, %v888_v13  ;;  %v778_v21 = vand.u32 2147483648, %v5481_v47 }
 0x198   :  { %v3996_v24 = vpop.eup %3995  ;;  %v700_v0 = vmul.f32 0.3275911, %v5503_v20  ;;  %vm679_vm14 = vcmp.ge.f32.partialorder %v5380_v6, 0.0  ;;  %v869_v54 = vmul.f32 1.442695, %v860_v61  ;;  %vm772_vm15 = vweird.f32 %v5481_v47 }
 0x199   :  { %v835_v29 = vmul.f32 %v829_v57, %v5468_v46  ;;  %v806_v52 = vadd.f32 -1.4531521, %v800_v2  ;;  %v768_v50 = vmul.f32 %v3996_v24, %v5481_v47  ;;  %v900_v60 = vmul.f32 %v894_v58, %v666_v32 }
 0x19a   :  { %v706_v30 = vadd.f32 1.0, %v700_v0  ;;  %vm773_vm13 = vweird.f32 %v3996_v24  ;;  %v779_v19 = vor.u32 1.1754944e-38, %v778_v21  ;;  %vm777_vm1 = vcmp.eq.f32.partialorder %v776_v42, 8.507059e+37 }
 0x19b   :  { %v841_v59 = vadd.f32 0.2548296, %v835_v29  ;;  %v812_v33 = vmul.f32 %v806_v52, %v765_v3  ;;  %v769_v4 = vsub.f32 1.0, %v768_v50  ;;  %3746 = vmatmul.msk.f32.gmra.mxu3 %vm563_vm10, %v900_v60  ;;  %v3998_v41 = vpop.eup %3997  ;;  %vm774_vm0 = vmor %vm772_vm15, %vm773_vm13  ;;  %v855_v15 = vsub.f32 0.0, %v5471_v11 }
 0x19c   :  { %3999 = vrcp.f32 %v706_v30  ;;  %v667_v9 = vmul.f32 0.5, %v5371_v31  ;;  %vm680_vm4 = vcmp.ge.f32.partialorder %v5411_v40, 0.0  ;;  %v791_v29 = vand.u32 2147483647, %v706_v30 }
 0x19d   :  { %v847_v18 = vmul.f32 %v841_v59, %v5468_v46  ;;  %v818_v51 = vadd.f32 1.4214138, %v812_v33  ;;  %v770_v55 = vmul.f32 %v3996_v24, %v769_v4  ;;  %v685_v46 = vsel %vm679_vm14, 1.0, %v7129_v56 }
 0x19e   :  { %4001 = vpow2.f32 %v869_v54  ;;  %v861_v44 = vmul.f32 %v855_v15, %v5471_v11  ;;  %v793_v52 = vand.u32 2147483648, %v706_v30  ;;  %vm787_vm3 = vweird.f32 %v706_v30 }
 0x19f   :  { %v877_v5 = vmul.f32 %v3998_v41, %v847_v18  ;;  %v824_v14 = vmul.f32 %v818_v51, %v765_v3  ;;  %v771_v49 = vadd.f32 %v3996_v24, %v770_v55  ;;  %v686_v11 = vsel %vm680_vm4, 1.0, %v7129_v56 }
 0x1a0   :  { %v871_v61 = vmul.f32 1.442695, %v861_v44  ;;  %vm792_vm6 = vcmp.eq.f32.partialorder %v791_v29, 8.507059e+37  ;;  %v856_v18 = vsub.f32 0.0, %v5503_v20  ;;  %v668_v51 = vmul.f32 0.5, %v5399_v35 }
 0x1a1   :  { %v883_v34 = vsub.f32 1.0, %v877_v5  ;;  %v830_v1 = vadd.f32 -0.28449672, %v824_v14  ;;  %v775_v43 = vsel %vm774_vm0, %v3996_v24, %v771_v49  ;;  %vm681_vm7 = vcmp.ge.f32.partialorder %v5463_v45, 0.0 }
 0x1a2   :  { %v780_v27 = vsel %vm777_vm1, %v779_v19, %v775_v43  ;;  %v4000_v37 = vpop.eup %3999  ;;  %4003 = vpow2.f32 %v871_v61  ;;  %v862_v49 = vmul.f32 %v856_v18, %v5503_v20  ;;  %vm682_vm8 = vcmp.ge.f32.partialorder %v5498_v48, 0.0  ;;  %v599_v48 = vpop.f32.mrf.mxu2 }
 0x1a3   :  { %v889_v6 = vmul.f32 %v883_v34, %v685_v46  ;;  %v836_v26 = vmul.f32 %v830_v1, %v765_v3  ;;  %v801_v7 = vmul.f32 1.0614054, %v780_v27  ;;  %v783_v13 = vmul.f32 %v4000_v37, %v706_v30  ;;  %v1631_v61 = vpop.f32.mrf.mxu1 }
 0x1a4   :  { %v4002_v58 = vpop.eup %4001  ;;  %vm788_vm2 = vweird.f32 %v4000_v37  ;;  %v873_v15 = vmul.f32 1.442695, %v862_v49  ;;  %v3810_v49 = vld [vmem:[%s7083_s8 + $0xd8] sm:$0xff]  ;;  %vm1669_vm9 = vcmp.lt.s32.totalorder %v4407_v23, 6 }
 0x1a5   :  { %v895_v10 = vadd.f32 1.0, %v889_v6  ;;  %v842_v47 = vadd.f32 0.2548296, %v836_v26  ;;  %v807_v53 = vadd.f32 -1.4531521, %v801_v7  ;;  %v784_v32 = vsub.f32 1.0, %v783_v13  ;;  %vm789_vm5 = vmor %vm787_vm3, %vm788_vm2  ;;  %2677 = vmatpush.msra.mxu0 %v3810_v49 }
 0x1a6   :  { %v687_v26 = vsel %vm681_vm7, 1.0, %v7129_v56  ;;  %4005 = vpow2.f32 %v873_v15  ;;  %v3795_v15 = vld [vmem:[%s7083_s8 + $0xa8] sm:$0xff] }
 0x1a7   :  { %v901_v57 = vmul.f32 %v895_v10, %v667_v9  ;;  %v848_v2 = vmul.f32 %v842_v47, %v765_v3  ;;  %v813_v24 = vmul.f32 %v807_v53, %v780_v27  ;;  %v785_v31 = vmul.f32 %v4000_v37, %v784_v32 }
 0x1a8   :  { %v794_v3 = vor.u32 1.1754944e-38, %v793_v52  ;;  %v4004_v1 = vpop.eup %4003  ;;  %v669_v9 = vmul.f32 0.5, %v5455_v39  ;;  %v5537_v39 = vld [vmem:[%s7084_s9] ss:$0 sm:$0xff] }
 0x1a9   :  { %3747 = vmatmul.msk.f32.gmra.mxu3 %vm563_vm10, %v901_v57  ;;  %v878_v50 = vmul.f32 %v4002_v58, %v848_v2  ;;  %v819_v60 = vadd.f32 1.4214138, %v813_v24  ;;  %v786_v33 = vadd.f32 %v4000_v37, %v785_v31  ;;  %v688_v57 = vsel %vm682_vm8, 1.0, %v7129_v56 }
 0x1aa   :  { %v670_v24 = vmul.f32 0.5, %v5486_v12  ;;  %v602_v31 = vpop.f32.mrf.mxu2 }
 0x1ab   :  { %v884_v0 = vsub.f32 1.0, %v878_v50  ;;  %v825_v59 = vmul.f32 %v819_v60, %v780_v27  ;;  %v790_v40 = vsel %vm789_vm5, %v4000_v37, %v786_v33  ;;  %v1288_v60 = vpop.f32.mrf.mxu0  ;;  %v621_v12 = vadd.f32 %v5537_v39, %v602_v31  ;;  %v5636_v31 = vld [vmem:[%s7081_s6 + $0x9] ss:$0 sm:$0xff] }
 0x1ac   :  { %v795_v21 = vsel %vm792_vm6, %v794_v3, %v790_v40  ;;  %v4006_v45 = vpop.eup %4005  ;;  %v1634_v40 = vpop.f32.mrf.mxu1 }
 0x1ad   :  { %v890_v4 = vmul.f32 %v884_v0, %v686_v11  ;;  %v831_v42 = vadd.f32 -0.28449672, %v825_v59  ;;  %v802_v54 = vmul.f32 1.0614054, %v795_v21  ;;  %v620_v59 = vadd.f32 %v5537_v39, %v599_v48 }
 0x1af   :  { %v896_v55 = vadd.f32 1.0, %v890_v4  ;;  %v837_v41 = vmul.f32 %v831_v42, %v780_v27  ;;  %v808_v30 = vadd.f32 -1.4531521, %v802_v54 }
 0x1b1   :  { %v902_v5 = vmul.f32 %v896_v55, %v668_v51  ;;  %v843_v14 = vadd.f32 0.2548296, %v837_v41  ;;  %v814_v34 = vmul.f32 %v808_v30, %v795_v21  ;;  %v3783_v30 = vld [vmem:[%s7083_s8 + $0x90] sm:$0xff] }
 0x1b2   :  { %v605_v51 = vpop.f32.mrf.mxu2 }
 0x1b3   :  { %3748 = vmatmul.msk.f32.gmra.mxu3 %vm563_vm10, %v902_v5  ;;  %v849_v19 = vmul.f32 %v843_v14, %v780_v27  ;;  %v820_v46 = vadd.f32 1.4214138, %v814_v34  ;;  %v1291_v3 = vpop.f32.mrf.mxu0  ;;  %v3784_v14 = vld [vmem:[%s7083_s8 + $0x98] sm:$0xff] }
 0x1b4   :  { %2004 = vmatpush.msrb.mxu2 %v3784_v14  ;;  %v3823_v34 = vld [vmem:[%s7083_s8 + $0xf8] sm:$0xff] }
 0x1b5   :  { %v879_v43 = vmul.f32 %v4004_v1, %v849_v19  ;;  %v826_v35 = vmul.f32 %v820_v46, %v795_v21  ;;  %v3796_v1 = vld [vmem:[%s7083_s8 + $0xb0] sm:$0xff]  ;;  %3012 = vmatpush.msrb.mxu1 %v3823_v34 }
 0x1b6   :  { %2005 = vmatpush.msrb.mxu2 %v3783_v30  ;;  %v3822_v46 = vld [vmem:[%s7083_s8 + $0xf0] sm:$0xff] }
 0x1b7   :  { %v885_v6 = vsub.f32 1.0, %v879_v43  ;;  %v832_v37 = vadd.f32 -0.28449672, %v826_v35  ;;  %v3809_v43 = vld [vmem:[%s7083_s8 + $0xd0] sm:$0xff]  ;;  %v3781_v35 = vld [vmem:[%s7083_s8 + $0x80] sm:$0xff]  ;;  %3013 = vmatpush.msrb.mxu1 %v3822_v46 }
 0x1b8   :  { %2678 = vmatpush.msra.mxu0 %v3809_v43 }
 0x1b9   :  { %v891_v7 = vmul.f32 %v885_v6, %v687_v26  ;;  %v838_v10 = vmul.f32 %v832_v37, %v795_v21  ;;  %v3808_v6 = vld [vmem:[%s7083_s8 + $0xc8] sm:$0xff] }
 0x1ba   :  { %v3821_v26 = vld [vmem:[%s7083_s8 + $0xe8] sm:$0xff]  ;;  %2679 = vmatpush.msra.mxu0 %v3808_v6 }
 0x1bb   :  { %v897_v20 = vadd.f32 1.0, %v891_v7  ;;  %v844_v27 = vadd.f32 0.2548296, %v838_v10  ;;  %v3794_v7 = vld [vmem:[%s7083_s8 + $0xa0] sm:$0xff]  ;;  %3014 = vmatpush.msrb.mxu1 %v3821_v26 }
 0x1bc   :  { %v3807_v10 = vld [vmem:[%s7083_s8 + $0xc0] sm:$0xff] }
 0x1bd   :  { %v903_v47 = vmul.f32 %v897_v20, %v669_v9  ;;  %v850_v53 = vmul.f32 %v844_v27, %v795_v21  ;;  %v1294_v9 = vpop.f32.mrf.mxu0  ;;  %v608_v20 = vpop.f32.mrf.mxu2  ;;  %v5615_v27 = vld [vmem:[%s7081_s6 + $0xc] ss:$0 sm:$0xff]  ;;  %2680 = vmatpush.msra.mxu0 %v3807_v10 }
 0x1bf   :  { %3749 = vmatmul.msk.f32.gmra.mxu3 %vm563_vm10, %v903_v47  ;;  %v880_v13 = vmul.f32 %v4006_v45, %v850_v53  ;;  %v5610_v47 = vld [vmem:[%s7081_s6 + $0x8] ss:$0 sm:$0xff]  ;;  %v3820_v53 = vld [vmem:[%s7083_s8 + $0xe0] sm:$0xff] }
 0x1c0   :  { %3015 = vmatpush.msrb.mxu1 %v3820_v53 }
 0x1c1   :  { %v886_v44 = vsub.f32 1.0, %v880_v13 }
 0x1c3   :  { %v892_v2 = vmul.f32 %v886_v44, %v688_v57  ;;  %v5626_v44 = vld [vmem:[%s7082_s7 + $0x4] ss:$0 sm:$0xff] }
 0x1c5   :  { %v898_v32 = vadd.f32 1.0, %v892_v2  ;;  %v1637_v2 = vpop.f32.mrf.mxu1 }
 0x1c7   :  { %v904_v58 = vmul.f32 %v898_v32, %v670_v24  ;;  %v622_v32 = vadd.f32 %v5537_v39, %v605_v51  ;;  %v5658_v51 = vld [vmem:[%s7081_s6 + $0xe] ss:$0 sm:$0xff] }
 0x1c9   :  { %3750 = vmatmul.msk.f32.gmra.mxu3 %vm563_vm10, %v904_v58  ;;  %v623_v58 = vadd.f32 %v5537_v39, %v608_v20 }
 0x1cd   :  { %v1640_v14 = vpop.f32.mrf.mxu1 }
 0x1e4   :  { %v614_v29 = vpop.f32.mrf.mxu3 }
 0x1e5   :  { %v5540_v52 = vadd.f32 %v5537_v39, %v614_v29 }
 0x206   :  { %v945_v50 = vpop.f32.mrf.mxu3 }
 0x207   :  { %v963_v11 = vadd.f32 %v945_v50, %v620_v59  ;;  %v5646_v59 = vld [vmem:[%s7081_s6 + $0xb] ss:$0 sm:$0xff] }
 0x208   :  { %7143 = vst [vmem:[#allocation16_spill] sm:$0xff] %v5646_v59 }
 0x209   :  { %v1306_v42 = vadd.f32 %v1288_v60, %v963_v11 }
 0x20b   :  { %v1649_v18 = vadd.f32 %v1631_v61, %v1306_v42  ;;  %v1297_v61 = vpop.f32.mrf.mxu0 }
 0x20d   :  { %v5551_v41 = vadd.f32 %v1649_v18, %v4405_v22  ;;  %v3797_v22 = vld [vmem:[%s7083_s8 + $0xb8] sm:$0xff]  ;;  %v5653_v18 = vld [vmem:[%s7081_s6 + $0xd] ss:$0 sm:$0xff] }
 0x20e   :  { %2342 = vmatpush.msra.mxu3 %v3797_v22 }
 0x20f   :  { %7142 = vst [vmem:[#allocation15_spill] sm:$0xff] %v5551_v41  ;;  %v7101_v19 = vrot.slane %v5551_v41, 2  ;;  %v1695_v45 = vmul.f32 %v5610_v47, %v5551_v41 }
 0x210   :  { %2343 = vmatpush.msra.mxu3 %v3796_v1 }
 0x212   :  { %2344 = vmatpush.msra.mxu3 %v3795_v15 }
 0x214   :  { %2345 = vmatpush.msra.mxu3 %v3794_v7  ;;  %v5682_v7 = vld [vmem:[%s7082_s7 + $0x6] ss:$0 sm:$0xff] }
 0x21e   :  { %v948_v0 = vpop.f32.mrf.mxu3 }
 0x21f   :  { %v964_v33 = vadd.f32 %v948_v0, %v621_v12  ;;  %v611_v0 = vpop.f32.mrf.mxu2  ;;  %v5641_v12 = vld [vmem:[%s7081_s6 + $0xa] ss:$0 sm:$0xff] }
 0x220   :  { %v624_v42 = vadd.f32 %v5537_v39, %v611_v0  ;;  %v2033_v39 = vmul.f32 %v5636_v31, %v5551_v41  ;;  %v2368_v30 = vmul.f32 %v5641_v12, %v5551_v41 }
 0x221   :  { %v1307_v4 = vadd.f32 %v1291_v3, %v964_v33 }
 0x223   :  { %v5544_v21 = vadd.f32 %v1634_v40, %v1307_v4 }
 0x225   :  { %7141 = vst [vmem:[#allocation14_spill] sm:$0xff] %v5544_v21  ;;  %v5548_v55 = vadd.f32 %v5544_v21, %v4418_v28  ;;  %v3782_v28 = vld [vmem:[%s7083_s8 + $0x88] sm:$0xff] }
 0x226   :  { %2006 = vmatpush.msrb.mxu2 %v3782_v28  ;;  %v2703_v28 = vmul.f32 %v5646_v59, %v5551_v41 }
 0x227   :  { %v1664_v5 = vrot.slane %v5548_v55, 2 }
 0x228   :  { %2007 = vmatpush.msrb.mxu2 %v3781_v35  ;;  %v5677_v35 = vld [vmem:[%s7082_s7 + $0x5] ss:$0 sm:$0xff] }
 0x229   :  { %v1674_v37 = vsel %vm1669_vm9, %v7101_v19, %v1664_v5 }
 0x22a   :  { %v1706_v13 = vmul.f32 %v5615_v27, %v1674_v37  ;;  %v2044_v34 = vmul.f32 %v5653_v18, %v1674_v37  ;;  %v2379_v1 = vmul.f32 %v5658_v51, %v1674_v37 }
 0x22c   :  { %v951_v54 = vpop.f32.mrf.mxu3  ;;  %v1712_v24 = vadd.f32 %v1706_v13, %v1695_v45  ;;  %v2050_v6 = vadd.f32 %v2044_v34, %v2033_v39  ;;  %v2385_v26 = vadd.f32 %v2379_v1, %v2368_v30  ;;  %v1300_v45 = vpop.f32.mrf.mxu0 }
 0x22d   :  { %v965_v48 = vadd.f32 %v951_v54, %v622_v32  ;;  %v5663_v54 = vld [vmem:[%s7081_s6 + $0xf] ss:$0 sm:$0xff] }
 0x22e   :  { %v1723_v29 = vadd.f32 %v5626_v44, %v1712_v24  ;;  %v2714_v43 = vmul.f32 %v5663_v54, %v1674_v37  ;;  %v5687_v37 = vld [vmem:[%s7082_s7 + $0x7] ss:$0 sm:$0xff]  ;;  %v2061_v10 = vadd.f32 %v5677_v35, %v2050_v6  ;;  %v2396_v53 = vadd.f32 %v5682_v7, %v2385_v26 }
 0x22f   :  { %v1308_v11 = vadd.f32 %v1294_v9, %v965_v48 }
 0x230   :  { %v5631_v60 = vmul.f32 0.70710677, %v1723_v29  ;;  %v2720_v9 = vadd.f32 %v2714_v43, %v2703_v28  ;;  %v5700_v24 = vmul.f32 0.70710677, %v2061_v10 }
 0x231   :  { %v1651_v49 = vadd.f32 %v1637_v2, %v1308_v11  ;;  %v1643_v11 = vpop.f32.mrf.mxu1 }
 0x232   :  { %v1753_v33 = vand.u32 2147483647, %v5631_v60  ;;  %vm1741_vm11 = vcmp.ge.f32.partialorder %v5631_v60, 0.0  ;;  %v1696_v60 = vmul.f32 %v5610_v47, %v5548_v55 }
 0x233   :  { %v5690_v20 = vadd.f32 %v1651_v49, %v4525_v63 }
 0x234   :  { %v1759_v4 = vmul.f32 0.3275911, %v1753_v33 }
 0x235   :  { %v7102_v63 = vrot.slane %v5690_v20, 2 }
 0x236   :  { %v954_v57 = vpop.f32.mrf.mxu3  ;;  %v1765_v22 = vadd.f32 1.0, %v1759_v4  ;;  %v2091_v4 = vand.u32 2147483647, %v5700_v24 }
 0x237   :  { %v966_v50 = vadd.f32 %v954_v57, %v623_v58  ;;  %v5698_v57 = vadd.f32 %v5687_v37, %v2720_v9  ;;  %v5702_v58 = vmul.f32 0.70710677, %v2396_v53 }
 0x238   :  { %4007 = vrcp.f32 %v1765_v22  ;;  %v1780_v39 = vand.u32 2147483647, %v1765_v22  ;;  %v1782_v28 = vand.u32 2147483648, %v1765_v22  ;;  %v2097_v49 = vmul.f32 0.3275911, %v2091_v4 }
 0x239   :  { %v1309_v3 = vadd.f32 %v1297_v61, %v966_v50  ;;  %v1915_v61 = vsub.f32 0.0, %v1753_v33  ;;  %v5706_v0 = vmul.f32 0.70710677, %v5698_v57  ;;  %vm1776_vm13 = vweird.f32 %v1765_v22 }
 0x23a   :  { %vm1781_vm14 = vcmp.eq.f32.partialorder %v1780_v39, 8.507059e+37  ;;  %v1783_v9 = vor.u32 1.1754944e-38, %v1782_v28 }
 0x23b   :  { %v1652_v46 = vadd.f32 %v1640_v14, %v1309_v3  ;;  %v5709_v3 = vmul.f32 0.5, %v1723_v29  ;;  %v1921_v43 = vmul.f32 %v1915_v61, %v1753_v33  ;;  %v5718_v29 = vand.u32 2147483647, %v5706_v0  ;;  %v1303_v33 = vpop.f32.mrf.mxu0 }
 0x23d   :  { %v5695_v13 = vadd.f32 %v1652_v46, %v4558_v38  ;;  %v5721_v46 = vsel %vm1741_vm11, 1.0, %v7129_v56  ;;  %v1927_v61 = vmul.f32 1.442695, %v1921_v43 }
 0x23e   :  { %v4008_v32 = vpop.eup %4007 }
 0x23f   :  { %v1772_v50 = vmul.f32 %v4008_v32, %v1765_v22  ;;  %vm1777_vm12 = vweird.f32 %v4008_v32  ;;  %v2034_v22 = vmul.f32 %v5636_v31, %v5548_v55 }
 0x240   :  { %vm1778_vm15 = vmor %vm1776_vm13, %vm1777_vm12 }
 0x241   :  { %v1773_v14 = vsub.f32 1.0, %v1772_v50 }
 0x242   :  { %v957_v40 = vpop.f32.mrf.mxu3 }
 0x243   :  { %v967_v15 = vadd.f32 %v957_v40, %v624_v42  ;;  %v2426_v42 = vand.u32 2147483647, %v5702_v58  ;;  %v1774_v1 = vmul.f32 %v4008_v32, %v1773_v14  ;;  %v5742_v14 = vmul.f32 %v5641_v12, %v5548_v55 }
 0x245   :  { %v1310_v2 = vadd.f32 %v1300_v45, %v967_v15  ;;  %v2432_v34 = vmul.f32 0.3275911, %v2426_v42  ;;  %v5723_v15 = vadd.f32 1.0, %v2097_v49  ;;  %v1775_v26 = vadd.f32 %v4008_v32, %v1774_v1 }
 0x246   :  { %v2253_v45 = vsub.f32 0.0, %v2091_v4  ;;  %v5746_v49 = vmul.f32 0.5, %v2061_v10  ;;  %v5752_v1 = vmul.f32 0.5, %v2396_v53 }
 0x247   :  { %v5713_v40 = vadd.f32 %v1643_v11, %v1310_v2  ;;  %v5725_v6 = vadd.f32 1.0, %v2432_v34  ;;  %4009 = vrcp.f32 %v5723_v15  ;;  %v2767_v2 = vmul.f32 0.3275911, %v5718_v29 }
 0x248   :  { %v1779_v50 = vsel %vm1778_vm15, %v4008_v32, %v1775_v26  ;;  %v5750_v32 = vmul.f32 %v5646_v59, %v5548_v55  ;;  %v2259_v34 = vmul.f32 %v2253_v45, %v2091_v4  ;;  %v5762_v26 = vsel %vm1669_vm9, %v1664_v5, %v7102_v63 }
 0x249   :  { %7144 = vst [vmem:[#allocation17_spill] sm:$0xff] %v5713_v40  ;;  %4011 = vrcp.f32 %v5725_v6  ;;  %v5736_v11 = vsel %vm1781_vm14, %v1783_v9, %v1779_v50  ;;  %v5754_v43 = vadd.f32 1.0, %v2767_v2  ;;  %v1707_v9 = vmul.f32 %v5615_v27, %v5762_v26 }
 0x24a   :  { %v1861_v28 = vmul.f32 1.0614054, %v5736_v11  ;;  %4013 = vpow2.f32 %v1927_v61  ;;  %v2118_v53 = vand.u32 2147483647, %v5723_v15  ;;  %v2120_v45 = vand.u32 2147483648, %v5723_v15 }
 0x24b   :  { %4015 = vrcp.f32 %v5754_v43  ;;  %vm2114_vm0 = vweird.f32 %v5723_v15  ;;  %v2923_v50 = vsub.f32 0.0, %v5718_v29  ;;  %v5777_v61 = vmul.f32 1.442695, %v2259_v34 }
 0x24c   :  { %v960_v48 = vpop.f32.mrf.mxu3  ;;  %vm2449_vm1 = vweird.f32 %v5725_v6  ;;  %v1713_v39 = vadd.f32 %v1707_v9, %v1696_v60  ;;  %vm5783_vm2 = vcmp.eq.f32.partialorder %v2118_v53, 8.507059e+37  ;;  %v2121_v63 = vor.u32 1.1754944e-38, %v2120_v45  ;;  %v3079_v60 = vld [vmem:[%s7085_s10 + $0x38] sm:$0xff] }
 0x24d   :  { %v968_v30 = vadd.f32 %v960_v48, %v5540_v52  ;;  %v5731_v52 = vadd.f32 %v5713_v40, %v4645_v25  ;;  %v2588_v25 = vsub.f32 0.0, %v2426_v42  ;;  %v4010_v4 = vpop.eup %4009  ;;  %vm2784_vm11 = vweird.f32 %v5754_v43  ;;  %3105 = vmatpush.msra.mxu2 %v3079_v60 }
 0x24e   :  { %vm2115_vm4 = vweird.f32 %v4010_v4  ;;  %v5789_v62 = vadd.f32 %v5626_v44, %v1713_v39  ;;  %vm2079_vm14 = vcmp.ge.f32.partialorder %v5700_v24, 0.0  ;;  %vm2414_vm15 = vcmp.ge.f32.partialorder %v5702_v58, 0.0 }
 0x24f   :  { %7145 = vst [vmem:[#allocation18_spill] sm:$0xff] %v5731_v52  ;;  %v1311_v48 = vadd.f32 %v1303_v33, %v968_v30  ;;  %v1646_v30 = vpop.f32.mrf.mxu1  ;;  %v1867_v33 = vadd.f32 -1.4531521, %v1861_v28  ;;  %v5770_v2 = vmul.f32 %v2588_v25, %v2426_v42  ;;  %v4012_v55 = vpop.eup %4011  ;;  %v2455_v42 = vand.u32 2147483648, %v5725_v6  ;;  %vm2116_vm6 = vmor %vm2114_vm0, %vm2115_vm4 }
 0x250   :  { %v2445_v28 = vmul.f32 %v4012_v55, %v5725_v6  ;;  %v4014_v34 = vpop.eup %4013  ;;  %vm2450_vm3 = vweird.f32 %v4012_v55 }
 0x251   :  { %v5764_v10 = vadd.f32 %v1646_v30, %v1311_v48  ;;  %v1873_v5 = vmul.f32 %v1867_v33, %v5736_v11  ;;  %v2110_v48 = vmul.f32 %v4010_v4, %v5723_v15  ;;  %v2453_v30 = vand.u32 2147483647, %v5725_v6  ;;  %vm2451_vm7 = vmor %vm2449_vm1, %vm2450_vm3 }
 0x252   :  { %v2446_v38 = vsub.f32 1.0, %v2445_v28  ;;  %v2456_v9 = vor.u32 1.1754944e-38, %v2455_v42  ;;  %vm2749_vm1 = vcmp.ge.f32.partialorder %v5706_v0, 0.0 }
 0x253   :  { %v1879_v25 = vadd.f32 1.4214138, %v1873_v5  ;;  %v2111_v19 = vsub.f32 1.0, %v2110_v48  ;;  %v2045_v5 = vmul.f32 %v5653_v18, %v5762_v26  ;;  %v4016_v48 = vpop.eup %4015  ;;  %vm5793_vm5 = vcmp.eq.f32.partialorder %v2453_v30, 8.507059e+37 }
 0x254   :  { %v2447_v16 = vmul.f32 %v4012_v55, %v2446_v38  ;;  %v2780_v28 = vmul.f32 %v4016_v48, %v5754_v43  ;;  %v5804_v38 = vmul.f32 0.70710677, %v5789_v62  ;;  %v2380_v30 = vmul.f32 %v5658_v51, %v5762_v26 }
 0x255   :  { %v1885_v40 = vmul.f32 %v1879_v25, %v5736_v11  ;;  %v2112_v21 = vmul.f32 %v4010_v4, %v2111_v19  ;;  %v2788_v19 = vand.u32 2147483647, %v5754_v43  ;;  %v2790_v25 = vand.u32 2147483648, %v5754_v43 }
 0x256   :  { %v2448_v39 = vadd.f32 %v4012_v55, %v2447_v16  ;;  %v2781_v42 = vsub.f32 1.0, %v2780_v28  ;;  %v2051_v8 = vadd.f32 %v2045_v5, %v2034_v22  ;;  %vm2785_vm8 = vweird.f32 %v4016_v48 }
 0x257   :  { %v1891_v53 = vadd.f32 -0.28449672, %v1885_v40  ;;  %v2113_v45 = vadd.f32 %v4010_v4, %v2112_v21  ;;  %v5816_v41 = vand.u32 2147483647, %v5804_v38  ;;  %vm2786_vm12 = vmor %vm2784_vm11, %vm2785_vm8  ;;  %vm2789_vm13 = vcmp.eq.f32.partialorder %v2788_v19, 8.507059e+37 }
 0x258   :  { %v2452_v16 = vsel %vm2451_vm7, %v4012_v55, %v2448_v39  ;;  %v2782_v6 = vmul.f32 %v4016_v48, %v2781_v42  ;;  %v5838_v43 = vadd.f32 %v5677_v35, %v2051_v8  ;;  %v5862_v24 = vadd.f32 %v5764_v10, %v4779_v36 }
 0x259   :  { %v1897_v40 = vmul.f32 %v1891_v53, %v5736_v11  ;;  %v2117_v21 = vsel %vm2116_vm6, %v4010_v4, %v2113_v45  ;;  %v5821_v4 = vsel %vm5793_vm5, %v2456_v9, %v2452_v16  ;;  %v1760_v22 = vmul.f32 0.3275911, %v5816_v41  ;;  %v3078_v9 = vld [vmem:[%s7085_s10 + $0x30] sm:$0xff] }
 0x25a   :  { %v5813_v15 = vsel %vm5783_vm2, %v2121_v63, %v2117_v21  ;;  %v2534_v53 = vmul.f32 1.0614054, %v5821_v4  ;;  %v2929_v63 = vmul.f32 %v2923_v50, %v5718_v29  ;;  %v2783_v5 = vadd.f32 %v4016_v48, %v2782_v6  ;;  %3106 = vmatpush.msra.mxu2 %v3078_v9 }
 0x25b   :  { %v1903_v52 = vadd.f32 0.2548296, %v1897_v40  ;;  %v2199_v59 = vmul.f32 1.0614054, %v5813_v15  ;;  %v2791_v45 = vor.u32 1.1754944e-38, %v2790_v25  ;;  %v5835_v29 = vadd.f32 1.0, %v1760_v22 }
 0x25c   :  { %v2540_v28 = vadd.f32 -1.4531521, %v2534_v53  ;;  %v2787_v50 = vsel %vm2786_vm12, %v4016_v48, %v2783_v5  ;;  %v2600_v25 = vmul.f32 1.442695, %v5770_v2  ;;  %v5850_v48 = vmul.f32 0.70710677, %v5838_v43 }
 0x25d   :  { %v1909_v55 = vmul.f32 %v1903_v52, %v5736_v11  ;;  %v2205_v33 = vadd.f32 -1.4531521, %v2199_v59  ;;  %v2386_v59 = vadd.f32 %v2380_v30, %v5742_v14  ;;  %v5844_v40 = vsel %vm2789_vm13, %v2791_v45, %v2787_v50 }
 0x25e   :  { %v2546_v39 = vmul.f32 %v2540_v28, %v5821_v4  ;;  %4017 = vrcp.f32 %v5835_v29  ;;  %v2869_v14 = vmul.f32 1.0614054, %v5844_v40  ;;  %v2935_v30 = vmul.f32 1.442695, %v2929_v63 }
 0x25f   :  { %v1939_v52 = vmul.f32 %v4014_v34, %v1909_v55  ;;  %v2211_v11 = vmul.f32 %v2205_v33, %v5813_v15  ;;  %v5853_v19 = vadd.f32 %v5682_v7, %v2386_v59  ;;  %v5858_v16 = vmul.f32 0.5, %v5698_v57 }
 0x260   :  { %v2552_v34 = vadd.f32 1.4214138, %v2546_v39  ;;  %v2875_v6 = vadd.f32 -1.4531521, %v2869_v14  ;;  %v2085_v53 = vsel %vm2079_vm14, 1.0, %v7129_v56  ;;  %4019 = vpow2.f32 %v5777_v61 }
 0x261   :  { %v1945_v21 = vsub.f32 1.0, %v1939_v52  ;;  %v2217_v8 = vadd.f32 1.4214138, %v2211_v11  ;;  %4021 = vpow2.f32 %v2600_v25  ;;  %v5870_v5 = vand.u32 2147483647, %v5850_v48 }
 0x262   :  { %v2558_v63 = vmul.f32 %v2552_v34, %v5821_v4  ;;  %4023 = vpow2.f32 %v2935_v30  ;;  %v5873_v36 = vmul.f32 0.70710677, %v5853_v19  ;;  %v1916_v28 = vsub.f32 0.0, %v5816_v41 }
 0x263   :  { %v1951_v2 = vmul.f32 %v1945_v21, %v5721_v46  ;;  %v2223_v42 = vmul.f32 %v2217_v8, %v5813_v15  ;;  %v2881_v46 = vmul.f32 %v2875_v6, %v5844_v40  ;;  %v2098_v59 = vmul.f32 0.3275911, %v5870_v5 }
 0x264   :  { %v4018_v57 = vpop.eup %4017  ;;  %v2564_v33 = vadd.f32 -0.28449672, %v2558_v63  ;;  %v2715_v52 = vmul.f32 %v5663_v54, %v5762_v26  ;;  %v1797_v39 = vand.u32 2147483648, %v5835_v29  ;;  %v1795_v8 = vand.u32 2147483647, %v5835_v29 }
 0x265   :  { %v1957_v22 = vadd.f32 1.0, %v1951_v2  ;;  %v2229_v55 = vadd.f32 -0.28449672, %v2223_v42  ;;  %v2887_v45 = vadd.f32 1.4214138, %v2881_v46  ;;  %v1787_v60 = vmul.f32 %v4018_v57, %v5835_v29 }
 0x266   :  { %v2570_v9 = vmul.f32 %v2564_v33, %v5821_v4  ;;  %v4020_v25 = vpop.eup %4019  ;;  %vm1792_vm0 = vweird.f32 %v4018_v57  ;;  %v5887_v14 = vadd.f32 1.0, %v2098_v59  ;;  %v5891_v42 = vand.u32 2147483647, %v5873_v36 }
 0x267   :  { %v1963_v10 = vmul.f32 %v1957_v22, %v5709_v3  ;;  %v2235_v61 = vmul.f32 %v2229_v55, %v5813_v15  ;;  %v2893_v50 = vmul.f32 %v2887_v45, %v5844_v40  ;;  %v1788_v3 = vsub.f32 1.0, %v1787_v60  ;;  %v4022_v34 = vpop.eup %4021 }
 0x268   :  { %v2576_v21 = vadd.f32 0.2548296, %v2570_v9  ;;  %v4024_v6 = vpop.eup %4023  ;;  %4025 = vrcp.f32 %v5887_v14  ;;  %v2721_v22 = vadd.f32 %v2715_v52, %v5750_v32  ;;  %vm1791_vm4 = vweird.f32 %v5835_v29 }
 0x269   :  { %3785 = vmatmul.msk.f32.vlgmr.msrb.gmra.mxu2 %vm563_vm10, %v1963_v10  ;;  %v2241_v11 = vadd.f32 0.2548296, %v2235_v61  ;;  %v2899_v2 = vadd.f32 -0.28449672, %v2893_v50  ;;  %v1789_v26 = vmul.f32 %v4018_v57, %v1788_v3  ;;  %vm1793_vm2 = vmor %vm1791_vm4, %vm1792_vm0  ;;  %v1798_v10 = vor.u32 1.1754944e-38, %v1797_v39 }
 0x26a   :  { %v2582_v63 = vmul.f32 %v2576_v21, %v5821_v4  ;;  %v1922_v61 = vmul.f32 %v1916_v28, %v5816_v41  ;;  %v2433_v4 = vmul.f32 0.3275911, %v5891_v42  ;;  %vm1796_vm3 = vcmp.eq.f32.partialorder %v1795_v8, 8.507059e+37 }
 0x26b   :  { %v2247_v30 = vmul.f32 %v2241_v11, %v5813_v15  ;;  %v2905_v46 = vmul.f32 %v2899_v2, %v5844_v40  ;;  %v1790_v33 = vadd.f32 %v4018_v57, %v1789_v26  ;;  %v2420_v32 = vsel %vm2414_vm15, 1.0, %v7129_v56 }
 0x26c   :  { %v2612_v15 = vmul.f32 %v4022_v34, %v2582_v63  ;;  %v5907_v29 = vadd.f32 1.0, %v2433_v4  ;;  %v2755_v41 = vsel %vm2749_vm1, 1.0, %v7129_v56  ;;  %v1929_v39 = vmul.f32 1.442695, %v1922_v61 }
 0x26d   :  { %v2277_v55 = vmul.f32 %v4020_v25, %v2247_v30  ;;  %v2911_v60 = vadd.f32 0.2548296, %v2905_v46  ;;  %v1794_v9 = vsel %vm1793_vm2, %v4018_v57, %v1790_v33  ;;  %v5916_v58 = vadd.f32 %v5687_v37, %v2721_v22 }
 0x26e   :  { %v2618_v59 = vsub.f32 1.0, %v2612_v15  ;;  %v5905_v52 = vsel %vm1796_vm3, %v1798_v10, %v1794_v9  ;;  %v4026_v57 = vpop.eup %4025  ;;  %4027 = vrcp.f32 %v5907_v29  ;;  %v2133_v0 = vand.u32 2147483647, %v5887_v14 }
 0x26f   :  { %v2283_v45 = vsub.f32 1.0, %v2277_v55  ;;  %v2917_v28 = vmul.f32 %v2911_v60, %v5844_v40  ;;  %v1862_v50 = vmul.f32 1.0614054, %v5905_v52  ;;  %v2254_v40 = vsub.f32 0.0, %v5870_v5 }
 0x270   :  { %v2624_v3 = vmul.f32 %v2618_v59, %v2420_v32  ;;  %v1697_v30 = vmul.f32 %v5610_v47, %v5690_v20  ;;  %4029 = vpow2.f32 %v1929_v39  ;;  %vm2130_vm5 = vweird.f32 %v4026_v57 }
 0x271   :  { %v2289_v11 = vmul.f32 %v2283_v45, %v2085_v53  ;;  %v2947_v21 = vmul.f32 %v4024_v6, %v2917_v28  ;;  %v1868_v8 = vadd.f32 -1.4531521, %v1862_v50  ;;  %v2125_v53 = vmul.f32 %v4026_v57, %v5887_v14 }
 0x272   :  { %v2630_v34 = vadd.f32 1.0, %v2624_v3  ;;  %v2135_v6 = vand.u32 2147483648, %v5887_v14  ;;  %v5929_v10 = vmul.f32 0.70710677, %v5916_v58  ;;  %vm2129_vm6 = vweird.f32 %v5887_v14 }
 0x273   :  { %v2295_v25 = vadd.f32 1.0, %v2289_v11  ;;  %v2953_v26 = vsub.f32 1.0, %v2947_v21  ;;  %v1874_v63 = vmul.f32 %v1868_v8, %v5905_v52  ;;  %v2126_v22 = vsub.f32 1.0, %v2125_v53  ;;  %vm2131_vm8 = vmor %vm2129_vm6, %vm2130_vm5 }
 0x274   :  { %v2636_v55 = vmul.f32 %v2630_v34, %v5752_v1  ;;  %v4028_v47 = vpop.eup %4027  ;;  %vm5933_vm7 = vcmp.eq.f32.partialorder %v2133_v0, 8.507059e+37  ;;  %v2260_v1 = vmul.f32 %v2254_v40, %v5870_v5  ;;  %v7152_v61 = vrot.slane %v5695_v13, 2 }
 0x275   :  { %v2301_v2 = vmul.f32 %v2295_v25, %v5746_v49  ;;  %v2959_v46 = vmul.f32 %v2953_v26, %v2755_v41  ;;  %v1880_v33 = vadd.f32 1.4214138, %v1874_v63  ;;  %v2127_v15 = vmul.f32 %v4026_v57, %v2126_v22 }
 0x276   :  { %3811 = vmatmul.msk.f32.vlgmr.msra.gmra.mxu0 %vm563_vm10, %v2636_v55  ;;  %v7153_v4 = vrot.slane %v5690_v20, 2  ;;  %v2460_v59 = vmul.f32 %v4028_v47, %v5907_v29  ;;  %v2136_v14 = vor.u32 1.1754944e-38, %v2135_v6  ;;  %v2468_v11 = vand.u32 2147483647, %v5907_v29  ;;  %v4030_v39 = vpop.eup %4029 }
 0x277   :  { %3798 = vmatmul.msk.f32.vlgmr.msra.gmra.mxu3 %vm563_vm10, %v2301_v2  ;;  %v2965_v60 = vadd.f32 1.0, %v2959_v46  ;;  %v1886_v9 = vmul.f32 %v1880_v33, %v5905_v52  ;;  %v2128_v32 = vadd.f32 %v4026_v57, %v2127_v15  ;;  %v5949_v5 = vand.u32 2147483647, %v5929_v10 }
 0x278   :  { %v1672_v45 = vsel %vm1669_vm9, %v7153_v4, %v7152_v61  ;;  %vm1678_vm11 = vcmp.lt.s32.totalorder %v4652_v17, 22  ;;  %v2461_v3 = vsub.f32 1.0, %v2460_v59  ;;  %vm2465_vm12 = vweird.f32 %v4028_v47 }
 0x279   :  { %v2971_v41 = vmul.f32 %v2965_v60, %v5858_v16  ;;  %v1892_v28 = vadd.f32 -0.28449672, %v1886_v9  ;;  %v2132_v50 = vsel %vm2131_vm8, %v4026_v57, %v2128_v32  ;;  %v2470_v21 = vand.u32 2147483648, %v5907_v29 }
 0x27a   :  { %v5955_v25 = vsel %vm5933_vm7, %v2136_v14, %v2132_v50  ;;  %v2768_v8 = vmul.f32 0.3275911, %v5949_v5  ;;  %v2462_v16 = vmul.f32 %v4028_v47, %v2461_v3  ;;  %v5962_v34 = vsel %vm1678_vm11, %v1672_v45, 0.0 }
 0x27b   :  { %3824 = vmatmul.msk.f32.vlgmr.msrb.gmra.mxu1 %vm563_vm10, %v2971_v41  ;;  %v1898_v53 = vmul.f32 %v1892_v28, %v5905_v52  ;;  %v2200_v17 = vmul.f32 1.0614054, %v5955_v25  ;;  %vm1742_vm13 = vcmp.ge.f32.partialorder %v5804_v38, 0.0  ;;  %v2589_v57 = vsub.f32 0.0, %v5891_v42 }
 0x27c   :  { %v5966_v0 = vadd.f32 1.0, %v2768_v8  ;;  %v1708_v40 = vmul.f32 %v5615_v27, %v5962_v34  ;;  %v2463_v63 = vadd.f32 %v4028_v47, %v2462_v16  ;;  %vm2464_vm14 = vweird.f32 %v5907_v29 }
 0x27d   :  { %v1904_v2 = vadd.f32 0.2548296, %v1898_v53  ;;  %v2206_v26 = vadd.f32 -1.4531521, %v2200_v17  ;;  %v2267_v22 = vmul.f32 1.442695, %v2260_v1  ;;  %vm2466_vm15 = vmor %vm2464_vm14, %vm2465_vm12  ;;  %v2046_v6 = vmul.f32 %v5653_v18, %v5962_v34 }
 0x27e   :  { %v2471_v55 = vor.u32 1.1754944e-38, %v2470_v21  ;;  %4031 = vrcp.f32 %v5966_v0  ;;  %v2467_v15 = vsel %vm2466_vm15, %v4028_v47, %v2463_v63  ;;  %vm2469_vm0 = vcmp.eq.f32.partialorder %v2468_v11, 8.507059e+37 }
 0x27f   :  { %v1910_v46 = vmul.f32 %v1904_v2, %v5905_v52  ;;  %v2212_v33 = vmul.f32 %v2206_v26, %v5955_v25  ;;  %v2595_v49 = vmul.f32 %v2589_v57, %v5891_v42  ;;  %v1714_v29 = vadd.f32 %v1708_v40, %v1697_v30 }
 0x280   :  { %v5977_v27 = vsel %vm2469_vm0, %v2471_v55, %v2467_v15  ;;  %v2035_v1 = vmul.f32 %v5636_v31, %v5690_v20  ;;  %v1730_v61 = vmul.f32 0.5, %v5789_v62  ;;  %v1748_v52 = vsel %vm1742_vm13, 1.0, %v7129_v56 }
 0x281   :  { %v1940_v4 = vmul.f32 %v4030_v39, %v1910_v46  ;;  %v2218_v45 = vadd.f32 1.4214138, %v2212_v33  ;;  %v2535_v60 = vmul.f32 1.0614054, %v5977_v27  ;;  %v5988_v47 = vmul.f32 0.5, %v5838_v43 }
 0x282   :  { %v5991_v9 = vadd.f32 %v5626_v44, %v1714_v29  ;;  %v2052_v42 = vadd.f32 %v2046_v6, %v2035_v1  ;;  %4033 = vpow2.f32 %v2267_v22  ;;  %v2602_v59 = vmul.f32 1.442695, %v2595_v49  ;;  %v3077_v49 = vld [vmem:[%s7085_s10 + $0x28] sm:$0xff] }
 0x283   :  { %v1946_v30 = vsub.f32 1.0, %v1940_v4  ;;  %v2224_v31 = vmul.f32 %v2218_v45, %v5955_v25  ;;  %v2541_v62 = vadd.f32 -1.4531521, %v2535_v60  ;;  %v2370_v43 = vmul.f32 %v5641_v12, %v5690_v20  ;;  %3107 = vmatpush.msra.mxu2 %v3077_v49 }
 0x284   :  { %v4032_v32 = vpop.eup %4031  ;;  %v5995_v14 = vmul.f32 0.70710677, %v5991_v9  ;;  %v5998_v38 = vadd.f32 %v5677_v35, %v2052_v42  ;;  %vm2080_vm1 = vcmp.ge.f32.partialorder %v5850_v48, 0.0  ;;  %v2803_v50 = vand.u32 2147483647, %v5966_v0 }
 0x285   :  { %v1952_v11 = vmul.f32 %v1946_v30, %v1748_v52  ;;  %v2230_v44 = vadd.f32 -0.28449672, %v2224_v31  ;;  %v2547_v41 = vmul.f32 %v2541_v62, %v5977_v27  ;;  %v2795_v28 = vmul.f32 %v4032_v32, %v5966_v0 }
 0x286   :  { %v2924_v3 = vsub.f32 0.0, %v5949_v5  ;;  %v6008_v39 = vand.u32 2147483647, %v5995_v14  ;;  %v2381_v35 = vmul.f32 %v5658_v51, %v5962_v34  ;;  %vm2800_vm4 = vweird.f32 %v4032_v32 }
 0x287   :  { %v1958_v21 = vadd.f32 1.0, %v1952_v11  ;;  %v2236_v12 = vmul.f32 %v2230_v44, %v5955_v25  ;;  %v2553_v8 = vadd.f32 1.4214138, %v2547_v41  ;;  %v2796_v53 = vsub.f32 1.0, %v2795_v28 }
 0x288   :  { %v2805_v17 = vand.u32 2147483648, %v5966_v0  ;;  %v1761_v16 = vmul.f32 0.3275911, %v6008_v39  ;;  %v6016_v57 = vmul.f32 0.70710677, %v5998_v38  ;;  %v4034_v40 = vpop.eup %4033  ;;  %4035 = vpow2.f32 %v2602_v59 }
 0x289   :  { %v1964_v2 = vmul.f32 %v1958_v21, %v1730_v61  ;;  %v2242_v26 = vadd.f32 0.2548296, %v2236_v12  ;;  %v2559_v63 = vmul.f32 %v2553_v8, %v5977_v27  ;;  %v2797_v22 = vmul.f32 %v4032_v32, %v2796_v53 }
 0x28a   :  { %v6019_v51 = vadd.f32 1.0, %v1761_v16  ;;  %v6022_v55 = vand.u32 2147483647, %v6016_v57  ;;  %v2387_v6 = vadd.f32 %v2381_v35, %v2370_v43  ;;  %vm2799_vm2 = vweird.f32 %v5966_v0 }
 0x28b   :  { %3786 = vmatmul.msk.f32.gmra.mxu2 %vm563_vm10, %v1964_v2  ;;  %v2248_v46 = vmul.f32 %v2242_v26, %v5955_v25  ;;  %v2565_v33 = vadd.f32 -0.28449672, %v2559_v63  ;;  %v2798_v15 = vadd.f32 %v4032_v32, %v2797_v22  ;;  %vm2415_vm3 = vcmp.ge.f32.partialorder %v5873_v36, 0.0  ;;  %vm2801_vm5 = vmor %vm2799_vm2, %vm2800_vm4 }
 0x28c   :  { %v2806_v29 = vor.u32 1.1754944e-38, %v2805_v17  ;;  %v2930_v1 = vmul.f32 %v2924_v3, %v5949_v5  ;;  %4037 = vrcp.f32 %v6019_v51  ;;  %vm2804_vm6 = vcmp.eq.f32.partialorder %v2803_v50, 8.507059e+37 }
 0x28d   :  { %v2278_v61 = vmul.f32 %v4034_v40, %v2248_v46  ;;  %v2571_v25 = vmul.f32 %v2565_v33, %v5977_v27  ;;  %v2802_v4 = vsel %vm2801_vm5, %v4032_v32, %v2798_v15  ;;  %v2099_v45 = vmul.f32 0.3275911, %v6022_v55 }
 0x28e   :  { %v6035_v0 = vsel %vm2804_vm6, %v2806_v29, %v2802_v4  ;;  %v6039_v60 = vadd.f32 %v5682_v7, %v2387_v6  ;;  %v2716_v52 = vmul.f32 %v5663_v54, %v5962_v34  ;;  %v2403_v5 = vmul.f32 0.5, %v5853_v19  ;;  %v4036_v62 = vpop.eup %4035  ;;  %v7154_v7 = vld [vmem:[#allocation16_spill] sm:$0xff] }
 0x28f   :  { %v2284_v42 = vsub.f32 1.0, %v2278_v61  ;;  %v2577_v30 = vadd.f32 0.2548296, %v2571_v25  ;;  %v2870_v31 = vmul.f32 1.0614054, %v6035_v0  ;;  %v2086_v32 = vsel %vm2080_vm1, 1.0, %v7129_v56 }
 0x290   :  { %v2937_v59 = vmul.f32 1.442695, %v2930_v1  ;;  %v6048_v43 = vadd.f32 1.0, %v2099_v45  ;;  %v2705_v11 = vmul.f32 %v7154_v7, %v5690_v20  ;;  %v2421_v54 = vsel %vm2415_vm3, 1.0, %v7129_v56 }
 0x291   :  { %v2290_v44 = vmul.f32 %v2284_v42, %v2086_v32  ;;  %v2583_v19 = vmul.f32 %v2577_v30, %v5977_v27  ;;  %v2876_v34 = vadd.f32 -1.4531521, %v2870_v31  ;;  %v6057_v28 = vmul.f32 0.5, %v5916_v58 }
 0x292   :  { %v4038_v41 = vpop.eup %4037  ;;  %4039 = vrcp.f32 %v6048_v43  ;;  %v6061_v48 = vmul.f32 0.70710677, %v6039_v60  ;;  %v2722_v50 = vadd.f32 %v2716_v52, %v2705_v11  ;;  %vm2750_vm7 = vcmp.ge.f32.partialorder %v5929_v10, 0.0 }
 0x293   :  { %v2296_v3 = vadd.f32 1.0, %v2290_v44  ;;  %v2613_v20 = vmul.f32 %v4036_v62, %v2583_v19  ;;  %v2882_v35 = vmul.f32 %v2876_v34, %v6035_v0  ;;  %v1802_v36 = vmul.f32 %v4038_v41, %v6019_v51 }
 0x294   :  { %4041 = vpow2.f32 %v2937_v59  ;;  %v1810_v27 = vand.u32 2147483647, %v6019_v51  ;;  %v1917_v58 = vsub.f32 0.0, %v6008_v39  ;;  %vm1743_vm8 = vcmp.ge.f32.partialorder %v5995_v14, 0.0  ;;  %v7157_v14 = vld [vmem:[#allocation18_spill] sm:$0xff] }
 0x295   :  { %v2302_v21 = vmul.f32 %v2296_v3, %v5988_v47  ;;  %v2619_v12 = vsub.f32 1.0, %v2613_v20  ;;  %v2888_v8 = vadd.f32 1.4214138, %v2882_v35  ;;  %v1803_v53 = vsub.f32 1.0, %v1802_v36 }
 0x296   :  { %v1812_v17 = vand.u32 2147483648, %v6019_v51  ;;  %v6072_v16 = vand.u32 2147483647, %v6061_v48  ;;  %v6075_v40 = vadd.f32 %v5687_v37, %v2722_v50  ;;  %vm1807_vm11 = vweird.f32 %v4038_v41 }
 0x297   :  { %3799 = vmatmul.msk.f32.gmra.mxu3 %vm563_vm10, %v2302_v21  ;;  %v2625_v2 = vmul.f32 %v2619_v12, %v2421_v54  ;;  %v2894_v26 = vmul.f32 %v2888_v8, %v6035_v0  ;;  %v1804_v63 = vmul.f32 %v4038_v41, %v1803_v53  ;;  %vm1806_vm12 = vweird.f32 %v6019_v51 }
 0x298   :  { %v4040_v47 = vpop.eup %4039  ;;  %vm6080_vm13 = vcmp.eq.f32.partialorder %v1810_v27, 8.507059e+37  ;;  %v1923_v6 = vmul.f32 %v1917_v58, %v6008_v39  ;;  %v2434_v46 = vmul.f32 0.3275911, %v6072_v16  ;;  %vm1808_vm14 = vmor %vm1806_vm12, %vm1807_vm11  ;;  %v1813_v1 = vor.u32 1.1754944e-38, %v1812_v17 }
 0x299   :  { %v2631_v37 = vadd.f32 1.0, %v2625_v2  ;;  %v2900_v33 = vadd.f32 -0.28449672, %v2894_v26  ;;  %v1805_v15 = vadd.f32 %v4038_v41, %v1804_v63  ;;  %v2140_v49 = vmul.f32 %v4040_v47, %v6048_v43 }
 0x29a   :  { %v4042_v29 = vpop.eup %4041  ;;  %v2255_v61 = vsub.f32 0.0, %v6022_v55  ;;  %v6088_v25 = vadd.f32 1.0, %v2434_v46  ;;  %v6091_v51 = vmul.f32 0.70710677, %v6075_v40  ;;  %v2148_v30 = vand.u32 2147483647, %v6048_v43 }
 0x29b   :  { %v2637_v4 = vmul.f32 %v2631_v37, %v2403_v5  ;;  %v2906_v39 = vmul.f32 %v2900_v33, %v6035_v0  ;;  %v1809_v45 = vsel %vm1808_vm14, %v4038_v41, %v1805_v15  ;;  %v2141_v52 = vsub.f32 1.0, %v2140_v49  ;;  %v6144_v37 = vld [vmem:[%s7081_s6 + $0x8] ss:$0 sm:$0xff]  ;;  %v6151_v15 = vld [vmem:[%s7081_s6 + $0xc] ss:$0 sm:$0xff] }
 0x29c   :  { %v6096_v42 = vsel %vm6080_vm13, %v1813_v1, %v1809_v45  ;;  %v2150_v31 = vand.u32 2147483648, %v6048_v43  ;;  %4043 = vrcp.f32 %v6088_v25  ;;  %vm2145_vm15 = vweird.f32 %v4040_v47 }
 0x29d   :  { %3812 = vmatmul.msk.f32.gmra.mxu0 %vm563_vm10, %v2637_v4  ;;  %v2912_v62 = vadd.f32 0.2548296, %v2906_v39  ;;  %v1863_v32 = vmul.f32 1.0614054, %v6096_v42  ;;  %v2142_v5 = vmul.f32 %v4040_v47, %v2141_v52  ;;  %v2756_v59 = vsel %vm2750_vm7, 1.0, %v7129_v56 }
 0x29e   :  { %v6107_v7 = vmul.f32 0.5, %v5991_v9  ;;  %v1931_v11 = vmul.f32 1.442695, %v1923_v6  ;;  %v6110_v44 = vand.u32 2147483647, %v6091_v51  ;;  %vm2144_vm0 = vweird.f32 %v6048_v43 }
 0x29f   :  { %v2918_v54 = vmul.f32 %v2912_v62, %v6035_v0  ;;  %v1869_v19 = vadd.f32 -1.4531521, %v1863_v32  ;;  %v2143_v34 = vadd.f32 %v4040_v47, %v2142_v5  ;;  %v6117_v41 = vsel %vm1743_vm8, 1.0, %v7129_v56  ;;  %vm2146_vm1 = vmor %vm2144_vm0, %vm2145_vm15 }
 0x2a0   :  { %v2151_v10 = vor.u32 1.1754944e-38, %v2150_v31  ;;  %v2261_v9 = vmul.f32 %v2255_v61, %v6022_v55  ;;  %v2769_v50 = vmul.f32 0.3275911, %v6110_v44  ;;  %vm2149_vm4 = vcmp.eq.f32.partialorder %v2148_v30, 8.507059e+37 }
 0x2a1   :  { %v2948_v3 = vmul.f32 %v4042_v29, %v2918_v54  ;;  %v1875_v20 = vmul.f32 %v1869_v19, %v6096_v42  ;;  %v2147_v35 = vsel %vm2146_vm1, %v4040_v47, %v2143_v34  ;;  %4045 = vpow2.f32 %v1931_v11  ;;  %v6164_v11 = vld [vmem:[%s7082_s7 + $0x4] ss:$0 sm:$0xff] }
 0x2a2   :  { %v4044_v0 = vpop.eup %4043  ;;  %v6122_v36 = vsel %vm2149_vm4, %v2151_v10, %v2147_v35  ;;  %v6124_v43 = vadd.f32 1.0, %v2769_v50  ;;  %v7158_v27 = vrot.slane %v7157_v14, 2  ;;  %v7159_v58 = vrot.slane %v5695_v13, 2 }
 0x2a3   :  { %v2954_v21 = vsub.f32 1.0, %v2948_v3  ;;  %v1881_v12 = vadd.f32 1.4214138, %v1875_v20  ;;  %v2201_v8 = vmul.f32 1.0614054, %v6122_v36  ;;  %v2475_v53 = vmul.f32 %v4044_v0, %v6088_v25 }
 0x2a4   :  { %v6132_v55 = vsel %vm1669_vm9, %v7159_v58, %v7158_v27  ;;  %v2269_v17 = vmul.f32 1.442695, %v2261_v9  ;;  %v2483_v2 = vand.u32 2147483647, %v6088_v25  ;;  %v2590_v26 = vsub.f32 0.0, %v6072_v16 }
 0x2a5   :  { %4047 = vrcp.f32 %v6124_v43  ;;  %v2960_v63 = vmul.f32 %v2954_v21, %v2756_v59  ;;  %v1887_v47 = vmul.f32 %v1881_v12, %v6096_v42  ;;  %v2207_v22 = vadd.f32 -1.4531521, %v2201_v8 }
 0x2a6   :  { %v2476_v6 = vsub.f32 1.0, %v2475_v53  ;;  %vm2480_vm2 = vweird.f32 %v4044_v0  ;;  %v2485_v46 = vand.u32 2147483648, %v6088_v25  ;;  %v1698_v33 = vmul.f32 %v6144_v37, %v5695_v13 }
 0x2a7   :  { %v1709_v49 = vmul.f32 %v6151_v15, %v6132_v55  ;;  %v2966_v29 = vadd.f32 1.0, %v2960_v63  ;;  %v1893_v1 = vadd.f32 -0.28449672, %v1887_v47  ;;  %v2213_v61 = vmul.f32 %v2207_v22, %v6122_v36  ;;  %v4046_v39 = vpop.eup %4045  ;;  %v6200_v47 = vld [vmem:[%s7082_s7 + $0x5] ss:$0 sm:$0xff] }
 0x2a8   :  { %v2477_v4 = vmul.f32 %v4044_v0, %v2476_v6  ;;  %4049 = vpow2.f32 %v2269_v17  ;;  %vm2479_vm3 = vweird.f32 %v6088_v25  ;;  %v2596_v45 = vmul.f32 %v2590_v26, %v6072_v16 }
 0x2a9   :  { %v1715_v52 = vadd.f32 %v1709_v49, %v1698_v33  ;;  %v2972_v30 = vmul.f32 %v2966_v29, %v6057_v28  ;;  %v1899_v31 = vmul.f32 %v1893_v1, %v6096_v42  ;;  %v2219_v62 = vadd.f32 1.4214138, %v2213_v61  ;;  %vm2481_vm5 = vmor %vm2479_vm3, %vm2480_vm2  ;;  %v3076_v29 = vld [vmem:[%s7085_s10 + $0x20] sm:$0xff] }
 0x2aa   :  { %v2478_v32 = vadd.f32 %v4044_v0, %v2477_v4  ;;  %vm2484_vm6 = vcmp.eq.f32.partialorder %v2483_v2, 8.507059e+37  ;;  %v2486_v59 = vor.u32 1.1754944e-38, %v2485_v46  ;;  %v2047_v28 = vmul.f32 %v5653_v18, %v6132_v55  ;;  %v6184_v18 = vld [vmem:[%s7081_s6 + $0x9] ss:$0 sm:$0xff]  ;;  %3108 = vmatpush.msra.mxu2 %v3076_v29 }
 0x2ab   :  { %v4048_v5 = vpop.eup %4047  ;;  %v6167_v25 = vadd.f32 %v6164_v11, %v1715_v52  ;;  %3825 = vmatmul.msk.f32.gmra.mxu1 %vm563_vm10, %v2972_v30  ;;  %v1905_v16 = vadd.f32 0.2548296, %v1899_v31  ;;  %vm2081_vm7 = vcmp.ge.f32.partialorder %v6016_v57, 0.0  ;;  %v2225_v54 = vmul.f32 %v2219_v62, %v6122_v36  ;;  %v6224_v62 = vld [vmem:[%s7081_s6 + $0xe] ss:$0 sm:$0xff] }
 0x2ac   :  { %v2482_v19 = vsel %vm2481_vm5, %v4044_v0, %v2478_v32  ;;  %v2810_v34 = vmul.f32 %v4048_v5, %v6124_v43  ;;  %v2818_v9 = vand.u32 2147483647, %v6124_v43  ;;  %v2036_v3 = vmul.f32 %v6184_v18, %v5695_v13 }
 0x2ad   :  { %v6175_v10 = vsel %vm2484_vm6, %v2486_v59, %v2482_v19  ;;  %v6179_v50 = vmul.f32 0.70710677, %v6167_v25  ;;  %v1911_v20 = vmul.f32 %v1905_v16, %v6096_v42  ;;  %v2231_v35 = vadd.f32 -0.28449672, %v2225_v54  ;;  %v6237_v16 = vld [vmem:[%s7081_s6 + $0xa] ss:$0 sm:$0xff] }
 0x2ae   :  { %v2536_v0 = vmul.f32 1.0614054, %v6175_v10  ;;  %v2811_v27 = vsub.f32 1.0, %v2810_v34  ;;  %v4050_v58 = vpop.eup %4049  ;;  %vm2815_vm8 = vweird.f32 %v4048_v5  ;;  %v2820_v21 = vand.u32 2147483648, %v6124_v43 }
 0x2af   :  { %v6192_v12 = vand.u32 2147483647, %v6179_v50  ;;  %v2053_v8 = vadd.f32 %v2047_v28, %v2036_v3  ;;  %v1941_v53 = vmul.f32 %v4046_v39, %v1911_v20  ;;  %v2237_v17 = vmul.f32 %v2231_v35, %v6122_v36 }
 0x2b0   :  { %v2542_v2 = vadd.f32 -1.4531521, %v2536_v0  ;;  %v2812_v26 = vmul.f32 %v4048_v5, %v2811_v27  ;;  %v2604_v63 = vmul.f32 1.442695, %v2596_v45  ;;  %vm2814_vm11 = vweird.f32 %v6124_v43 }
 0x2b1   :  { %v1762_v42 = vmul.f32 0.3275911, %v6192_v12  ;;  %v6203_v22 = vadd.f32 %v6200_v47, %v2053_v8  ;;  %v1947_v6 = vsub.f32 1.0, %v1941_v53  ;;  %v2243_v46 = vadd.f32 0.2548296, %v2237_v17  ;;  %vm2816_vm12 = vmor %vm2814_vm11, %vm2815_vm8 }
 0x2b2   :  { %v2548_v33 = vmul.f32 %v2542_v2, %v6175_v10  ;;  %v2813_v49 = vadd.f32 %v4048_v5, %v2812_v26  ;;  %vm2819_vm13 = vcmp.eq.f32.partialorder %v2818_v9, 8.507059e+37  ;;  %v2821_v43 = vor.u32 1.1754944e-38, %v2820_v21 }
 0x2b3   :  { %v2925_v1 = vsub.f32 0.0, %v6110_v44  ;;  %v6211_v61 = vadd.f32 1.0, %v1762_v42  ;;  %v1953_v4 = vmul.f32 %v1947_v6, %v6117_v41  ;;  %v2249_v39 = vmul.f32 %v2243_v46, %v6122_v36 }
 0x2b4   :  { %v2554_v45 = vadd.f32 1.4214138, %v2548_v33  ;;  %v2817_v52 = vsel %vm2816_vm12, %v4048_v5, %v2813_v49  ;;  %v6219_v31 = vmul.f32 0.70710677, %v6203_v22  ;;  %v2382_v32 = vmul.f32 %v6224_v62, %v6132_v55 }
 0x2b5   :  { %v6215_v30 = vsel %vm2819_vm13, %v2821_v43, %v2817_v52  ;;  %4051 = vrcp.f32 %v6211_v61  ;;  %v1959_v41 = vadd.f32 1.0, %v1953_v4  ;;  %v2279_v59 = vmul.f32 %v4050_v58, %v2249_v39  ;;  %v6282_v52 = vld [vmem:[%s7081_s6 + $0xb] ss:$0 sm:$0xff] }
 0x2b6   :  { %v2560_v36 = vmul.f32 %v2554_v45, %v6175_v10  ;;  %v2871_v5 = vmul.f32 1.0614054, %v6215_v30  ;;  %v2087_v28 = vsel %vm2081_vm7, 1.0, %v7129_v56  ;;  %vm2416_vm14 = vcmp.ge.f32.partialorder %v6061_v48, 0.0  ;;  %v6270_v48 = vld [vmem:[%s7081_s6 + $0xf] ss:$0 sm:$0xff] }
 0x2b7   :  { %v2371_v54 = vmul.f32 %v6237_v16, %v5695_v13  ;;  %v1965_v19 = vmul.f32 %v1959_v41, %v6107_v7  ;;  %v2285_v34 = vsub.f32 1.0, %v2279_v59  ;;  %4053 = vpow2.f32 %v2604_v63 }
 0x2b8   :  { %v2566_v9 = vadd.f32 -0.28449672, %v2560_v36  ;;  %v2877_v3 = vadd.f32 -1.4531521, %v2871_v5  ;;  %v2931_v20 = vmul.f32 %v2925_v1, %v6110_v44  ;;  %v6244_v57 = vand.u32 2147483647, %v6219_v31 }
 0x2b9   :  { %v2388_v35 = vadd.f32 %v2382_v32, %v2371_v54  ;;  %v1668_v0 = vrot.slane %v5862_v24, 2  ;;  %3787 = vmatmul.msk.f32.gmra.mxu2 %vm563_vm10, %v1965_v19  ;;  %v2291_v27 = vmul.f32 %v2285_v34, %v2087_v28  ;;  %v2069_v8 = vmul.f32 0.5, %v5998_v38  ;;  %v6262_v38 = vld [vmem:[%s7082_s7 + $0x6] ss:$0 sm:$0xff] }
 0x2ba   :  { %v2572_v58 = vmul.f32 %v2566_v9, %v6175_v10  ;;  %v2883_v21 = vmul.f32 %v2877_v3, %v6215_v30  ;;  %v2404_v53 = vmul.f32 0.5, %v6039_v60  ;;  %v2422_v44 = vsel %vm2416_vm14, 1.0, %v7129_v56  ;;  %v6300_v9 = vld [vmem:[%s7082_s7 + $0x7] ss:$0 sm:$0xff] }
 0x2bb   :  { %v4052_v7 = vpop.eup %4051  ;;  %v2100_v17 = vmul.f32 0.3275911, %v6244_v57  ;;  %v2297_v2 = vadd.f32 1.0, %v2291_v27  ;;  %v2939_v6 = vmul.f32 1.442695, %v2931_v20  ;;  %v6265_v60 = vadd.f32 %v6262_v38, %v2388_v35 }
 0x2bc   :  { %v2578_v26 = vadd.f32 0.2548296, %v2572_v58  ;;  %v2889_v63 = vadd.f32 1.4214138, %v2883_v21  ;;  %v1817_v42 = vmul.f32 %v4052_v7, %v6211_v61  ;;  %v2717_v33 = vmul.f32 %v6270_v48, %v6132_v55 }
 0x2bd   :  { %v6257_v46 = vadd.f32 1.0, %v2100_v17  ;;  %v2303_v49 = vmul.f32 %v2297_v2, %v2069_v8  ;;  %v4054_v4 = vpop.eup %4053  ;;  %v1825_v39 = vand.u32 2147483647, %v6211_v61  ;;  %v1827_v45 = vand.u32 2147483648, %v6211_v61 }
 0x2be   :  { %v2584_v29 = vmul.f32 %v2578_v26, %v6175_v10  ;;  %v2895_v43 = vmul.f32 %v2889_v63, %v6215_v30  ;;  %v1818_v1 = vsub.f32 1.0, %v1817_v42  ;;  %v2706_v55 = vmul.f32 %v6282_v52, %v5695_v13 }
 0x2bf   :  { %4055 = vrcp.f32 %v6257_v46  ;;  %3800 = vmatmul.msk.f32.gmra.mxu3 %vm563_vm10, %v2303_v49  ;;  %vm1822_vm15 = vweird.f32 %v4052_v7  ;;  %v1918_v59 = vsub.f32 0.0, %v6192_v12  ;;  %v6289_v36 = vmul.f32 0.70710677, %v6265_v60 }
 0x2c0   :  { %v2614_v10 = vmul.f32 %v4054_v4, %v2584_v29  ;;  %v2901_v32 = vadd.f32 -0.28449672, %v2895_v43  ;;  %v1819_v41 = vmul.f32 %v4052_v7, %v1818_v1  ;;  %4057 = vpow2.f32 %v2939_v6 }
 0x2c1   :  { %v2723_v5 = vadd.f32 %v2717_v33, %v2706_v55  ;;  %vm1821_vm0 = vweird.f32 %v6211_v61  ;;  %vm2751_vm1 = vcmp.ge.f32.partialorder %v6091_v51, 0.0  ;;  %v1828_v13 = vor.u32 1.1754944e-38, %v1827_v45 }
 0x2c2   :  { %v2620_v28 = vsub.f32 1.0, %v2614_v10  ;;  %v2907_v54 = vmul.f32 %v2901_v32, %v6215_v30  ;;  %v1820_v19 = vadd.f32 %v4052_v7, %v1819_v41  ;;  %vm1823_vm4 = vmor %vm1821_vm0, %vm1822_vm15  ;;  %v6295_v34 = vand.u32 2147483647, %v6289_v36 }
 0x2c3   :  { %v6303_v3 = vadd.f32 %v6300_v9, %v2723_v5  ;;  %vm1826_vm2 = vcmp.eq.f32.partialorder %v1825_v39, 8.507059e+37  ;;  %v2739_v58 = vmul.f32 0.5, %v6075_v40  ;;  %v1924_v8 = vmul.f32 %v1918_v59, %v6192_v12 }
 0x2c4   :  { %v2626_v20 = vmul.f32 %v2620_v28, %v2422_v44  ;;  %v2913_v35 = vadd.f32 0.2548296, %v2907_v54  ;;  %v1824_v27 = vsel %vm1823_vm4, %v4052_v7, %v1820_v19  ;;  %v2435_v17 = vmul.f32 0.3275911, %v6295_v34 }
 0x2c5   :  { %v4056_v61 = vpop.eup %4055  ;;  %v6306_v21 = vsel %vm1826_vm2, %v1828_v13, %v1824_v27  ;;  %v2757_v7 = vsel %vm2751_vm1, 1.0, %v7129_v56  ;;  %v2256_v40 = vsub.f32 0.0, %v6244_v57  ;;  %v6320_v12 = vmul.f32 0.70710677, %v6303_v3 }
 0x2c6   :  { %v2632_v2 = vadd.f32 1.0, %v2626_v20  ;;  %v2919_v26 = vmul.f32 %v2913_v35, %v6215_v30  ;;  %v1864_v63 = vmul.f32 1.0614054, %v6306_v21  ;;  %v2155_v42 = vmul.f32 %v4056_v61, %v6257_v46  ;;  %v4058_v44 = vpop.eup %4057 }
 0x2c7   :  { %v6317_v6 = vadd.f32 1.0, %v2435_v17  ;;  %v1933_v43 = vmul.f32 1.442695, %v1924_v8  ;;  %v2163_v1 = vand.u32 2147483647, %v6257_v46  ;;  %v2165_v4 = vand.u32 2147483648, %v6257_v46 }
 0x2c8   :  { %v2638_v33 = vmul.f32 %v2632_v2, %v2404_v53  ;;  %v2949_v49 = vmul.f32 %v4058_v44, %v2919_v26  ;;  %v1870_v29 = vadd.f32 -1.4531521, %v1864_v63  ;;  %v2156_v30 = vsub.f32 1.0, %v2155_v42 }
 0x2c9   :  { %4059 = vrcp.f32 %v6317_v6  ;;  %vm2160_vm3 = vweird.f32 %v4056_v61  ;;  %v6328_v55 = vmul.f32 0.5, %v6167_v25  ;;  %vm2159_vm5 = vweird.f32 %v6257_v46 }
 0x2ca   :  { %3813 = vmatmul.msk.f32.gmra.mxu0 %vm563_vm10, %v2638_v33  ;;  %v2955_v51 = vsub.f32 1.0, %v2949_v49  ;;  %v1876_v39 = vmul.f32 %v1870_v29, %v6306_v21  ;;  %v2157_v45 = vmul.f32 %v4056_v61, %v2156_v30  ;;  %v2262_v53 = vmul.f32 %v2256_v40, %v6244_v57  ;;  %vm2161_vm7 = vmor %vm2159_vm5, %vm2160_vm3  ;;  %v6368_v30 = vld [vmem:[%s7081_s6 + $0xd] ss:$0 sm:$0xff] }
 0x2cb   :  { %v6333_v10 = vand.u32 2147483647, %v6320_v12  ;;  %v7160_v5 = vrot.slane %v7157_v14, 2  ;;  %vm1744_vm6 = vcmp.ge.f32.partialorder %v6179_v50, 0.0  ;;  %4061 = vpow2.f32 %v1933_v43 }
 0x2cc   :  { %v2961_v32 = vmul.f32 %v2955_v51, %v2757_v7  ;;  %v1882_v41 = vadd.f32 1.4214138, %v1876_v39  ;;  %v2158_v59 = vadd.f32 %v4056_v61, %v2157_v45  ;;  %v2166_v25 = vor.u32 1.1754944e-38, %v2165_v4 }
 0x2cd   :  { %v6341_v28 = vsel %vm1669_vm9, %v7160_v5, %v1668_v0  ;;  %v2770_v57 = vmul.f32 0.3275911, %v6333_v10  ;;  %vm2164_vm8 = vcmp.eq.f32.partialorder %v2163_v1, 8.507059e+37  ;;  %v2271_v35 = vmul.f32 1.442695, %v2262_v53 }
 0x2ce   :  { %v2967_v46 = vadd.f32 1.0, %v2961_v32  ;;  %v1888_v54 = vmul.f32 %v1882_v41, %v6306_v21  ;;  %v2162_v19 = vsel %vm2161_vm7, %v4056_v61, %v2158_v59  ;;  %v1710_v8 = vmul.f32 %v6151_v15, %v6341_v28 }
 0x2cf   :  { %v4060_v13 = vpop.eup %4059  ;;  %v6346_v20 = vsel %vm2164_vm8, %v2166_v25, %v2162_v19  ;;  %v6348_v27 = vadd.f32 1.0, %v2770_v57  ;;  %v1750_v61 = vsel %vm1744_vm6, 1.0, %v7129_v56  ;;  %v2591_v42 = vsub.f32 0.0, %v6295_v34 }
 0x2d0   :  { %v2973_v17 = vmul.f32 %v2967_v46, %v2739_v58  ;;  %v1894_v2 = vadd.f32 -0.28449672, %v1888_v54  ;;  %v2202_v26 = vmul.f32 1.0614054, %v6346_v20  ;;  %v2490_v63 = vmul.f32 %v4060_v13, %v6317_v6 }
 0x2d1   :  { %4063 = vrcp.f32 %v6348_v27  ;;  %v1699_v44 = vmul.f32 %v6144_v37, %v7157_v14  ;;  %v2498_v33 = vand.u32 2147483647, %v6317_v6  ;;  %v4062_v49 = vpop.eup %4061  ;;  %v2500_v50 = vand.u32 2147483648, %v6317_v6 }
 0x2d2   :  { %3826 = vmatmul.msk.f32.gmra.mxu1 %vm563_vm10, %v2973_v17  ;;  %v1900_v58 = vmul.f32 %v1894_v2, %v6306_v21  ;;  %v2208_v7 = vadd.f32 -1.4531521, %v2202_v26  ;;  %v2491_v40 = vsub.f32 1.0, %v2490_v63  ;;  %4065 = vpow2.f32 %v2271_v35 }
 0x2d3   :  { %v1716_v29 = vadd.f32 %v1710_v8, %v1699_v44  ;;  %v2048_v43 = vmul.f32 %v6368_v30, %v6341_v28  ;;  %vm2495_vm11 = vweird.f32 %v4060_v13  ;;  %vm2494_vm12 = vweird.f32 %v6317_v6 }
 0x2d4   :  { %v1906_v1 = vadd.f32 0.2548296, %v1900_v58  ;;  %v2214_v4 = vmul.f32 %v2208_v7, %v6346_v20  ;;  %v2492_v51 = vmul.f32 %v4060_v13, %v2491_v40  ;;  %v2597_v39 = vmul.f32 %v2591_v42, %v6295_v34  ;;  %vm2496_vm14 = vmor %vm2494_vm12, %vm2495_vm11 }
 0x2d5   :  { %v6376_v45 = vadd.f32 %v6164_v11, %v1716_v29  ;;  %v2037_v53 = vmul.f32 %v6184_v18, %v7157_v14  ;;  %vm2499_vm13 = vcmp.eq.f32.partialorder %v2498_v33, 8.507059e+37  ;;  %v2501_v25 = vor.u32 1.1754944e-38, %v2500_v50 }
 0x2d6   :  { %v1912_v32 = vmul.f32 %v1906_v1, %v6306_v21  ;;  %v2220_v41 = vadd.f32 1.4214138, %v2214_v4  ;;  %v2493_v59 = vadd.f32 %v4060_v13, %v2492_v51  ;;  %v2926_v57 = vsub.f32 0.0, %v6333_v10 }
 0x2d7   :  { %v4064_v5 = vpop.eup %4063  ;;  %v6383_v6 = vmul.f32 0.70710677, %v6376_v45  ;;  %v2054_v34 = vadd.f32 %v2048_v43, %v2037_v53  ;;  %vm2082_vm15 = vcmp.ge.f32.partialorder %v6219_v31, 0.0  ;;  %v2833_v17 = vand.u32 2147483647, %v6348_v27 }
 0x2d8   :  { %v1942_v46 = vmul.f32 %v4062_v49, %v1912_v32  ;;  %v2226_v54 = vmul.f32 %v2220_v41, %v6346_v20  ;;  %v2497_v19 = vsel %vm2496_vm14, %v4060_v13, %v2493_v59  ;;  %v2825_v21 = vmul.f32 %v4064_v5, %v6348_v27  ;;  %v4066_v35 = vpop.eup %4065  ;;  %v3075_v41 = vld [vmem:[%s7085_s10 + $0x18] sm:$0xff] }
 0x2d9   :  { %v6388_v8 = vsel %vm2499_vm13, %v2501_v25, %v2497_v19  ;;  %v2835_v2 = vand.u32 2147483648, %v6348_v27  ;;  %v6393_v26 = vand.u32 2147483647, %v6383_v6  ;;  %vm2830_vm0 = vweird.f32 %v4064_v5  ;;  %3109 = vmatpush.msra.mxu2 %v3075_v41 }
 0x2da   :  { %v1948_v63 = vsub.f32 1.0, %v1942_v46  ;;  %v2232_v42 = vadd.f32 -0.28449672, %v2226_v54  ;;  %v2537_v44 = vmul.f32 1.0614054, %v6388_v8  ;;  %v2826_v58 = vsub.f32 1.0, %v2825_v21 }
 0x2db   :  { %v1763_v13 = vmul.f32 0.3275911, %v6393_v26  ;;  %v6398_v7 = vadd.f32 %v6200_v47, %v2054_v34  ;;  %v2383_v40 = vmul.f32 %v6224_v62, %v6341_v28  ;;  %vm2829_vm1 = vweird.f32 %v6348_v27  ;;  %v3074_v27 = vld [vmem:[%s7085_s10 + $0x10] sm:$0xff] }
 0x2dc   :  { %v1954_v33 = vmul.f32 %v1948_v63, %v1750_v61  ;;  %v2238_v49 = vmul.f32 %v2232_v42, %v6346_v20  ;;  %v2543_v50 = vadd.f32 -1.4531521, %v2537_v44  ;;  %v2827_v29 = vmul.f32 %v4064_v5, %v2826_v58  ;;  %vm2831_vm2 = vmor %vm2829_vm1, %vm2830_vm0  ;;  %3110 = vmatpush.msra.mxu2 %v3074_v27 }
 0x2dd   :  { %vm6404_vm4 = vcmp.eq.f32.partialorder %v2833_v17, 8.507059e+37  ;;  %v6408_v1 = vadd.f32 1.0, %v1763_v13  ;;  %v2372_v4 = vmul.f32 %v6237_v16, %v7157_v14  ;;  %v2836_v59 = vor.u32 1.1754944e-38, %v2835_v2 }
 0x2de   :  { %v1960_v51 = vadd.f32 1.0, %v1954_v33  ;;  %v2244_v53 = vadd.f32 0.2548296, %v2238_v49  ;;  %v2549_v32 = vmul.f32 %v2543_v50, %v6388_v8  ;;  %v2828_v61 = vadd.f32 %v4064_v5, %v2827_v29 }
 0x2df   :  { %4067 = vrcp.f32 %v6408_v1  ;;  %v6422_v25 = vmul.f32 0.70710677, %v6398_v7  ;;  %v2389_v34 = vadd.f32 %v2383_v40, %v2372_v4  ;;  %v2606_v17 = vmul.f32 1.442695, %v2597_v39 }
 0x2e0   :  { %v1966_v46 = vmul.f32 %v1960_v51, %v6328_v55  ;;  %v2250_v54 = vmul.f32 %v2244_v53, %v6346_v20  ;;  %v2555_v19 = vadd.f32 1.4214138, %v2549_v32  ;;  %v2832_v21 = vsel %vm2831_vm2, %v4064_v5, %v2828_v61 }
 0x2e1   :  { %v6428_v63 = vsel %vm6404_vm4, %v2836_v59, %v2832_v21  ;;  %v2932_v2 = vmul.f32 %v2926_v57, %v6333_v10  ;;  %v2070_v55 = vmul.f32 0.5, %v6203_v22  ;;  %v2088_v20 = vsel %vm2082_vm15, 1.0, %v7129_v56 }
 0x2e2   :  { %3788 = vmatmul.msk.f32.gmra.mxu2 %vm563_vm10, %v1966_v46  ;;  %v2280_v42 = vmul.f32 %v4066_v35, %v2250_v54  ;;  %v2561_v44 = vmul.f32 %v2555_v19, %v6388_v8  ;;  %v2872_v58 = vmul.f32 1.0614054, %v6428_v63  ;;  %v6439_v39 = vand.u32 2147483647, %v6422_v25 }
 0x2e3   :  { %v6442_v5 = vadd.f32 %v6262_v38, %v2389_v34  ;;  %vm2417_vm3 = vcmp.ge.f32.partialorder %v6289_v36, 0.0  ;;  %v6446_v40 = vmul.f32 0.5, %v6265_v60  ;;  %4069 = vpow2.f32 %v2606_v17 }
 0x2e4   :  { %v2286_v10 = vsub.f32 1.0, %v2280_v42  ;;  %v2567_v57 = vadd.f32 -0.28449672, %v2561_v44  ;;  %v2878_v35 = vadd.f32 -1.4531521, %v2872_v58  ;;  %v2423_v43 = vsel %vm2417_vm3, 1.0, %v7129_v56 }
 0x2e5   :  { %v4068_v13 = vpop.eup %4067  ;;  %v2941_v22 = vmul.f32 1.442695, %v2932_v2  ;;  %v2101_v31 = vmul.f32 0.3275911, %v6439_v39  ;;  %v1840_v36 = vand.u32 2147483647, %v6408_v1  ;;  %v2718_v27 = vmul.f32 %v6270_v48, %v6341_v28 }
 0x2e6   :  { %v2292_v33 = vmul.f32 %v2286_v10, %v2088_v20  ;;  %v2573_v49 = vmul.f32 %v2567_v57, %v6388_v8  ;;  %v2884_v50 = vmul.f32 %v2878_v35, %v6428_v63  ;;  %v1832_v29 = vmul.f32 %v4068_v13, %v6408_v1 }
 0x2e7   :  { %v6454_v4 = vadd.f32 1.0, %v2101_v31  ;;  %v6457_v60 = vmul.f32 0.70710677, %v6442_v5  ;;  %vm1837_vm5 = vweird.f32 %v4068_v13  ;;  %v1842_v41 = vand.u32 2147483648, %v6408_v1 }
 0x2e8   :  { %v2298_v51 = vadd.f32 1.0, %v2292_v33  ;;  %v2579_v53 = vadd.f32 0.2548296, %v2573_v49  ;;  %v2890_v32 = vadd.f32 1.4214138, %v2884_v50  ;;  %v1833_v61 = vsub.f32 1.0, %v1832_v29 }
 0x2e9   :  { %4071 = vrcp.f32 %v6454_v4  ;;  %v4070_v19 = vpop.eup %4069  ;;  %v6466_v21 = vmul.f32 0.5, %v6303_v3  ;;  %vm1836_vm6 = vweird.f32 %v6408_v1  ;;  %v2707_v17 = vmul.f32 %v6282_v52, %v7157_v14  ;;  %v7165_v49 = vld [vmem:[#allocation13_spill] sm:$0xff] }
 0x2ea   :  { %v2304_v59 = vmul.f32 %v2298_v51, %v2070_v55  ;;  %v2585_v34 = vmul.f32 %v2579_v53, %v6388_v8  ;;  %v2896_v46 = vmul.f32 %v2890_v32, %v6428_v63  ;;  %v1834_v54 = vmul.f32 %v4068_v13, %v1833_v61  ;;  %vm1838_vm7 = vmor %vm1836_vm6, %vm1837_vm5 }
 0x2eb   :  { %4073 = vpow2.f32 %v2941_v22  ;;  %v6473_v8 = vand.u32 2147483647, %v6457_v60  ;;  %vm1841_vm8 = vcmp.eq.f32.partialorder %v1840_v36, 8.507059e+37  ;;  %v1843_v3 = vor.u32 1.1754944e-38, %v1842_v41  ;;  %v7163_v22 = vld [vmem:[#allocation15_spill] sm:$0xff] }
 0x2ec   :  { %v2009_v2 = vpop.f32.mrf.mxu2  ;;  %3801 = vmatmul.msk.f32.gmra.mxu3 %vm563_vm10, %v2304_v59  ;;  %v2615_v28 = vmul.f32 %v4070_v19, %v2585_v34  ;;  %v2902_v42 = vadd.f32 -0.28449672, %v2896_v46  ;;  %v1835_v44 = vadd.f32 %v4068_v13, %v1834_v54  ;;  %v1919_v58 = vsub.f32 0.0, %v6393_v26 }
 0x2ed   :  { %v2724_v55 = vadd.f32 %v2718_v27, %v2707_v17  ;;  %v2436_v10 = vmul.f32 0.3275911, %v6473_v8  ;;  %vm2752_vm11 = vcmp.ge.f32.partialorder %v6320_v12, 0.0  ;;  %v7164_v31 = vrot.slane %v7163_v22, 2 }
 0x2ee   :  { %v2621_v1 = vsub.f32 1.0, %v2615_v28  ;;  %v2908_v20 = vmul.f32 %v2902_v42, %v6428_v63  ;;  %v1839_v14 = vsel %vm1838_vm7, %v4068_v13, %v1835_v44  ;;  %vm1681_vm12 = vcmp.lt.s32.totalorder %v7165_v49, 22 }
 0x2ef   :  { %v4072_v57 = vpop.eup %4071  ;;  %v6480_v35 = vsel %vm1841_vm8, %v1843_v3, %v1839_v14  ;;  %v1675_v33 = vsel %vm1669_vm9, %v1668_v0, %v7164_v31  ;;  %v1925_v53 = vmul.f32 %v1919_v58, %v6393_v26  ;;  %v2178_v32 = vand.u32 2147483647, %v6454_v4 }
 0x2f0   :  { %v2627_v50 = vmul.f32 %v2621_v1, %v2423_v43  ;;  %v2914_v29 = vadd.f32 0.2548296, %v2908_v20  ;;  %v1865_v13 = vmul.f32 1.0614054, %v6480_v35  ;;  %v2170_v36 = vmul.f32 %v4072_v57, %v6454_v4 }
 0x2f1   :  { %v4074_v51 = vpop.eup %4073  ;;  %v6493_v61 = vadd.f32 1.0, %v2436_v10  ;;  %v6496_v41 = vadd.f32 %v6300_v9, %v2724_v55  ;;  %vm2175_vm9 = vweird.f32 %v4072_v57  ;;  %v2180_v34 = vand.u32 2147483648, %v6454_v4 }
 0x2f2   :  { %v2633_v27 = vadd.f32 1.0, %v2627_v50  ;;  %v2920_v0 = vmul.f32 %v2914_v29, %v6428_v63  ;;  %v1871_v59 = vadd.f32 -1.4531521, %v1865_v13  ;;  %v2171_v43 = vsub.f32 1.0, %v2170_v36 }
 0x2f3   :  { %4075 = vrcp.f32 %v6493_v61  ;;  %v6503_v26 = vsel %vm1681_vm12, %v1675_v33, 0.0  ;;  %v2682_v2 = vpop.f32.mrf.mxu0  ;;  %v2758_v63 = vsel %vm2752_vm11, 1.0, %v7129_v56  ;;  %v1935_v28 = vmul.f32 1.442695, %v1925_v53 }
 0x2f4   :  { %v2639_v46 = vmul.f32 %v2633_v27, %v6446_v40  ;;  %v2950_v54 = vmul.f32 %v4074_v51, %v2920_v0  ;;  %v1877_v19 = vmul.f32 %v1871_v59, %v6480_v35  ;;  %v2172_v17 = vmul.f32 %v4072_v57, %v2171_v43 }
 0x2f5   :  { %v2257_v42 = vsub.f32 0.0, %v6439_v39  ;;  %v6512_v44 = vmul.f32 0.70710677, %v6496_v41  ;;  %vm2174_vm13 = vweird.f32 %v6454_v4  ;;  %v2181_v55 = vor.u32 1.1754944e-38, %v2180_v34 }
 0x2f6   :  { %3814 = vmatmul.msk.f32.gmra.mxu0 %vm563_vm10, %v2639_v46  ;;  %v2956_v3 = vsub.f32 1.0, %v2950_v54  ;;  %v1883_v58 = vadd.f32 1.4214138, %v1877_v19  ;;  %v2173_v40 = vadd.f32 %v4072_v57, %v2172_v17  ;;  %vm2176_vm14 = vmor %vm2174_vm13, %vm2175_vm9  ;;  %v1700_v12 = vmul.f32 %v6144_v37, %v5862_v24 }
 0x2f7   :  { %v6518_v1 = vand.u32 2147483647, %v6512_v44  ;;  %v1711_v20 = vmul.f32 %v6151_v15, %v6503_v26  ;;  %vm2179_vm15 = vcmp.eq.f32.partialorder %v2178_v32, 8.507059e+37  ;;  %vm1745_vm0 = vcmp.ge.f32.partialorder %v6383_v6, 0.0 }
 0x2f8   :  { %v2962_v14 = vmul.f32 %v2956_v3, %v2758_v63  ;;  %v1889_v10 = vmul.f32 %v1883_v58, %v6480_v35  ;;  %v2177_v22 = vsel %vm2176_vm14, %v4072_v57, %v2173_v40  ;;  %v3017_v50 = vpop.f32.mrf.mxu1  ;;  %4077 = vpow2.f32 %v1935_v28 }
 0x2f9   :  { %v4076_v31 = vpop.eup %4075  ;;  %v6526_v4 = vsel %vm2179_vm15, %v2181_v55, %v2177_v22  ;;  %v2771_v33 = vmul.f32 0.3275911, %v6518_v1  ;;  %v1717_v49 = vadd.f32 %v1711_v20, %v1700_v12  ;;  %v2263_v57 = vmul.f32 %v2257_v42, %v6439_v39 }
 0x2fa   :  { %v2347_v29 = vpop.f32.mrf.mxu3  ;;  %v2968_v13 = vadd.f32 1.0, %v2962_v14  ;;  %v1895_v37 = vadd.f32 -0.28449672, %v1889_v10  ;;  %v2203_v36 = vmul.f32 1.0614054, %v6526_v4  ;;  %v2505_v15 = vmul.f32 %v4076_v31, %v6493_v61 }
 0x2fb   :  { %v6532_v51 = vadd.f32 1.0, %v2771_v33  ;;  %v6535_v53 = vadd.f32 %v6164_v11, %v1717_v49  ;;  %v1733_v43 = vmul.f32 0.5, %v6376_v45  ;;  %v2513_v34 = vand.u32 2147483647, %v6493_v61 }
 0x2fc   :  { %v2974_v32 = vmul.f32 %v2968_v13, %v6466_v21  ;;  %v1901_v27 = vmul.f32 %v1895_v37, %v6480_v35  ;;  %v2209_v0 = vadd.f32 -1.4531521, %v2203_v36  ;;  %v2506_v59 = vsub.f32 1.0, %v2505_v15 }
 0x2fd   :  { %v2515_v46 = vand.u32 2147483648, %v6493_v61  ;;  %4079 = vrcp.f32 %v6532_v51  ;;  %vm2510_vm1 = vweird.f32 %v4076_v31  ;;  %v1751_v21 = vsel %vm1745_vm0, 1.0, %v7129_v56 }
 0x2fe   :  { %3827 = vmatmul.msk.f32.gmra.mxu1 %vm563_vm10, %v2974_v32  ;;  %v1907_v39 = vadd.f32 0.2548296, %v1901_v27  ;;  %v2215_v11 = vmul.f32 %v2209_v0, %v6526_v4  ;;  %v2507_v54 = vmul.f32 %v4076_v31, %v2506_v59  ;;  %v2273_v19 = vmul.f32 1.442695, %v2263_v57  ;;  %v4078_v42 = vpop.eup %4077 }
 0x2ff   :  { %v2592_v45 = vsub.f32 0.0, %v6473_v8  ;;  %v6550_v17 = vmul.f32 0.70710677, %v6535_v53  ;;  %vm2509_vm4 = vweird.f32 %v6493_v61  ;;  %v2516_v3 = vor.u32 1.1754944e-38, %v2515_v46 }
 0x300   :  { %v1913_v2 = vmul.f32 %v1907_v39, %v6480_v35  ;;  %v2221_v63 = vadd.f32 1.4214138, %v2215_v11  ;;  %v2508_v28 = vadd.f32 %v4076_v31, %v2507_v54  ;;  %vm2511_vm2 = vmor %vm2509_vm4, %vm2510_vm1  ;;  %v2038_v6 = vmul.f32 %v6184_v18, %v5862_v24 }
 0x301   :  { %v6555_v58 = vand.u32 2147483647, %v6550_v17  ;;  %v2049_v40 = vmul.f32 %v6368_v30, %v6503_v26  ;;  %vm2514_vm3 = vcmp.eq.f32.partialorder %v2513_v34, 8.507059e+37  ;;  %v6563_v61 = vmul.f32 0.5, %v6398_v7 }
 0x302   :  { %v1943_v55 = vmul.f32 %v4078_v42, %v1913_v2  ;;  %v2227_v12 = vmul.f32 %v2221_v63, %v6526_v4  ;;  %v2512_v35 = vsel %vm2511_vm2, %v4076_v31, %v2508_v28  ;;  %4081 = vpow2.f32 %v2273_v19 }
 0x303   :  { %v4080_v20 = vpop.eup %4079  ;;  %v6565_v14 = vsel %vm2514_vm3, %v2516_v3, %v2512_v35  ;;  %v1764_v10 = vmul.f32 0.3275911, %v6555_v58  ;;  %v2055_v22 = vadd.f32 %v2049_v40, %v2038_v6  ;;  %v2598_v50 = vmul.f32 %v2592_v45, %v6473_v8 }
 0x304   :  { %v1949_v33 = vsub.f32 1.0, %v1943_v55  ;;  %v2233_v49 = vadd.f32 -0.28449672, %v2227_v12  ;;  %v2538_v18 = vmul.f32 1.0614054, %v6565_v14  ;;  %v2840_v30 = vmul.f32 %v4080_v20, %v6532_v51 }
 0x305   :  { %v2848_v31 = vand.u32 2147483647, %v6532_v51  ;;  %v6572_v29 = vadd.f32 1.0, %v1764_v10  ;;  %vm2845_vm5 = vweird.f32 %v4080_v20  ;;  %v2850_v15 = vand.u32 2147483648, %v6532_v51 }
 0x306   :  { %v1955_v7 = vmul.f32 %v1949_v33, %v1751_v21  ;;  %v2239_v13 = vmul.f32 %v2233_v49, %v6526_v4  ;;  %v2544_v37 = vadd.f32 -1.4531521, %v2538_v18  ;;  %v2841_v36 = vsub.f32 1.0, %v2840_v30 }
 0x307   :  { %4083 = vrcp.f32 %v6572_v29  ;;  %v6578_v57 = vadd.f32 %v6200_v47, %v2055_v22  ;;  %vm2083_vm6 = vcmp.ge.f32.partialorder %v6422_v25, 0.0  ;;  %v2608_v59 = vmul.f32 1.442695, %v2598_v50  ;;  %v3073_v47 = vld [vmem:[%s7085_s10 + $0x8] sm:$0xff] }
 0x308   :  { %v1961_v32 = vadd.f32 1.0, %v1955_v7  ;;  %v2245_v27 = vadd.f32 0.2548296, %v2239_v13  ;;  %v2550_v8 = vmul.f32 %v2544_v37, %v6565_v14  ;;  %v2842_v0 = vmul.f32 %v4080_v20, %v2841_v36  ;;  %v4082_v21 = vpop.eup %4081  ;;  %3111 = vmatpush.msra.mxu2 %v3073_v47 }
 0x309   :  { %vm2844_vm7 = vweird.f32 %v6532_v51  ;;  %v2927_v34 = vsub.f32 0.0, %v6518_v1  ;;  %v2851_v19 = vor.u32 1.1754944e-38, %v2850_v15  ;;  %v6590_v45 = vmul.f32 0.70710677, %v6578_v57 }
 0x30a   :  { %v1967_v46 = vmul.f32 %v1961_v32, %v1733_v43  ;;  %v2251_v39 = vmul.f32 %v2245_v27, %v6526_v4  ;;  %v2556_v11 = vadd.f32 1.4214138, %v2550_v8  ;;  %v2843_v54 = vadd.f32 %v4080_v20, %v2842_v0  ;;  %vm2846_vm8 = vmor %vm2844_vm7, %vm2845_vm5 }
 0x30b   :  { %v2373_v51 = vmul.f32 %v6237_v16, %v5862_v24  ;;  %v2384_v4 = vmul.f32 %v6224_v62, %v6503_v26  ;;  %vm2849_vm11 = vcmp.eq.f32.partialorder %v2848_v31, 8.507059e+37  ;;  %v2089_v42 = vsel %vm2083_vm6, 1.0, %v7129_v56 }
 0x30c   :  { %3789 = vmatmul.msk.f32.gmra.mxu2 %vm563_vm10, %v1967_v46  ;;  %v2281_v43 = vmul.f32 %v4082_v21, %v2251_v39  ;;  %v2562_v2 = vmul.f32 %v2556_v11, %v6565_v14  ;;  %v2847_v63 = vsel %vm2846_vm8, %v4080_v20, %v2843_v54  ;;  %v6604_v6 = vand.u32 2147483647, %v6590_v45 }
 0x30d   :  { %v4084_v28 = vpop.eup %4083  ;;  %v6601_v3 = vsel %vm2849_vm11, %v2851_v19, %v2847_v63  ;;  %v2390_v16 = vadd.f32 %v2384_v4, %v2373_v51  ;;  %4085 = vpow2.f32 %v2608_v59  ;;  %v2933_v35 = vmul.f32 %v2927_v34, %v6518_v1 }
 0x30e   :  { %v2287_v40 = vsub.f32 1.0, %v2281_v43  ;;  %v2568_v62 = vadd.f32 -0.28449672, %v2562_v2  ;;  %v2873_v55 = vmul.f32 1.0614054, %v6601_v3  ;;  %v1847_v12 = vmul.f32 %v4084_v28, %v6572_v29 }
 0x30f   :  { %v1855_v20 = vand.u32 2147483647, %v6572_v29  ;;  %v2102_v25 = vmul.f32 0.3275911, %v6604_v6  ;;  %vm1852_vm12 = vweird.f32 %v4084_v28  ;;  %v1857_v18 = vand.u32 2147483648, %v6572_v29 }
 0x310   :  { %v2293_v10 = vmul.f32 %v2287_v40, %v2089_v42  ;;  %v2574_v22 = vmul.f32 %v2568_v62, %v6565_v14  ;;  %v2879_v33 = vadd.f32 -1.4531521, %v2873_v55  ;;  %v1848_v49 = vsub.f32 1.0, %v1847_v12 }
 0x311   :  { %v6613_v30 = vadd.f32 1.0, %v2102_v25  ;;  %v6616_v50 = vadd.f32 %v6262_v38, %v2390_v16  ;;  %vm2418_vm9 = vcmp.ge.f32.partialorder %v6457_v60, 0.0  ;;  %vm1851_vm13 = vweird.f32 %v6572_v29 }
 0x312   :  { %v2299_v31 = vadd.f32 1.0, %v2293_v10  ;;  %v2580_v7 = vadd.f32 0.2548296, %v2574_v22  ;;  %v2885_v1 = vmul.f32 %v2879_v33, %v6601_v3  ;;  %v1849_v13 = vmul.f32 %v4084_v28, %v1848_v49  ;;  %vm1853_vm14 = vmor %vm1851_vm13, %vm1852_vm12 }
 0x313   :  { %4087 = vrcp.f32 %v6613_v30  ;;  %v2719_v37 = vmul.f32 %v6270_v48, %v6503_v26  ;;  %v4086_v27 = vpop.eup %4085  ;;  %v2943_v8 = vmul.f32 1.442695, %v2933_v35  ;;  %vm1856_vm15 = vcmp.eq.f32.partialorder %v1855_v20, 8.507059e+37 }
 0x314   :  { %v2305_v36 = vmul.f32 %v2299_v31, %v6563_v61  ;;  %v2586_v15 = vmul.f32 %v2580_v7, %v6565_v14  ;;  %v2891_v38 = vadd.f32 1.4214138, %v2885_v1  ;;  %v1850_v32 = vadd.f32 %v4084_v28, %v1849_v13 }
 0x315   :  { %v1858_v0 = vor.u32 1.1754944e-38, %v1857_v18  ;;  %v2708_v29 = vmul.f32 %v6282_v52, %v5862_v24  ;;  %v6632_v61 = vmul.f32 0.70710677, %v6616_v50  ;;  %v1920_v34 = vsub.f32 0.0, %v6555_v58 }
 0x316   :  { %3802 = vmatmul.msk.f32.gmra.mxu3 %vm563_vm10, %v2305_v36  ;;  %v2616_v59 = vmul.f32 %v4086_v27, %v2586_v15  ;;  %v2897_v48 = vmul.f32 %v2891_v38, %v6601_v3  ;;  %v1854_v26 = vsel %vm1853_vm14, %v4084_v28, %v1850_v32  ;;  %v2406_v39 = vmul.f32 0.5, %v6442_v5 }
 0x317   :  { %v6634_v14 = vsel %vm1856_vm15, %v1858_v0, %v1854_v26  ;;  %v2725_v46 = vadd.f32 %v2719_v37, %v2708_v29  ;;  %v2424_v47 = vsel %vm2418_vm9, 1.0, %v7129_v56  ;;  %4089 = vpow2.f32 %v2943_v8 }
 0x318   :  { %v2622_v11 = vsub.f32 1.0, %v2616_v59  ;;  %v2903_v54 = vadd.f32 -0.28449672, %v2897_v48  ;;  %v1866_v24 = vmul.f32 1.0614054, %v6634_v14  ;;  %vm2753_vm0 = vcmp.ge.f32.partialorder %v6512_v44, 0.0 }
 0x319   :  { %v4088_v52 = vpop.eup %4087  ;;  %v6643_v21 = vand.u32 2147483647, %v6632_v61  ;;  %v6646_v19 = vadd.f32 %v6300_v9, %v2725_v46  ;;  %v1926_v2 = vmul.f32 %v1920_v34, %v6555_v58  ;;  %v2193_v60 = vand.u32 2147483647, %v6613_v30 }
 0x31a   :  { %v2628_v51 = vmul.f32 %v2622_v11, %v2424_v47  ;;  %v2909_v4 = vmul.f32 %v2903_v54, %v6601_v3  ;;  %v1872_v5 = vadd.f32 -1.4531521, %v1866_v24  ;;  %v2185_v43 = vmul.f32 %v4088_v52, %v6613_v30 }
 0x31b   :  { %v2437_v63 = vmul.f32 0.3275911, %v6643_v21  ;;  %vm2190_vm1 = vweird.f32 %v4088_v52  ;;  %v2195_v40 = vand.u32 2147483648, %v6613_v30  ;;  %v6657_v55 = vmul.f32 0.70710677, %v6646_v19 }
 0x31c   :  { %v2634_v28 = vadd.f32 1.0, %v2628_v51  ;;  %v2915_v42 = vadd.f32 0.2548296, %v2909_v4  ;;  %v1878_v16 = vmul.f32 %v1872_v5, %v6634_v14  ;;  %v2186_v9 = vsub.f32 1.0, %v2185_v43 }
 0x31d   :  { %v2443_v62 = vadd.f32 1.0, %v2437_v63  ;;  %v4090_v25 = vpop.eup %4089  ;;  %v1937_v10 = vmul.f32 1.442695, %v1926_v2  ;;  %vm2189_vm4 = vweird.f32 %v6613_v30  ;;  %v2759_v18 = vsel %vm2753_vm0, 1.0, %v7129_v56  ;;  %v7167_v63 = vld [vmem:[#allocation12_spill] sm:$0xff] }
 0x31e   :  { %v2640_v12 = vmul.f32 %v2634_v28, %v2406_v39  ;;  %v2921_v35 = vmul.f32 %v2915_v42, %v6601_v3  ;;  %v1884_v58 = vadd.f32 1.4214138, %v1878_v16  ;;  %v2187_v20 = vmul.f32 %v4088_v52, %v2186_v9  ;;  %vm2191_vm2 = vmor %vm2189_vm4, %vm2190_vm1 }
 0x31f   :  { %4091 = vrcp.f32 %v2443_v62  ;;  %v2196_v3 = vor.u32 1.1754944e-38, %v2195_v40  ;;  %v6668_v31 = vand.u32 2147483647, %v6657_v55  ;;  %vm2194_vm3 = vcmp.eq.f32.partialorder %v2193_v60, 8.507059e+37 }
 0x320   :  { %3815 = vmatmul.msk.f32.gmra.mxu0 %vm563_vm10, %v2640_v12  ;;  %v2951_v22 = vmul.f32 %v4090_v25, %v2921_v35  ;;  %v1890_v33 = vmul.f32 %v1884_v58, %v6634_v14  ;;  %v2188_v49 = vadd.f32 %v4088_v52, %v2187_v20  ;;  %4093 = vpow2.f32 %v1937_v10 }
 0x321   :  { %v2258_v36 = vsub.f32 0.0, %v6604_v6  ;;  %v2772_v30 = vmul.f32 0.3275911, %v6668_v31  ;;  %v2741_v27 = vmul.f32 0.5, %v6496_v41  ;;  %vm1746_vm5 = vcmp.ge.f32.partialorder %v6550_v17, 0.0 }
 0x322   :  { %v2957_v7 = vsub.f32 1.0, %v2951_v22  ;;  %v1896_v1 = vadd.f32 -0.28449672, %v1890_v33  ;;  %v2192_v13 = vsel %vm2191_vm2, %v4088_v52, %v2188_v49  ;;  %v2528_v41 = vand.u32 2147483647, %v2443_v62 }
 0x323   :  { %v6670_v37 = vsel %vm2194_vm3, %v2196_v3, %v2192_v13  ;;  %v6677_v8 = vadd.f32 1.0, %v2772_v30  ;;  %v2264_v26 = vmul.f32 %v2258_v36, %v6604_v6  ;;  %v2530_v24 = vand.u32 2147483648, %v2443_v62  ;;  %v7166_v6 = vld [vmem:[#allocation9_spill] sm:$0xff] }
 0x324   :  { %v2963_v15 = vmul.f32 %v2957_v7, %v2759_v18  ;;  %v1902_v44 = vmul.f32 %v1896_v1, %v6634_v14  ;;  %v2204_v38 = vmul.f32 1.0614054, %v6670_v37  ;;  %v3035_v4 = vrot.slane %v7166_v6, 7 }
 0x325   :  { %v4092_v32 = vpop.eup %4091  ;;  %4095 = vrcp.f32 %v6677_v8  ;;  %v2275_v5 = vmul.f32 1.442695, %v2264_v26  ;;  %vm2524_vm7 = vweird.f32 %v2443_v62  ;;  %v3038_v28 = vrot.slane %v7167_v63, 7 }
 0x326   :  { %v2969_v0 = vadd.f32 1.0, %v2963_v15  ;;  %v1908_v29 = vadd.f32 0.2548296, %v1902_v44  ;;  %v2210_v59 = vadd.f32 -1.4531521, %v2204_v38  ;;  %v2520_v48 = vmul.f32 %v4092_v32, %v2443_v62  ;;  %v4094_v54 = vpop.eup %4093  ;;  %v3072_v15 = vld [vmem:[%s7085_s10] sm:$0xff] }
 0x327   :  { %vm2525_vm6 = vweird.f32 %v4092_v32  ;;  %v1752_v42 = vsel %vm1746_vm5, 1.0, %v7129_v56  ;;  %vm2529_vm11 = vcmp.eq.f32.partialorder %v2528_v41, 8.507059e+37  ;;  %v2531_v16 = vor.u32 1.1754944e-38, %v2530_v24  ;;  %v6713_v44 = vld [vmem:[%s7084_s9 + $0x1] ss:$0 sm:$0xff]  ;;  %3112 = vmatpush.msra.mxu2 %v3072_v15  ;;  %v7168_v24 = vld [vmem:[#allocation10_spill] sm:$0xff] }
 0x328   :  { %v2975_v34 = vmul.f32 %v2969_v0, %v2741_v27  ;;  %v1914_v46 = vmul.f32 %v1908_v29, %v6634_v14  ;;  %v2216_v39 = vmul.f32 %v2210_v59, %v6670_v37  ;;  %v2521_v11 = vsub.f32 1.0, %v2520_v48  ;;  %vm2526_vm8 = vmor %vm2524_vm7, %vm2525_vm6 }
 0x329   :  { %v1734_v58 = vmul.f32 0.5, %v6535_v53  ;;  %4097 = vpow2.f32 %v2275_v5  ;;  %v2593_v62 = vsub.f32 0.0, %v6643_v21  ;;  %vm3039_vm12 = vcmp.lt.s32.totalorder %v4407_v23, 1  ;;  %v2684_v5 = vpop.f32.mrf.mxu0 }
 0x32a   :  { %3828 = vmatmul.msk.f32.gmra.mxu1 %vm563_vm10, %v2975_v34  ;;  %v1944_v52 = vmul.f32 %v4094_v54, %v1914_v46  ;;  %v2222_v47 = vadd.f32 1.4214138, %v2216_v39  ;;  %v2522_v51 = vmul.f32 %v4092_v32, %v2521_v11  ;;  %v2863_v33 = vand.u32 2147483647, %v6677_v8  ;;  %v2349_v34 = vpop.f32.mrf.mxu3  ;;  %v3057_v46 = vpop.permute.xlu0 %3056 }
 0x32b   :  { %v4096_v60 = vpop.eup %4095  ;;  %v2865_v49 = vand.u32 2147483648, %v6677_v8  ;;  %vm3044_vm13 = vcmp.ge.s32.totalorder %v4407_v23, 1  ;;  %v2599_v1 = vmul.f32 %v2593_v62, %v6643_v21  ;;  %vm2859_vm14 = vweird.f32 %v6677_v8 }
 0x32c   :  { %v1950_v43 = vsub.f32 1.0, %v1944_v52  ;;  %v2228_v14 = vmul.f32 %v2222_v47, %v6670_v37  ;;  %v2523_v2 = vadd.f32 %v4092_v32, %v2522_v51  ;;  %v2855_v35 = vmul.f32 %v4096_v60, %v6677_v8 }
 0x32d   :  { %vm2860_vm9 = vweird.f32 %v4096_v60  ;;  %v3043_v21 = vsel %vm3039_vm12, %v3038_v28, %v3035_v4  ;;  %vm2084_vm15 = vcmp.ge.f32.partialorder %v6590_v45, 0.0  ;;  %vm2864_vm1 = vcmp.eq.f32.partialorder %v2863_v33, 8.507059e+37 }
 0x32e   :  { %v1956_v9 = vmul.f32 %v1950_v43, %v1752_v42  ;;  %v2234_v40 = vadd.f32 -0.28449672, %v2228_v14  ;;  %v2527_v12 = vsel %vm2526_vm8, %v4092_v32, %v2523_v2  ;;  %v2856_v22 = vsub.f32 1.0, %v2855_v35  ;;  %vm2861_vm0 = vmor %vm2859_vm14, %vm2860_vm9  ;;  %v2011_v32 = vpop.f32.mrf.mxu2 }
 0x32f   :  { %v6693_v20 = vsel %vm2529_vm11, %v2531_v16, %v2527_v12  ;;  %v4098_v38 = vpop.eup %4097  ;;  %v2026_v29 = vadd.f32 %v6713_v44, %v2011_v32  ;;  %v2610_v59 = vmul.f32 1.442695, %v2599_v1  ;;  %v2928_v26 = vsub.f32 0.0, %v6668_v31 }
 0x330   :  { %v1962_v25 = vadd.f32 1.0, %v1956_v9  ;;  %v2240_v10 = vmul.f32 %v2234_v40, %v6670_v37  ;;  %v2539_v17 = vmul.f32 1.0614054, %v6693_v20  ;;  %v2857_v7 = vmul.f32 %v4096_v60, %v2856_v22  ;;  %v3019_v40 = vpop.f32.mrf.mxu1 }
 0x331   :  { %v2361_v41 = vadd.f32 %v2349_v34, %v2026_v29  ;;  %v3036_v52 = vrot.slane %v7168_v24, 7  ;;  %v3048_v47 = vsel %vm3044_vm13, %v3043_v21, 0.0  ;;  %v2090_v51 = vsel %vm2084_vm15, 1.0, %v7129_v56 }
 0x332   :  { %v1968_v18 = vmul.f32 %v1962_v25, %v1734_v58  ;;  %v2246_v53 = vadd.f32 0.2548296, %v2240_v10  ;;  %v2545_v3 = vadd.f32 -1.4531521, %v2539_v17  ;;  %v2858_v30 = vadd.f32 %v4096_v60, %v2857_v7  ;;  %v3059_v33 = vpop.permute.xlu0 %3058  ;;  %v7169_v7 = vld [vmem:[#allocation11_spill] sm:$0xff] }
 0x333   :  { %vm3084_vm4 = vcmask 523264   ;;  %v3068_v42 = vsel %vm563_vm10, %v3048_v47, %v3057_v46  ;;  %v2072_v16 = vmul.f32 0.5, %v6578_v57  ;;  %4099 = vpow2.f32 %v2610_v59 }
 0x334   :  { %3790 = vmatmul.msk.f32.gmra.mxu2 %vm563_vm10, %v1968_v18  ;;  %v2252_v13 = vmul.f32 %v2246_v53, %v6670_v37  ;;  %v2551_v36 = vmul.f32 %v2545_v3, %v6693_v20  ;;  %v2866_v37 = vor.u32 1.1754944e-38, %v2865_v49  ;;  %v2862_v0 = vsel %vm2861_vm0, %v4096_v60, %v2858_v30 }
 0x335   :  { %v2696_v60 = vadd.f32 %v2684_v5, %v2361_v41  ;;  %v2934_v9 = vmul.f32 %v2928_v26, %v6668_v31  ;;  %v3042_v49 = vsel %vm3039_vm12, %v3035_v4, %v3036_v52  ;;  %vm2419_vm2 = vcmp.ge.f32.partialorder %v6632_v61, 0.0 }
 0x336   :  { %v2282_v27 = vmul.f32 %v4098_v38, %v2252_v13  ;;  %v2557_v8 = vadd.f32 1.4214138, %v2551_v36  ;;  %v2867_v48 = vsel %vm2864_vm1, %v2866_v37, %v2862_v0  ;;  %v3037_v1 = vrot.slane %v7169_v7, 7  ;;  %v3061_v38 = vpop.permute.xlu1 %3060 }
 0x337   :  { %v2874_v54 = vmul.f32 1.0614054, %v2867_v48  ;;  %v6737_v45 = vadd.f32 %v3019_v40, %v2696_v60  ;;  %v2945_v22 = vmul.f32 1.442695, %v2934_v9  ;;  %v3069_v13 = vsel %vm563_vm10, %v3042_v49, %v3059_v33 }
 0x338   :  { %v2288_v39 = vsub.f32 1.0, %v2282_v27  ;;  %v2563_v11 = vmul.f32 %v2557_v8, %v6693_v20  ;;  %v3041_v4 = vsel %vm3039_vm12, %v3036_v52, %v3037_v1  ;;  %v2407_v32 = vmul.f32 0.5, %v6616_v50 }
 0x339   :  { %v2880_v2 = vadd.f32 -1.4531521, %v2874_v54  ;;  %v4100_v18 = vpop.eup %4099  ;;  %4101 = vpow2.f32 %v2945_v22  ;;  %v3050_v0 = vsel %vm3044_vm13, %v3041_v4, 0.0  ;;  %vm2754_vm3 = vcmp.ge.f32.partialorder %v6657_v55, 0.0  ;;  %v3299_v4 = vld [vmem:[%s7087_s12 + $0x68] sm:$0xff] }
 0x33a   :  { %v2294_v43 = vmul.f32 %v2288_v39, %v2090_v51  ;;  %v2569_v14 = vadd.f32 -0.28449672, %v2563_v11  ;;  %v3070_v34 = vsel %vm563_vm10, %v3050_v0, %v3061_v38  ;;  %v2760_v39 = vsel %vm2754_vm3, 1.0, %v7129_v56 }
 0x33b   :  { %v2886_v58 = vmul.f32 %v2880_v2, %v2867_v48  ;;  %v2742_v54 = vmul.f32 0.5, %v6646_v19  ;;  %v3040_v55 = vsel %vm3039_vm12, %v3037_v1, %v3038_v28 }
 0x33c   :  { %v2300_v12 = vadd.f32 1.0, %v2294_v43  ;;  %v2575_v35 = vmul.f32 %v2569_v14, %v6693_v20  ;;  %3830 = vmatmul.msk.f32.vlgmr.msra.gmra.mxu2 %vm3084_vm4, %v3068_v42  ;;  %v2014_v62 = vpop.f32.mrf.mxu2 }
 0x33d   :  { %v2892_v17 = vadd.f32 1.4214138, %v2886_v58 }
 0x33e   :  { %v2306_v25 = vmul.f32 %v2300_v12, %v2072_v16  ;;  %v2581_v10 = vadd.f32 0.2548296, %v2575_v35  ;;  %v6774_v35 = vld [vmem:[%s7086_s11] ss:$0 sm:$0xff] }
 0x33f   :  { %v2898_v31 = vmul.f32 %v2892_v17, %v2867_v48  ;;  %v4102_v29 = vpop.eup %4101 }
 0x340   :  { %3803 = vmatmul.msk.f32.gmra.mxu3 %vm563_vm10, %v2306_v25  ;;  %v2587_v57 = vmul.f32 %v2581_v10, %v6693_v20  ;;  %v2425_v20 = vsel %vm2419_vm2, 1.0, %v7129_v56 }
 0x341   :  { %v2904_v3 = vadd.f32 -0.28449672, %v2898_v31 }
 0x342   :  { %v2617_v53 = vmul.f32 %v4100_v18, %v2587_v57  ;;  %v2352_v36 = vpop.f32.mrf.mxu3 }
 0x343   :  { %v2910_v15 = vmul.f32 %v2904_v3, %v2867_v48  ;;  %v3301_v36 = vld [vmem:[%s7087_s12 + $0x78] sm:$0xff] }
 0x344   :  { %v2623_v30 = vsub.f32 1.0, %v2617_v53  ;;  %3831 = vmatmul.msk.f32.gmra.mxu2 %vm3084_vm4, %v3069_v13  ;;  %3306 = vmatpush.msrb.mxu3 %v3301_v36 }
 0x345   :  { %v2916_v61 = vadd.f32 0.2548296, %v2910_v15 }
 0x346   :  { %v2629_v21 = vmul.f32 %v2623_v30, %v2425_v20  ;;  %v3300_v30 = vld [vmem:[%s7087_s12 + $0x70] sm:$0xff] }
 0x347   :  { %v2687_v37 = vpop.f32.mrf.mxu0  ;;  %v2922_v8 = vmul.f32 %v2916_v61, %v2867_v48  ;;  %v3063_v48 = vpop.permute.xlu1 %3062  ;;  %3307 = vmatpush.msrb.mxu3 %v3300_v30 }
 0x348   :  { %v2635_v27 = vadd.f32 1.0, %v2629_v21  ;;  %v3071_v47 = vsel %vm563_vm10, %v3040_v55, %v3063_v48  ;;  %v3298_v37 = vld [vmem:[%s7087_s12 + $0x60] sm:$0xff] }
 0x349   :  { %v2952_v26 = vmul.f32 %v4102_v29, %v2922_v8  ;;  %3308 = vmatpush.msrb.mxu3 %v3299_v4  ;;  %v3297_v29 = vld [vmem:[%s7087_s12 + $0x58] sm:$0xff]  ;;  %v3294_v55 = vld [vmem:[%s7087_s12 + $0x40] sm:$0xff] }
 0x34a   :  { %v2641_v59 = vmul.f32 %v2635_v27, %v2407_v32 }
 0x34b   :  { %v2958_v46 = vsub.f32 1.0, %v2952_v26  ;;  %3309 = vmatpush.msrb.mxu3 %v3298_v37 }
 0x34c   :  { %3816 = vmatmul.msk.f32.gmra.mxu0 %vm563_vm10, %v2641_v59  ;;  %3832 = vmatmul.msk.f32.gmra.mxu2 %vm3084_vm4, %v3070_v34 }
 0x34d   :  { %v2964_v50 = vmul.f32 %v2958_v46, %v2760_v39  ;;  %v3296_v46 = vld [vmem:[%s7087_s12 + $0x50] sm:$0xff]  ;;  %3310 = vmatpush.msrb.mxu3 %v3297_v29 }
 0x34f   :  { %v3022_v11 = vpop.f32.mrf.mxu1  ;;  %v2970_v41 = vadd.f32 1.0, %v2964_v50  ;;  %3311 = vmatpush.msrb.mxu3 %v3296_v46 }
 0x351   :  { %v2976_v52 = vmul.f32 %v2970_v41, %v2742_v54  ;;  %v3295_v54 = vld [vmem:[%s7087_s12 + $0x48] sm:$0xff] }
 0x352   :  { %3312 = vmatpush.msrb.mxu3 %v3295_v54 }
 0x353   :  { %3829 = vmatmul.msk.f32.gmra.mxu1 %vm563_vm10, %v2976_v52 }
 0x354   :  { %3833 = vmatmul.msk.f32.gmra.mxu2 %vm3084_vm4, %v3071_v47  ;;  %3313 = vmatpush.msrb.mxu3 %v3294_v55 }
 0x365   :  { %v2016_v51 = vpop.f32.mrf.mxu2 }
 0x36f   :  { %v2354_v5 = vpop.f32.mrf.mxu3 }
 0x373   :  { %v2689_v43 = vpop.f32.mrf.mxu0 }
 0x374   :  { %v3293_v43 = vld [vmem:[%s7087_s12 + $0x38] sm:$0xff] }
 0x375   :  { %3314 = vmatpush.msrb.mxu3 %v3293_v43 }
 0x37b   :  { %v3024_v14 = vpop.f32.mrf.mxu1 }
 0x38f   :  { %v2018_v2 = vpop.f32.mrf.mxu2 }
 0x390   :  { %v2027_v19 = vadd.f32 %v6713_v44, %v2018_v2 }
 0x399   :  { %v2356_v60 = vpop.f32.mrf.mxu3 }
 0x39a   :  { %v2362_v42 = vadd.f32 %v2356_v60, %v2027_v19  ;;  %v3292_v60 = vld [vmem:[%s7087_s12 + $0x30] sm:$0xff] }
 0x39b   :  { %3315 = vmatpush.msrb.mxu3 %v3292_v60 }
 0x39d   :  { %v2691_v16 = vpop.f32.mrf.mxu0 }
 0x39e   :  { %v2697_v9 = vadd.f32 %v2691_v16, %v2362_v42 }
 0x3a7   :  { %v3026_v40 = vpop.f32.mrf.mxu1 }
 0x3a8   :  { %v6769_v12 = vadd.f32 %v3026_v40, %v2697_v9 }
 0x3b7   :  { %v2021_v28 = vpop.f32.mrf.mxu2 }
 0x3bf   :  { %v3114_v58 = vpop.f32.mrf.mxu2 }
 0x3c0   :  { %v6777_v62 = vadd.f32 %v6774_v35, %v3114_v58  ;;  %v3291_v58 = vld [vmem:[%s7087_s12 + $0x28] sm:$0xff] }
 0x3c1   :  { %3316 = vmatpush.msrb.mxu3 %v3291_v58 }
 0x3c2   :  { %v6780_v25 = vmul.f32 0.70710677, %v6777_v62  ;;  %v3126_v46 = vmul.f32 0.5, %v6777_v62 }
 0x3c3   :  { %v2359_v44 = vpop.f32.mrf.mxu3 }
 0x3c4   :  { %v3142_v10 = vand.u32 2147483647, %v6780_v25  ;;  %vm3134_vm12 = vcmp.ge.f32.partialorder %v6780_v25, 0.0  ;;  %v3287_v25 = vld [vmem:[%s7087_s12 + $0x8] sm:$0xff] }
 0x3c6   :  { %v3146_v17 = vmul.f32 0.3275911, %v3142_v10  ;;  %v3250_v27 = vsub.f32 0.0, %v3142_v10 }
 0x3c7   :  { %v3117_v13 = vpop.f32.mrf.mxu2 }
 0x3c8   :  { %v3150_v22 = vadd.f32 1.0, %v3146_v17  ;;  %v6790_v15 = vadd.f32 %v6774_v35, %v3117_v13  ;;  %v3254_v39 = vmul.f32 %v3250_v27, %v3142_v10  ;;  %v3288_v13 = vld [vmem:[%s7087_s12 + $0x10] sm:$0xff] }
 0x3c9   :  { %v2694_v33 = vpop.f32.mrf.mxu0 }
 0x3ca   :  { %4103 = vrcp.f32 %v3150_v22  ;;  %v3165_v53 = vand.u32 2147483648, %v3150_v22  ;;  %v3163_v1 = vand.u32 2147483647, %v3150_v22  ;;  %vm3159_vm6 = vweird.f32 %v3150_v22 }
 0x3cb   :  { %v6796_v21 = vmul.f32 0.70710677, %v6790_v15  ;;  %v3258_v47 = vmul.f32 1.442695, %v3254_v39 }
 0x3cc   :  { %v3166_v38 = vor.u32 1.1754944e-38, %v3165_v53  ;;  %vm3164_vm8 = vcmp.eq.f32.partialorder %v3163_v1, 8.507059e+37 }
 0x3cd   :  { %v6802_v8 = vand.u32 2147483647, %v6796_v21 }
 0x3cf   :  { %v3147_v59 = vmul.f32 0.3275911, %v6802_v8  ;;  %v3120_v34 = vpop.f32.mrf.mxu2  ;;  %v3251_v27 = vsub.f32 0.0, %v6802_v8 }
 0x3d0   :  { %v4104_v57 = vpop.eup %4103  ;;  %v3029_v31 = vpop.f32.mrf.mxu1  ;;  %v6812_v11 = vadd.f32 %v6774_v35, %v3120_v34 }
 0x3d1   :  { %v3155_v49 = vmul.f32 %v4104_v57, %v3150_v22  ;;  %vm3160_vm5 = vweird.f32 %v4104_v57  ;;  %v3151_v50 = vadd.f32 1.0, %v3147_v59  ;;  %v3289_v31 = vld [vmem:[%s7087_s12 + $0x18] sm:$0xff]  ;;  %v3255_v55 = vmul.f32 %v3251_v27, %v6802_v8 }
 0x3d2   :  { %vm3161_vm7 = vmor %vm3159_vm6, %vm3160_vm5  ;;  %v6818_v41 = vmul.f32 0.70710677, %v6812_v11 }
 0x3d3   :  { %v3156_v18 = vsub.f32 1.0, %v3155_v49  ;;  %4105 = vrcp.f32 %v3151_v50  ;;  %v3180_v33 = vand.u32 2147483648, %v3151_v50  ;;  %vm3174_vm9 = vweird.f32 %v3151_v50 }
 0x3d4   :  { %v6824_v51 = vand.u32 2147483647, %v6818_v41  ;;  %4107 = vpow2.f32 %v3258_v47 }
 0x3d5   :  { %v3157_v3 = vmul.f32 %v4104_v57, %v3156_v18  ;;  %v3178_v18 = vand.u32 2147483647, %v3151_v50  ;;  %v3181_v4 = vor.u32 1.1754944e-38, %v3180_v33 }
 0x3d6   :  { %v3148_v14 = vmul.f32 0.3275911, %v6824_v51 }
 0x3d7   :  { %v3158_v20 = vadd.f32 %v4104_v57, %v3157_v3  ;;  %v3123_v19 = vpop.f32.mrf.mxu2  ;;  %vm3179_vm14 = vcmp.eq.f32.partialorder %v3178_v18, 8.507059e+37 }
 0x3d8   :  { %v6833_v16 = vadd.f32 1.0, %v3148_v14  ;;  %v6836_v9 = vadd.f32 %v6774_v35, %v3123_v19  ;;  %v3290_v35 = vld [vmem:[%s7087_s12 + $0x20] sm:$0xff] }
 0x3d9   :  { %v3162_v61 = vsel %vm3161_vm7, %v4104_v57, %v3158_v20  ;;  %v4106_v42 = vpop.eup %4105  ;;  %3317 = vmatpush.msrb.mxu3 %v3290_v35 }
 0x3da   :  { %v3167_v32 = vsel %vm3164_vm8, %v3166_v38, %v3162_v61  ;;  %v3170_v28 = vmul.f32 %v4106_v42, %v3151_v50  ;;  %4109 = vrcp.f32 %v6833_v16  ;;  %v6843_v44 = vmul.f32 0.70710677, %v6836_v9  ;;  %v4108_v53 = vpop.eup %4107 }
 0x3db   :  { %v3214_v0 = vmul.f32 1.0614054, %v3167_v32  ;;  %vm3175_vm11 = vweird.f32 %v4106_v42  ;;  %3318 = vmatpush.msrb.mxu3 %v3289_v31  ;;  %v3193_v39 = vand.u32 2147483647, %v6833_v16  ;;  %v3195_v50 = vand.u32 2147483648, %v6833_v16 }
 0x3dc   :  { %v3171_v17 = vsub.f32 1.0, %v3170_v28  ;;  %v6849_v22 = vand.u32 2147483647, %v6843_v44  ;;  %vm3176_vm13 = vmor %vm3174_vm9, %vm3175_vm11  ;;  %vm3189_vm0 = vweird.f32 %v6833_v16  ;;  %vm3135_vm8 = vcmp.ge.f32.partialorder %v6796_v21, 0.0 }
 0x3dd   :  { %v3218_v26 = vadd.f32 -1.4531521, %v3214_v0  ;;  %3319 = vmatpush.msrb.mxu3 %v3288_v13  ;;  %v3196_v62 = vor.u32 1.1754944e-38, %v3195_v50  ;;  %vm3194_vm2 = vcmp.eq.f32.partialorder %v3193_v39, 8.507059e+37  ;;  %vm3136_vm11 = vcmp.ge.f32.partialorder %v6818_v41, 0.0 }
 0x3de   :  { %v3172_v49 = vmul.f32 %v4106_v42, %v3171_v17  ;;  %v3149_v3 = vmul.f32 0.3275911, %v6849_v22  ;;  %vm3345_vm9 = vcmp.lt.s32.totalorder %v4407_v23, 2 }
 0x3df   :  { %v3222_v48 = vmul.f32 %v3218_v26, %v3167_v32  ;;  %v3286_v26 = vld [vmem:[%s7087_s12] sm:$0xff]  ;;  %3320 = vmatpush.msrb.mxu3 %v3287_v25 }
 0x3e0   :  { %v3173_v36 = vadd.f32 %v4106_v42, %v3172_v49  ;;  %v4110_v30 = vpop.eup %4109  ;;  %v6859_v20 = vadd.f32 1.0, %v3149_v3 }
 0x3e1   :  { %v3226_v52 = vadd.f32 1.4214138, %v3222_v48  ;;  %v3185_v61 = vmul.f32 %v4110_v30, %v6833_v16  ;;  %vm3190_vm15 = vweird.f32 %v4110_v30  ;;  %3321 = vmatpush.msrb.mxu3 %v3286_v26 }
 0x3e2   :  { %v3177_v37 = vsel %vm3176_vm13, %v4106_v42, %v3173_v36  ;;  %4111 = vrcp.f32 %v6859_v20  ;;  %vm3191_vm1 = vmor %vm3189_vm0, %vm3190_vm15  ;;  %v3260_v42 = vmul.f32 1.442695, %v3255_v55  ;;  %v3208_v17 = vand.u32 2147483647, %v6859_v20 }
 0x3e3   :  { %v3230_v5 = vmul.f32 %v3226_v52, %v3167_v32  ;;  %v3182_v0 = vsel %vm3179_vm14, %v3181_v4, %v3177_v37  ;;  %v3186_v59 = vsub.f32 1.0, %v3185_v61  ;;  %v3210_v16 = vand.u32 2147483648, %v6859_v20 }
 0x3e4   :  { %v3215_v34 = vmul.f32 1.0614054, %v3182_v0  ;;  %4113 = vpow2.f32 %v3260_v42  ;;  %vm3204_vm5 = vweird.f32 %v6859_v20  ;;  %vm3209_vm7 = vcmp.eq.f32.partialorder %v3208_v17, 8.507059e+37 }
 0x3e5   :  { %v3234_v2 = vadd.f32 -0.28449672, %v3230_v5  ;;  %v3187_v52 = vmul.f32 %v4110_v30, %v3186_v59  ;;  %v3211_v3 = vor.u32 1.1754944e-38, %v3210_v16  ;;  %v3253_v4 = vsub.f32 0.0, %v6849_v22 }
 0x3e6   :  { %v3219_v54 = vadd.f32 -1.4531521, %v3215_v34  ;;  %v3128_v42 = vmul.f32 0.5, %v6812_v11  ;;  %v3129_v16 = vmul.f32 0.5, %v6836_v9  ;;  %v3839_v9 = vld [vmem:[%s7085_s10 + $0x68] sm:$0xff]  ;;  %vm3350_vm13 = vcmp.ge.s32.totalorder %v4407_v23, 2 }
 0x3e7   :  { %v3238_v40 = vmul.f32 %v3234_v2, %v3167_v32  ;;  %v3188_v43 = vadd.f32 %v4110_v30, %v3187_v52 }
 0x3e8   :  { %v3223_v5 = vmul.f32 %v3219_v54, %v3182_v0  ;;  %v4112_v14 = vpop.eup %4111  ;;  %v3127_v54 = vmul.f32 0.5, %v6790_v15 }
 0x3e9   :  { %v3242_v10 = vadd.f32 0.2548296, %v3238_v40  ;;  %v3200_v2 = vmul.f32 %v4112_v14, %v6859_v20  ;;  %v3192_v60 = vsel %vm3191_vm1, %v4110_v30, %v3188_v43  ;;  %v3252_v40 = vsub.f32 0.0, %v6824_v51 }
 0x3ea   :  { %v3227_v19 = vadd.f32 1.4214138, %v3223_v5  ;;  %v3197_v28 = vsel %vm3194_vm2, %v3196_v62, %v3192_v60  ;;  %vm3205_vm3 = vweird.f32 %v4112_v14  ;;  %v3257_v20 = vmul.f32 %v3253_v4, %v6849_v22 }
 0x3eb   :  { %v3246_v57 = vmul.f32 %v3242_v10, %v3167_v32  ;;  %v3138_v32 = vsel %vm3134_vm12, 1.0, %v7129_v56  ;;  %v3201_v8 = vsub.f32 1.0, %v3200_v2  ;;  %v3216_v10 = vmul.f32 1.0614054, %v3197_v28  ;;  %vm3206_vm6 = vmor %vm3204_vm5, %vm3205_vm3 }
 0x3ec   :  { %v3231_v58 = vmul.f32 %v3227_v19, %v3182_v0  ;;  %v3256_v31 = vmul.f32 %v3252_v40, %v6824_v51  ;;  %v3140_v2 = vsel %vm3136_vm11, 1.0, %v7129_v56  ;;  %vm3137_vm12 = vcmp.ge.f32.partialorder %v6843_v44, 0.0  ;;  %v3841_v44 = vld [vmem:[%s7085_s10 + $0x78] sm:$0xff] }
 0x3ed   :  { %v3266_v1 = vmul.f32 %v4108_v53, %v3246_v57  ;;  %v3220_v33 = vadd.f32 -1.4531521, %v3216_v10  ;;  %v3202_v57 = vmul.f32 %v4112_v14, %v3201_v8  ;;  %v3141_v10 = vsel %vm3137_vm12, 1.0, %v7129_v56  ;;  %3412 = vmatpush.msrb.mxu0 %v3841_v44 }
 0x3ee   :  { %v3235_v35 = vadd.f32 -0.28449672, %v3231_v58  ;;  %v3262_v30 = vmul.f32 1.442695, %v3256_v31 }
 0x3ef   :  { %v3270_v38 = vsub.f32 1.0, %v3266_v1  ;;  %v3224_v18 = vmul.f32 %v3220_v33, %v3197_v28  ;;  %v3203_v53 = vadd.f32 %v4112_v14, %v3202_v57  ;;  %v3907_v57 = vld [vmem:[#allocation4] ss:$0 sm:$0xff] }
 0x3f0   :  { %v3239_v49 = vmul.f32 %v3235_v35, %v3182_v0  ;;  %4115 = vpow2.f32 %v3262_v30 }
 0x3f1   :  { %v3274_v29 = vmul.f32 %v3270_v38, %v3138_v32  ;;  %v3228_v13 = vadd.f32 1.4214138, %v3224_v18  ;;  %v3207_v36 = vsel %vm3206_vm6, %v4112_v14, %v3203_v53  ;;  %v4114_v32 = vpop.eup %4113  ;;  %v3840_v18 = vld [vmem:[%s7085_s10 + $0x70] sm:$0xff]  ;;  %v3837_v53 = vld [vmem:[%s7085_s10 + $0x58] sm:$0xff] }
 0x3f2   :  { %v3243_v1 = vadd.f32 0.2548296, %v3239_v49  ;;  %v3212_v38 = vsel %vm3209_vm7, %v3211_v3, %v3207_v36  ;;  %3413 = vmatpush.msrb.mxu0 %v3840_v18  ;;  %v3836_v3 = vld [vmem:[%s7085_s10 + $0x50] sm:$0xff] }
 0x3f3   :  { %v3278_v48 = vadd.f32 1.0, %v3274_v29  ;;  %v3232_v25 = vmul.f32 %v3228_v13, %v3197_v28  ;;  %v3217_v37 = vmul.f32 1.0614054, %v3212_v38 }
 0x3f4   :  { %v3247_v61 = vmul.f32 %v3243_v1, %v3182_v0  ;;  %v3264_v0 = vmul.f32 1.442695, %v3257_v20  ;;  %3414 = vmatpush.msrb.mxu0 %v3839_v9  ;;  %v3835_v1 = vld [vmem:[%s7085_s10 + $0x48] sm:$0xff] }
 0x3f5   :  { %v3282_v47 = vmul.f32 %v3278_v48, %v3126_v46  ;;  %v3236_v27 = vadd.f32 -0.28449672, %v3232_v25  ;;  %v3221_v29 = vadd.f32 -1.4531521, %v3217_v37  ;;  %v3139_v46 = vsel %vm3135_vm8, 1.0, %v7129_v56  ;;  %v7170_v25 = vld [vmem:[#allocation14_spill] sm:$0xff] }
 0x3f6   :  { %v3267_v51 = vmul.f32 %v4114_v32, %v3247_v61  ;;  %4117 = vpow2.f32 %v3264_v0  ;;  %v3033_v37 = vadd.f32 %v6737_v45, %v7170_v25  ;;  %v3834_v45 = vld [vmem:[%s7085_s10 + $0x40] sm:$0xff] }
 0x3f7   :  { %3322 = vmatmul.f32.vlgmr.msrb.gmra.mxu3 %v3282_v47  ;;  %v3240_v26 = vmul.f32 %v3236_v27, %v3197_v28  ;;  %v3225_v34 = vmul.f32 %v3221_v29, %v3212_v38  ;;  %v4116_v47 = vpop.eup %4115  ;;  %v3855_v25 = vld [vmem:[%s7087_s12 + $0xc0] sm:$0xff] }
 0x3f8   :  { %v3271_v59 = vsub.f32 1.0, %v3267_v51 }
 0x3f9   :  { %v3244_v50 = vadd.f32 0.2548296, %v3240_v26  ;;  %v3229_v48 = vadd.f32 1.4214138, %v3225_v34 }
 0x3fa   :  { %v3275_v39 = vmul.f32 %v3271_v59, %v3139_v46 }
 0x3fb   :  { %v3248_v55 = vmul.f32 %v3244_v50, %v3197_v28  ;;  %v3233_v21 = vmul.f32 %v3229_v48, %v3212_v38 }
 0x3fc   :  { %v3279_v52 = vadd.f32 1.0, %v3275_v39  ;;  %v4118_v28 = vpop.eup %4117 }
 0x3fd   :  { %v3268_v43 = vmul.f32 %v4116_v47, %v3248_v55  ;;  %v3237_v22 = vadd.f32 -0.28449672, %v3233_v21 }
 0x3fe   :  { %v3283_v5 = vmul.f32 %v3279_v52, %v3127_v54 }
 0x3ff   :  { %v3272_v14 = vsub.f32 1.0, %v3268_v43  ;;  %v3241_v62 = vmul.f32 %v3237_v22, %v3212_v38 }
 0x400   :  { %3325 = vmatmul.f32.gmra.mxu3 %v3283_v5  ;;  %v6948_v5 = vld [vmem:[%s7086_s11 + $0x1] ss:$0 sm:$0xff] }
 0x401   :  { %v3276_v19 = vmul.f32 %v3272_v14, %v3140_v2  ;;  %v3245_v60 = vadd.f32 0.2548296, %v3241_v62 }
 0x403   :  { %v3280_v15 = vadd.f32 1.0, %v3276_v19  ;;  %v3249_v40 = vmul.f32 %v3245_v60, %v3212_v38 }
 0x405   :  { %v3284_v8 = vmul.f32 %v3280_v15, %v3128_v42  ;;  %v3269_v41 = vmul.f32 %v4118_v28, %v3249_v40 }
 0x407   :  { %v3273_v58 = vsub.f32 1.0, %v3269_v41 }
 0x408   :  { %3328 = vmatmul.f32.gmra.mxu3 %v3284_v8 }
 0x409   :  { %v3277_v17 = vmul.f32 %v3273_v58, %v3141_v10  ;;  %v3862_v58 = vld [vmem:[%s7087_s12 + $0xf8] sm:$0xff]  ;;  %v3861_v10 = vld [vmem:[%s7087_s12 + $0xf0] sm:$0xff] }
 0x40a   :  { %3615 = vmatpush.msrb.mxu2 %v3862_v58 }
 0x40b   :  { %v3281_v35 = vadd.f32 1.0, %v3277_v17 }
 0x40c   :  { %3616 = vmatpush.msrb.mxu2 %v3861_v10 }
 0x40d   :  { %v3285_v33 = vmul.f32 %v3281_v35, %v3129_v16  ;;  %v3860_v35 = vld [vmem:[%s7087_s12 + $0xe8] sm:$0xff] }
 0x40e   :  { %3617 = vmatpush.msrb.mxu2 %v3860_v35 }
 0x410   :  { %3331 = vmatmul.f32.gmra.mxu3 %v3285_v33 }
 0x47a   :  { %v3323_v31 = vpop.f32.mrf.mxu3 }
 0x47b   :  { %v3324_v11 = vadd.f32 %v3907_v57, %v3323_v31 }
 0x47d   :  { %v3335_v49 = vadd.f32 %v3324_v11, %v7166_v6  ;;  %v3838_v6 = vld [vmem:[%s7085_s10 + $0x60] sm:$0xff] }
 0x47e   :  { %3415 = vmatpush.msrb.mxu0 %v3838_v6  ;;  %v3859_v11 = vld [vmem:[%s7087_s12 + $0xe0] sm:$0xff]  ;;  %v3858_v6 = vld [vmem:[%s7087_s12 + $0xd8] sm:$0xff] }
 0x47f   :  { %3362 = vrot.lane.b32.xlu2 %v3335_v49, %s4241_s29  ;;  %v3341_v20 = vrot.slane %v3335_v49, 6  ;;  %3618 = vmatpush.msrb.mxu2 %v3859_v11 }
 0x480   :  { %3416 = vmatpush.msrb.mxu0 %v3837_v53 }
 0x481   :  { %3619 = vmatpush.msrb.mxu2 %v3858_v6 }
 0x482   :  { %3417 = vmatpush.msrb.mxu0 %v3836_v3 }
 0x483   :  { %v3326_v13 = vpop.f32.mrf.mxu3 }
 0x484   :  { %v6916_v36 = vadd.f32 %v3907_v57, %v3326_v13  ;;  %3418 = vmatpush.msrb.mxu0 %v3835_v1  ;;  %v3857_v1 = vld [vmem:[%s7087_s12 + $0xd0] sm:$0xff] }
 0x485   :  { %3620 = vmatpush.msrb.mxu2 %v3857_v1 }
 0x486   :  { %v3336_v30 = vadd.f32 %v6916_v36, %v7168_v24  ;;  %v7171_v24 = vld [vmem:[#allocation17_spill] sm:$0xff]  ;;  %3419 = vmatpush.msrb.mxu0 %v3834_v45 }
 0x487   :  { %v3034_v29 = vadd.f32 %v6769_v12, %v7171_v24 }
 0x488   :  { %3364 = vrot.lane.b32.xlu2 %v3336_v30, %s4241_s29 }
 0x48b   :  { %v3329_v4 = vpop.f32.mrf.mxu3 }
 0x48c   :  { %v3330_v38 = vadd.f32 %v3907_v57, %v3329_v4 }
 0x48e   :  { %v3337_v61 = vadd.f32 %v3330_v38, %v7169_v7  ;;  %v3342_v7 = vrot.slane %v3336_v30, 6  ;;  %v3856_v38 = vld [vmem:[%s7087_s12 + $0xc8] sm:$0xff] }
 0x48f   :  { %3621 = vmatpush.msrb.mxu2 %v3856_v38 }
 0x490   :  { %3366 = vrot.lane.b32.xlu0 %v3337_v61, %s4241_s29  ;;  %3645 = vrot.lane.b32.xlu2 %v3033_v37, %s4243_s28  ;;  %v3348_v59 = vsel %vm3345_vm9, %v3341_v20, %v3342_v7  ;;  %v3343_v39 = vrot.slane %v3337_v61, 6 }
 0x491   :  { %3622 = vmatpush.msrb.mxu2 %v3855_v25 }
 0x492   :  { %v3347_v48 = vsel %vm3345_vm9, %v3342_v7, %v3343_v39 }
 0x493   :  { %v3332_v32 = vpop.f32.mrf.mxu3  ;;  %v3356_v55 = vsel %vm3350_vm13, %v3347_v48, 0.0 }
 0x494   :  { %v6925_v51 = vadd.f32 %v3907_v57, %v3332_v32 }
 0x496   :  { %v3338_v27 = vadd.f32 %v6925_v51, %v7167_v63 }
 0x498   :  { %3368 = vrot.lane.b32.xlu1 %v3338_v27, %s4241_s29  ;;  %3650 = vrot.lane.b32.xlu0 %v3034_v29, %s4243_s28  ;;  %v3344_v26 = vrot.slane %v3338_v27, 6 }
 0x49a   :  { %v3349_v34 = vsel %vm3345_vm9, %v3344_v26, %v3341_v20  ;;  %v3346_v54 = vsel %vm3345_vm9, %v3343_v39, %v3344_v26  ;;  %v3854_v20 = vld [vmem:[%s7087_s12 + $0xb8] sm:$0xff]  ;;  %v3851_v39 = vld [vmem:[%s7087_s12 + $0xa0] sm:$0xff] }
 0x49b   :  { %v3354_v46 = vsel %vm3350_vm13, %v3349_v34, 0.0  ;;  %3623 = vmatpush.msrb.mxu2 %v3854_v20  ;;  %v3852_v34 = vld [vmem:[%s7087_s12 + $0xa8] sm:$0xff] }
 0x4d9   :  { %v3363_v63 = vpop.permute.xlu2 %3362 }
 0x4da   :  { %v3374_v12 = vsel %vm563_vm10, %v3354_v46, %v3363_v63 }
 0x4db   :  { %3843 = vmatmul.msk.f32.vlgmr.msrb.gmra.mxu0 %vm3084_vm4, %v3374_v12 }
 0x4e2   :  { %v3365_v50 = vpop.permute.xlu2 %3364 }
 0x4e3   :  { %v3375_v0 = vsel %vm563_vm10, %v3348_v59, %v3365_v50  ;;  %v3853_v59 = vld [vmem:[%s7087_s12 + $0xb0] sm:$0xff] }
 0x4e4   :  { %3844 = vmatmul.msk.f32.gmra.mxu0 %vm3084_vm4, %v3375_v0  ;;  %3624 = vmatpush.msrb.mxu2 %v3853_v59 }
 0x4e6   :  { %3625 = vmatpush.msrb.mxu2 %v3852_v34 }
 0x4e8   :  { %3626 = vmatpush.msrb.mxu2 %v3851_v39 }
 0x502   :  { %v3367_v52 = vpop.permute.xlu0 %3366 }
 0x503   :  { %v3376_v21 = vsel %vm563_vm10, %v3356_v55, %v3367_v52  ;;  %v3849_v52 = vld [vmem:[%s7087_s12 + $0x90] sm:$0xff] }
 0x504   :  { %3845 = vmatmul.msk.f32.gmra.mxu0 %vm3084_vm4, %v3376_v21 }
 0x50a   :  { %v3369_v23 = vpop.permute.xlu1 %3368 }
 0x50b   :  { %v3377_v47 = vsel %vm563_vm10, %v3346_v54, %v3369_v23  ;;  %v3850_v54 = vld [vmem:[%s7087_s12 + $0x98] sm:$0xff] }
 0x50c   :  { %3846 = vmatmul.msk.f32.gmra.mxu0 %vm3084_vm4, %v3377_v47  ;;  %3627 = vmatpush.msrb.mxu2 %v3850_v54 }
 0x50e   :  { %3628 = vmatpush.msrb.mxu2 %v3849_v52 }
 0x558   :  { %v3421_v43 = vpop.f32.mrf.mxu0 }
 0x559   :  { %v6951_v22 = vadd.f32 %v6948_v5, %v3421_v43 }
 0x55b   :  { %v6954_v14 = vmul.f32 0.70710677, %v6951_v22  ;;  %v3433_v47 = vmul.f32 0.5, %v6951_v22 }
 0x55d   :  { %v3449_v62 = vand.u32 2147483647, %v6954_v14  ;;  %vm3441_vm2 = vcmp.ge.f32.partialorder %v6954_v14, 0.0  ;;  %v3848_v14 = vld [vmem:[%s7087_s12 + $0x88] sm:$0xff] }
 0x55e   :  { %v3445_v48 = vsel %vm3441_vm2, 1.0, %v7129_v56  ;;  %3629 = vmatpush.msrb.mxu2 %v3848_v14 }
 0x55f   :  { %v3453_v2 = vmul.f32 0.3275911, %v3449_v62  ;;  %v3557_v44 = vsub.f32 0.0, %v3449_v62 }
 0x561   :  { %v3457_v19 = vadd.f32 1.0, %v3453_v2  ;;  %v3424_v41 = vpop.f32.mrf.mxu0  ;;  %v3561_v13 = vmul.f32 %v3557_v44, %v3449_v62 }
 0x562   :  { %v6964_v17 = vadd.f32 %v6948_v5, %v3424_v41 }
 0x563   :  { %4119 = vrcp.f32 %v3457_v19  ;;  %v3472_v40 = vand.u32 2147483648, %v3457_v19  ;;  %v3470_v8 = vand.u32 2147483647, %v3457_v19  ;;  %vm3466_vm15 = vweird.f32 %v3457_v19 }
 0x564   :  { %v6970_v57 = vmul.f32 0.70710677, %v6964_v17  ;;  %v3565_v37 = vmul.f32 1.442695, %v3561_v13  ;;  %v3434_v34 = vmul.f32 0.5, %v6964_v17 }
 0x565   :  { %v3473_v33 = vor.u32 1.1754944e-38, %v3472_v40  ;;  %vm3471_vm1 = vcmp.eq.f32.partialorder %v3470_v8, 8.507059e+37 }
 0x566   :  { %v6976_v18 = vand.u32 2147483647, %v6970_v57  ;;  %vm3442_vm8 = vcmp.ge.f32.partialorder %v6970_v57, 0.0 }
 0x568   :  { %v3454_v53 = vmul.f32 0.3275911, %v6976_v18  ;;  %v3558_v22 = vsub.f32 0.0, %v6976_v18 }
 0x569   :  { %v4120_v60 = vpop.eup %4119 }
 0x56a   :  { %v3462_v42 = vmul.f32 %v4120_v60, %v3457_v19  ;;  %vm3467_vm14 = vweird.f32 %v4120_v60  ;;  %v3458_v30 = vadd.f32 1.0, %v3454_v53  ;;  %v3562_v10 = vmul.f32 %v3558_v22, %v6976_v18 }
 0x56b   :  { %vm3468_vm0 = vmor %vm3466_vm15, %vm3467_vm14 }
 0x56c   :  { %v3463_v15 = vsub.f32 1.0, %v3462_v42  ;;  %4121 = vrcp.f32 %v3458_v30  ;;  %v3485_v21 = vand.u32 2147483647, %v3458_v30  ;;  %v3487_v23 = vand.u32 2147483648, %v3458_v30  ;;  %v3847_v42 = vld [vmem:[%s7087_s12 + $0x80] sm:$0xff] }
 0x56d   :  { %4123 = vpow2.f32 %v3565_v37  ;;  %vm3481_vm5 = vweird.f32 %v3458_v30  ;;  %3630 = vmatpush.msrb.mxu2 %v3847_v42 }
 0x56e   :  { %v3464_v28 = vmul.f32 %v4120_v60, %v3463_v15  ;;  %v3488_v2 = vor.u32 1.1754944e-38, %v3487_v23  ;;  %vm3486_vm7 = vcmp.eq.f32.partialorder %v3485_v21, 8.507059e+37 }
 0x570   :  { %v3465_v16 = vadd.f32 %v4120_v60, %v3464_v28 }
 0x572   :  { %v3469_v31 = vsel %vm3468_vm0, %v4120_v60, %v3465_v16  ;;  %v4122_v24 = vpop.eup %4121 }
 0x573   :  { %v3474_v49 = vsel %vm3471_vm1, %v3473_v33, %v3469_v31  ;;  %v3477_v7 = vmul.f32 %v4122_v24, %v3458_v30  ;;  %v4124_v63 = vpop.eup %4123  ;;  %vm3482_vm3 = vweird.f32 %v4122_v24 }
 0x574   :  { %v3521_v9 = vmul.f32 1.0614054, %v3474_v49  ;;  %vm3483_vm6 = vmor %vm3481_vm5, %vm3482_vm3  ;;  %vm3657_vm5 = vcmask 1043456  }
 0x575   :  { %v3478_v12 = vsub.f32 1.0, %v3477_v7  ;;  %v3446_v7 = vsel %vm3442_vm8, 1.0, %v7129_v56 }
 0x576   :  { %v3525_v3 = vadd.f32 -1.4531521, %v3521_v9 }
 0x577   :  { %v3479_v55 = vmul.f32 %v4122_v24, %v3478_v12 }
 0x578   :  { %v3529_v4 = vmul.f32 %v3525_v3, %v3474_v49 }
 0x579   :  { %v3480_v62 = vadd.f32 %v4122_v24, %v3479_v55 }
 0x57a   :  { %v3533_v61 = vadd.f32 1.4214138, %v3529_v4 }
 0x57b   :  { %v3484_v15 = vsel %vm3483_vm6, %v4122_v24, %v3480_v62  ;;  %vm3703_vm6 = vcmask 31744  }
 0x57c   :  { %v3537_v32 = vmul.f32 %v3533_v61, %v3474_v49  ;;  %v3489_v28 = vsel %vm3486_vm7, %v3488_v2, %v3484_v15 }
 0x57d   :  { %v3522_v8 = vmul.f32 1.0614054, %v3489_v28 }
 0x57e   :  { %v3541_v27 = vadd.f32 -0.28449672, %v3537_v32 }
 0x57f   :  { %v3526_v58 = vadd.f32 -1.4531521, %v3522_v8 }
 0x580   :  { %v3545_v29 = vmul.f32 %v3541_v27, %v3474_v49 }
 0x581   :  { %v3427_v60 = vpop.f32.mrf.mxu0  ;;  %v3530_v35 = vmul.f32 %v3526_v58, %v3489_v28 }
 0x582   :  { %v3549_v45 = vadd.f32 0.2548296, %v3545_v29  ;;  %v7020_v40 = vadd.f32 %v6948_v5, %v3427_v60 }
 0x583   :  { %v3534_v11 = vadd.f32 1.4214138, %v3530_v35 }
 0x584   :  { %v3553_v26 = vmul.f32 %v3549_v45, %v3474_v49  ;;  %v7023_v41 = vmul.f32 0.70710677, %v7020_v40  ;;  %v3567_v49 = vmul.f32 1.442695, %v3562_v10 }
 0x585   :  { %v3538_v6 = vmul.f32 %v3534_v11, %v3489_v28 }
 0x586   :  { %v3573_v46 = vmul.f32 %v4124_v63, %v3553_v26  ;;  %v3451_v16 = vand.u32 2147483647, %v7023_v41  ;;  %vm3443_vm2 = vcmp.ge.f32.partialorder %v7023_v41, 0.0 }
 0x587   :  { %v3542_v3 = vadd.f32 -0.28449672, %v3538_v6 }
 0x588   :  { %v3577_v50 = vsub.f32 1.0, %v3573_v46  ;;  %v3455_v33 = vmul.f32 0.3275911, %v3451_v16  ;;  %v3559_v39 = vsub.f32 0.0, %v3451_v16 }
 0x589   :  { %v3430_v31 = vpop.f32.mrf.mxu0  ;;  %v3546_v1 = vmul.f32 %v3542_v3, %v3489_v28 }
 0x58a   :  { %v3581_v0 = vmul.f32 %v3577_v50, %v3445_v48  ;;  %v3459_v44 = vadd.f32 1.0, %v3455_v33  ;;  %v7028_v9 = vadd.f32 %v6948_v5, %v3430_v31 }
 0x58b   :  { %v3550_v30 = vadd.f32 0.2548296, %v3546_v1 }
 0x58c   :  { %v3585_v43 = vadd.f32 1.0, %v3581_v0  ;;  %4125 = vrcp.f32 %v3459_v44  ;;  %v7031_v53 = vmul.f32 0.70710677, %v7028_v9  ;;  %v3502_v27 = vand.u32 2147483648, %v3459_v44 }
 0x58d   :  { %4127 = vpow2.f32 %v3567_v49  ;;  %v3554_v25 = vmul.f32 %v3550_v30, %v3489_v28  ;;  %v3500_v45 = vand.u32 2147483647, %v3459_v44  ;;  %vm3496_vm12 = vweird.f32 %v3459_v44 }
 0x58e   :  { %v3589_v19 = vmul.f32 %v3585_v43, %v3433_v47  ;;  %v3452_v18 = vand.u32 2147483647, %v7031_v53  ;;  %v3503_v63 = vor.u32 1.1754944e-38, %v3502_v27  ;;  %v3563_v47 = vmul.f32 %v3559_v39, %v3451_v16 }
 0x58f   :  { %vm3501_vm13 = vcmp.eq.f32.partialorder %v3500_v45, 8.507059e+37  ;;  %v3447_v30 = vsel %vm3443_vm2, 1.0, %v7129_v56  ;;  %vm3444_vm3 = vcmp.ge.f32.partialorder %v7031_v53, 0.0  ;;  %v3665_v53 = vld [vmem:[%s7089_s14 + $0x30] sm:$0xff] }
 0x590   :  { %3631 = vmatmul.f32.vlgmr.msrb.gmra.mxu2 %v3589_v19  ;;  %v3456_v13 = vmul.f32 0.3275911, %v3452_v18  ;;  %v3569_v19 = vmul.f32 1.442695, %v3563_v47  ;;  %v3560_v60 = vsub.f32 0.0, %v3452_v18  ;;  %v3448_v27 = vsel %vm3444_vm3, 1.0, %v7129_v56 }
 0x591   :  { %v3664_v56 = vld [vmem:[%s7089_s14 + $0x28] sm:$0xff] }
 0x592   :  { %v4126_v4 = vpop.eup %4125  ;;  %v3460_v38 = vadd.f32 1.0, %v3456_v13  ;;  %v3564_v58 = vmul.f32 %v3560_v60, %v3452_v18  ;;  %v3435_v18 = vmul.f32 0.5, %v7020_v40  ;;  %v3666_v40 = vld [vmem:[%s7089_s14 + $0x38] sm:$0xff] }
 0x593   :  { %v3492_v61 = vmul.f32 %v4126_v4, %v3459_v44  ;;  %v4128_v37 = vpop.eup %4127  ;;  %vm3497_vm11 = vweird.f32 %v4126_v4  ;;  %3682 = vmatpush.msra.mxu3 %v3666_v40 }
 0x594   :  { %4129 = vrcp.f32 %v3460_v38  ;;  %v3574_v32 = vmul.f32 %v4128_v37, %v3554_v25  ;;  %vm3498_vm9 = vmor %vm3496_vm12, %vm3497_vm11  ;;  %v3517_v52 = vand.u32 2147483648, %v3460_v38  ;;  %v3515_v23 = vand.u32 2147483647, %v3460_v38 }
 0x595   :  { %v3493_v5 = vsub.f32 1.0, %v3492_v61  ;;  %vm3511_vm15 = vweird.f32 %v3460_v38  ;;  %4131 = vpow2.f32 %v3569_v19  ;;  %v3571_v31 = vmul.f32 1.442695, %v3564_v58  ;;  %3683 = vmatpush.msra.mxu3 %v3665_v53 }
 0x596   :  { %v3578_v24 = vsub.f32 1.0, %v3574_v32  ;;  %v3518_v14 = vor.u32 1.1754944e-38, %v3517_v52  ;;  %vm3516_vm1 = vcmp.eq.f32.partialorder %v3515_v23, 8.507059e+37 }
 0x597   :  { %v3494_v29 = vmul.f32 %v4126_v4, %v3493_v5  ;;  %4133 = vpow2.f32 %v3571_v31  ;;  %3684 = vmatpush.msra.mxu3 %v3664_v56 }
 0x598   :  { %v3582_v20 = vmul.f32 %v3578_v24, %v3446_v7 }
 0x599   :  { %v3495_v59 = vadd.f32 %v4126_v4, %v3494_v29  ;;  %v3436_v29 = vmul.f32 0.5, %v7028_v9  ;;  %v3663_v9 = vld [vmem:[%s7089_s14 + $0x20] sm:$0xff] }
 0x59a   :  { %v4130_v26 = vpop.eup %4129  ;;  %v3586_v12 = vadd.f32 1.0, %v3582_v20  ;;  %3685 = vmatpush.msra.mxu3 %v3663_v9 }
 0x59b   :  { %v3507_v46 = vmul.f32 %v4130_v26, %v3460_v38  ;;  %v3499_v57 = vsel %vm3498_vm9, %v4126_v4, %v3495_v59  ;;  %vm3512_vm14 = vweird.f32 %v4130_v26  ;;  %v4132_v44 = vpop.eup %4131  ;;  %v3662_v59 = vld [vmem:[%s7089_s14 + $0x18] sm:$0xff] }
 0x59c   :  { %v3504_v50 = vsel %vm3501_vm13, %v3503_v63, %v3499_v57  ;;  %v3590_v0 = vmul.f32 %v3586_v12, %v3434_v34  ;;  %vm3513_vm0 = vmor %vm3511_vm15, %vm3512_vm14  ;;  %3686 = vmatpush.msra.mxu3 %v3662_v59  ;;  %v3660_v34 = vld [vmem:[%s7089_s14 + $0x8] sm:$0xff]  ;;  %v3659_v63 = vld [vmem:[%s7089_s14] sm:$0xff] }
 0x59d   :  { %v3508_v48 = vsub.f32 1.0, %v3507_v46  ;;  %v3523_v54 = vmul.f32 1.0614054, %v3504_v50  ;;  %v4134_v37 = vpop.eup %4133  ;;  %v3909_v12 = vld [vmem:[#allocation4 + $0x1] ss:$0 sm:$0xff] }
 0x59e   :  { %3633 = vmatmul.f32.gmra.mxu2 %v3590_v0 }
 0x59f   :  { %v3527_v55 = vadd.f32 -1.4531521, %v3523_v54  ;;  %v3509_v21 = vmul.f32 %v4130_v26, %v3508_v48  ;;  %v3646_v48 = vpop.permute.xlu2 %3645 }
 0x5a1   :  { %v3531_v43 = vmul.f32 %v3527_v55, %v3504_v50  ;;  %v3510_v17 = vadd.f32 %v4130_v26, %v3509_v21  ;;  %v3651_v21 = vpop.permute.xlu0 %3650 }
 0x5a3   :  { %v3535_v62 = vadd.f32 1.4214138, %v3531_v43  ;;  %v3514_v2 = vsel %vm3513_vm0, %v4130_v26, %v3510_v17  ;;  %v3661_v26 = vld [vmem:[%s7089_s14 + $0x10] sm:$0xff]  ;;  %v3910_v17 = vld [vmem:[#allocation6] ss:$0 sm:$0xff] }
 0x5a4   :  { %v3519_v42 = vsel %vm3516_vm1, %v3518_v14, %v3514_v2  ;;  %3687 = vmatpush.msra.mxu3 %v3661_v26 }
 0x5a5   :  { %v3539_v15 = vmul.f32 %v3535_v62, %v3504_v50  ;;  %v3524_v22 = vmul.f32 1.0614054, %v3519_v42 }
 0x5a6   :  { %3688 = vmatpush.msra.mxu3 %v3660_v34 }
 0x5a7   :  { %v3543_v28 = vadd.f32 -0.28449672, %v3539_v15  ;;  %v3528_v8 = vadd.f32 -1.4531521, %v3524_v22 }
 0x5a8   :  { %3689 = vmatpush.msra.mxu3 %v3659_v63 }
 0x5a9   :  { %v3547_v10 = vmul.f32 %v3543_v28, %v3504_v50  ;;  %v3532_v35 = vmul.f32 %v3528_v8, %v3519_v42 }
 0x5ab   :  { %v3551_v16 = vadd.f32 0.2548296, %v3547_v10  ;;  %v3536_v33 = vadd.f32 1.4214138, %v3532_v35 }
 0x5ad   :  { %v3555_v11 = vmul.f32 %v3551_v16, %v3504_v50  ;;  %v3540_v49 = vmul.f32 %v3536_v33, %v3519_v42 }
 0x5af   :  { %v3575_v6 = vmul.f32 %v4132_v44, %v3555_v11  ;;  %v3544_v3 = vadd.f32 -0.28449672, %v3540_v49 }
 0x5b1   :  { %v3579_v1 = vsub.f32 1.0, %v3575_v6  ;;  %v3548_v13 = vmul.f32 %v3544_v3, %v3519_v42 }
 0x5b3   :  { %v3583_v4 = vmul.f32 %v3579_v1, %v3447_v30  ;;  %v3552_v38 = vadd.f32 0.2548296, %v3548_v13 }
 0x5b5   :  { %v3587_v61 = vadd.f32 1.0, %v3583_v4  ;;  %v3556_v25 = vmul.f32 %v3552_v38, %v3519_v42 }
 0x5b7   :  { %v3591_v5 = vmul.f32 %v3587_v61, %v3435_v18  ;;  %v3576_v32 = vmul.f32 %v4134_v37, %v3556_v25 }
 0x5b9   :  { %3636 = vmatmul.f32.gmra.mxu2 %v3591_v5  ;;  %v3580_v41 = vsub.f32 1.0, %v3576_v32 }
 0x5bb   :  { %v3584_v24 = vmul.f32 %v3580_v41, %v3448_v27 }
 0x5bd   :  { %v3588_v45 = vadd.f32 1.0, %v3584_v24 }
 0x5bf   :  { %v3592_v7 = vmul.f32 %v3588_v45, %v3436_v29 }
 0x5c1   :  { %3638 = vmatmul.f32.gmra.mxu2 %v3592_v7 }
 0x613   :  { %v3632_v20 = vpop.f32.mrf.mxu2 }
 0x621   :  { %v3634_v46 = vpop.f32.mrf.mxu2 }
 0x622   :  { %v3635_v39 = vadd.f32 %v3909_v12, %v3634_v46 }
 0x624   :  { %v3642_v50 = vadd.f32 %v3635_v39, %v6916_v36 }
 0x626   :  { %v3648_v54 = vsel %vm563_vm10, %v3646_v48, %v3642_v50 }
 0x627   :  { %v3655_v23 = vrot.slane %v3648_v54, 4 }
 0x63c   :  { %v3637_v57 = vpop.f32.mrf.mxu2 }
 0x644   :  { %v3639_v0 = vpop.f32.mrf.mxu2 }
 0x645   :  { %v3640_v52 = vadd.f32 %v3909_v12, %v3639_v0 }
 0x647   :  { %v3643_v55 = vadd.f32 %v3640_v52, %v6925_v51 }
 0x649   :  { %v3653_v47 = vsel %vm563_vm10, %v3651_v21, %v3643_v55 }
 0x64a   :  { %v3658_v43 = vsel %vm3657_vm5, %v3655_v23, %v3653_v47 }
 0x64b   :  { %3863 = vmatmul.msk.f32.vlgmr.msra.gmra.mxu3 %vm3084_vm4, %v3658_v43 }
 0x6ce   :  { %v3691_v14 = vpop.f32.mrf.mxu3 }
 0x6cf   :  { %v3692_v62 = vadd.f32 %v3910_v17, %v3691_v14 }
 0x6d1   :  { %v3695_v2 = vand.u32 2147483647, %v3692_v62  ;;  %v3694_v51 = vmax.f32 %v3692_v62, 0.0 }
 0x6d3   :  { %v3696_v36 = vsub.f32 0.0, %v3695_v2 }
 0x6d5   :  { %v3697_v19 = vmul.f32 1.442695, %v3696_v36 }
 0x6d7   :  { %4135 = vpow2.f32 %v3697_v19 }
 0x6dd   :  { %v4136_v60 = vpop.eup %4135 }
 0x6de   :  { %v3699_v42 = vadd.f32 1.0, %v4136_v60 }
 0x6e0   :  { %4137 = vlog2.f32 %v3699_v42 }
 0x6e6   :  { %v4138_v15 = vpop.eup %4137 }
 0x6e7   :  { %v3701_v22 = vmul.f32 0.6931472, %v4138_v15 }
 0x6e9   :  { %v3702_v28 = vadd.f32 %v3701_v22, %v3694_v51 }
 0x6eb   :  { %3704 = vst.msk [vmem:[%s7091_s16] sm:$0xff] %vm3703_vm6, %v3702_v28 }
 0x6ec   :  { %3709 = vsyncpa [#allocation3], 1 }
 0x6ed   :  { %3710 = vsyncpa [#allocation5], 1 }

</bundles_post_ra>
